<compile_context>
chip_gen: v7x
topology: tpu7x:2x2x1
jax: 0.10.0
libtpu: 0.0.40
codegen_flags: <defaults>
</compile_context>

<pallas_src>
import numpy as np
import jax
import jax.numpy as jnp
from jax import lax
from jax.experimental import pallas as pl
from jax.experimental.pallas import tpu as pltpu

# ---------------------------------------------------------------------------
# Model constants (hard-coded in the PyTorch module)
# ---------------------------------------------------------------------------
N_NODES = 111          # brain regions
F_IN = 111             # input features per node
H1 = 64                # hidden of first GCN layers
H2 = 20                # hidden of second GCN layers / global GCN
K1 = 100               # opt.k1 -> SAGPooling keeps 100 nodes (forced by code)
K2_DIM = 56            # int(opt.k2 * 112) with opt.k2 = 0.5 (forced by code)
NEG_SLOPE = 0.01       # F.leaky_relu default

LEFT = np.array([6, 5, 55, 1, 98, 71, 73, 77, 63, 96, 79, 15, 104, 4, 25, 23,
                 41, 43, 45, 17, 61, 65, 59, 57, 86, 21, 35, 37, 39, 94, 110,
                 3, 69, 81, 84, 100, 102, 106, 47, 27, 75, 2, 67, 19, 49, 31,
                 33, 108, 51, 53, 88, 90, 92, 29, 0], dtype=np.int32)
RIGHT = np.array([13, 12, 54, 8, 97, 70, 72, 76, 62, 95, 78, 14, 103, 11, 24,
                  22, 40, 42, 44, 16, 60, 64, 58, 56, 85, 20, 34, 36, 38, 93,
                  109, 10, 68, 80, 83, 99, 101, 105, 46, 26, 74, 9, 66, 18,
                  48, 30, 32, 107, 50, 52, 87, 89, 91, 28, 7], dtype=np.int32)


# ---------------------------------------------------------------------------
# In-kernel helpers
# ---------------------------------------------------------------------------
def _lrelu(v):
    return jnp.where(v >= 0.0, v, NEG_SLOPE * v)


def _softmax_last(v):
    m = jnp.max(v, axis=-1, keepdims=True)
    e = jnp.exp(v - m)
    return e / jnp.sum(e, axis=-1, keepdims=True)


# ---------------------------------------------------------------------------
# Kernel A: masked hemisphere GCNs + global GCN + SAGPooling scoring, fused
# ---------------------------------------------------------------------------
def _graph_stack_kernel(adj_w_ref, adj_uw_ref, x_ref,
                        ml_c_ref, ml_r_ref, mr_c_ref, mr_r_ref,
                        w1_ref, b1_ref, w2_ref, b2_ref,
                        wg_ref, bg_ref, wsag_ref, bsag_ref,
                        nf_ref, score_ref):
    f32 = jnp.float32
    adj_w = adj_w_ref[...]
    adj_uw = adj_uw_ref[...]
    x = x_ref[...]
    ml_c = ml_c_ref[...]   # (N, 1) left-hemisphere mask (column)
    ml_r = ml_r_ref[...]   # (1, N) left-hemisphere mask (row)
    mr_c = mr_c_ref[...]   # (N, 1) right-hemisphere mask (column)
    mr_r = mr_r_ref[...]   # (1, N) right-hemisphere mask (row)

    n = adj_w.shape[0]
    eye = (lax.broadcasted_iota(jnp.int32, (n, n), 0)
           == lax.broadcasted_iota(jnp.int32, (n, n), 1)).astype(f32)

    def gcn_norm(a):
        # PyG GCNConv normalization: D^-1/2 (A + I) D^-1/2 (self-loop weight 1)
        a_hat = a + eye
        deg_c = jnp.sum(a_hat, axis=1, keepdims=True)   # (n, 1)
        deg_r = jnp.sum(a_hat, axis=0, keepdims=True)   # (1, n)  (A symmetric)
        dc = jnp.where(deg_c > 0.0, lax.rsqrt(deg_c), 0.0)
        dr = jnp.where(deg_r > 0.0, lax.rsqrt(deg_r), 0.0)
        return a_hat * dc * dr

    a_left_n = gcn_norm(adj_w * ml_c * ml_r)    # subgraph(left) + normalize
    a_right_n = gcn_norm(adj_w * mr_c * mr_r)   # subgraph(right) + normalize
    a_full_n = gcn_norm(adj_w)
    # Row-combined adjacency: left rows behave like A_left_n, right rows like
    # A_right_n; output rows are re-masked per hemisphere afterwards anyway.
    a_comb = ml_c * a_left_n + mr_c * a_right_n

    # --- GCN layer 1 (left|right weights packed into one 128-lane matmul) ---
    xw1 = jnp.dot(x, w1_ref[...], preferred_element_type=f32)            # (N,128)
    z1 = jnp.dot(a_comb, xw1, preferred_element_type=f32) + b1_ref[...]
    nf1 = ml_c * _lrelu(z1[:, :H1]) + mr_c * _lrelu(z1[:, H1:])          # (N,64)

    # --- GCN layer 2 --------------------------------------------------------
    xw2 = jnp.dot(nf1, w2_ref[...], preferred_element_type=f32)          # (N,40)
    z2 = jnp.dot(a_comb, xw2, preferred_element_type=f32) + b2_ref[...]
    nf2 = ml_c * _lrelu(z2[:, :H2]) + mr_c * _lrelu(z2[:, H2:])          # (N,20)

    # --- global GCN ---------------------------------------------------------
    zg = jnp.dot(a_full_n,
                 jnp.dot(nf2, wg_ref[...], preferred_element_type=f32),
                 preferred_element_type=f32) + bg_ref[...]
    nf2g = _lrelu(zg)                                                    # (N,20)

    # --- SAGPooling scoring: GraphConv(20 -> 1) on unweighted edges ---------
    agg = jnp.dot(adj_uw, nf2g, preferred_element_type=f32)              # (N,20)
    raw = (jnp.sum(agg * wsag_ref[0:1, :], axis=1, keepdims=True)
           + jnp.sum(nf2g * wsag_ref[1:2, :], axis=1, keepdims=True)
           + bsag_ref[...])
    nf_ref[...] = nf2g
    score_ref[...] = jnp.tanh(raw)


# ---------------------------------------------------------------------------
# Kernel B: ChebConv(K=3, sym) + double softmax + diff-pool coarse features
# ---------------------------------------------------------------------------
def _cheb_pool_kernel(a_ref, x_ref, w0_ref, w1_ref, w2_ref, bc_ref, out_ref):
    f32 = jnp.float32
    a = a_ref[...]                       # pooled binary adjacency in [:K1,:K1]
    x = x_ref[...]                       # (N, 20)

    # Scaled Laplacian with lambda_max = 2: L_hat = -D^-1/2 A D^-1/2
    deg_c = jnp.sum(a, axis=1, keepdims=True)
    deg_r = jnp.sum(a, axis=0, keepdims=True)
    dc = jnp.where(deg_c > 0.0, lax.rsqrt(deg_c), 0.0)
    dr = jnp.where(deg_r > 0.0, lax.rsqrt(deg_r), 0.0)
    lhat = -(a * dc * dr)

    # Chebyshev recurrence: T0 = x, T1 = L_hat x, T2 = 2 L_hat T1 - x
    t1 = jnp.dot(lhat, x, preferred_element_type=f32)
    t2 = 2.0 * jnp.dot(lhat, t1, preferred_element_type=f32) - x
    cheb = (jnp.dot(x, w0_ref[...], preferred_element_type=f32)
            + jnp.dot(t1, w1_ref[...], preferred_element_type=f32)
            + jnp.dot(t2, w2_ref[...], preferred_element_type=f32)
            + bc_ref[...])                                             # (N,56)

    ass = _softmax_last(cheb)            # F.softmax(cheb_out, dim=-1)
    s2 = _softmax_last(ass)              # dense_diff_pool re-softmaxes
    # H_coarse = s2^T @ x  -> (56, 20), contraction on the node axis of both
    h_coarse = lax.dot_general(s2, x, (((0,), (0,)), ((), ())),
                               preferred_element_type=f32)
    # full_h[i] = ass[i] @ H_coarse ; rows later gathered by sorted perm
    out_ref[...] = jnp.dot(ass, h_coarse, preferred_element_type=f32)   # (N,20)


# ---------------------------------------------------------------------------
# pallas_call wrappers (single block, whole arrays resident in VMEM)
# ---------------------------------------------------------------------------
def _vmem():
    return pl.BlockSpec(memory_space=pltpu.MemorySpace.VMEM)


def graph_stack_call(adj_w, adj_uw, x, ml_c, ml_r, mr_c, mr_r,
                     w1, b1, w2, b2, wg, bg, wsag, bsag):
    return pl.pallas_call(
        _graph_stack_kernel,
        out_shape=(jax.ShapeDtypeStruct((N_NODES, H2), jnp.float32),
                   jax.ShapeDtypeStruct((N_NODES, 1), jnp.float32)),
        in_specs=[_vmem() for _ in range(15)],
        out_specs=(_vmem(), _vmem()),
    )(adj_w, adj_uw, x, ml_c, ml_r, mr_c, mr_r,
      w1, b1, w2, b2, wg, bg, wsag, bsag)


def cheb_pool_call(a_cheb, nf, w0, w1, w2, bc):
    return pl.pallas_call(
        _cheb_pool_kernel,
        out_shape=jax.ShapeDtypeStruct((N_NODES, H2), jnp.float32),
        in_specs=[_vmem() for _ in range(6)],
        out_specs=_vmem(),
    )(a_cheb, nf, w0, w1, w2, bc)


# ---------------------------------------------------------------------------
# Full forward pass (fully on-device, one jit)
# ---------------------------------------------------------------------------
@jax.jit
def brain_connectomic_graph_forward(features, adj_w, adj_uw, params):
    left = jnp.asarray(LEFT)
    right = jnp.asarray(RIGHT)
    ml = jnp.zeros((N_NODES,), jnp.float32).at[left].set(1.0)
    mr = jnp.zeros((N_NODES,), jnp.float32).at[right].set(1.0)

    # F.dropout in eval semantics (identity).
    # TODO(synk): training-mode dropout RNG not reproduced.

    # Pack hemisphere weights so both hemispheres share one MXU pass per layer.
    w1 = jnp.concatenate([params["w_l1"], params["w_r1"]], axis=1)            # (111,128)
    b1 = jnp.concatenate([params["b_l1"], params["b_r1"]])[None, :]           # (1,128)
    w2 = jnp.concatenate([params["w_l2"], params["w_r2"]], axis=1)            # (64,40)
    b2 = jnp.concatenate([params["b_l2"], params["b_r2"]])[None, :]           # (1,40)
    wsag = jnp.concatenate([params["w_sag_rel"].T,
                            params["w_sag_root"].T], axis=0)                  # (2,20)

    # ---- fused kernel A: all GCN layers + SAG scoring ----------------------
    nf2g, score = graph_stack_call(
        adj_w, adj_uw, features,
        ml[:, None], ml[None, :], mr[:, None], mr[None, :],
        w1, b1, w2, b2,
        params["w_g1"], params["b_g1"][None, :],
        wsag, params["b_sag"][None, :])

    # ---- SAGPooling(20, 100): top-k + gating (sort/gather stay in XLA) -----
    top_score, perm = lax.top_k(score[:, 0], K1)
    pooled_x = nf2g[perm] * top_score[:, None]                                # (100,20)

    # filter_adj: keep + relabel pooled edges, embed back into a 111x111 slab
    a_sub = adj_uw[perm][:, perm]
    a_cheb = jnp.zeros((N_NODES, N_NODES), jnp.float32).at[:K1, :K1].set(a_sub)

    # ---- fused kernel B: ChebConv + softmax^2 + diff-pool coarse features --
    full_h = cheb_pool_call(a_cheb, nf2g,
                            params["w_c0"], params["w_c1"], params["w_c2"],
                            params["b_c"][None, :])                           # (111,20)

    # ---- inter_channel_adj @ H_coarse, on-device ----------------------------
    # Reference loop fills rows in ascending node order for perm entries < 110
    # (node 110 excluded; unfilled rows stay zero), then matmuls with H_coarse.
    sp = jnp.sort(perm)
    h1 = jnp.where((sp < 110)[:, None], full_h[sp], 0.0)                      # (100,20)
    h2 = pooled_x + h1
    return h2.reshape(1, -1)                                                  # (1,2000)


# ---------------------------------------------------------------------------
# Deterministic parameter / input construction
# ---------------------------------------------------------------------------
def glorot(key, shape):
    fan_in, fan_out = shape
    std = float(np.sqrt(2.0 / (fan_in + fan_out)))
    return std * jax.random.normal(key, shape, jnp.float32)


def make_params(key):
    ks = jax.random.split(key, 10)
    return {
        "w_l1": glorot(ks[0], (F_IN, H1)), "b_l1": jnp.zeros((H1,), jnp.float32),
        "w_r1": glorot(ks[1], (F_IN, H1)), "b_r1": jnp.zeros((H1,), jnp.float32),
        "w_l2": glorot(ks[2], (H1, H2)), "b_l2": jnp.zeros((H2,), jnp.float32),
        "w_r2": glorot(ks[3], (H1, H2)), "b_r2": jnp.zeros((H2,), jnp.float32),
        "w_g1": glorot(ks[4], (H2, H2)), "b_g1": jnp.zeros((H2,), jnp.float32),
        # SAGPooling scoring GraphConv(20 -> 1)
        "w_sag_rel": glorot(ks[5], (H2, 1)),
        "w_sag_root": glorot(ks[6], (H2, 1)),
        "b_sag": jnp.zeros((1,), jnp.float32),
        # ChebConv(20 -> 56, K=3)
        "w_c0": glorot(ks[7], (H2, K2_DIM)),
        "w_c1": glorot(ks[8], (H2, K2_DIM)),
        "w_c2": glorot(ks[9], (H2, K2_DIM)),
        "b_c": jnp.zeros((K2_DIM,), jnp.float32),
    }


def make_inputs(key):
    k_feat, k_mask, k_w = jax.random.split(key, 3)
    features = jax.random.normal(k_feat, (N_NODES, F_IN), jnp.float32)
    u = jax.random.uniform(k_mask, (N_NODES, N_NODES))
    u = (u + u.T) / 2.0
    mask = (u < 0.15).astype(jnp.float32) * (1.0 - jnp.eye(N_NODES))
    w = jax.random.uniform(k_w, (N_NODES, N_NODES), minval=0.1, maxval=1.0)
    w = (w + w.T) / 2.0
    adj_w = mask * w        # dense weighted adjacency (edge_index + edge_attr + data.adj)
    adj_uw = mask           # dense binary adjacency   (edge_index alone)
    return features, adj_w, adj_uw


if __name__ == "__main__":
    root = jax.random.PRNGKey(0)
    k_data, k_params = jax.random.split(root)
    features, adj_w, adj_uw = make_inputs(k_data)
    params = make_params(k_params)

    emb = brain_connectomic_graph_forward(features, adj_w, adj_uw, params)
    emb = jax.block_until_ready(emb)

    assert emb.shape == (1, K1 * H2), emb.shape
    assert emb.dtype == jnp.float32
    assert bool(jnp.all(jnp.isfinite(emb)))
    print("KERNEL_OK")
</pallas_src>

<mosaic_0001>
module attributes {stable_mosaic.version = 11 : i64} {
  func.func @_graph_stack_kernel(%arg0: memref<111x111xf32, #tpu.memory_space<vmem>>, %arg1: memref<111x111xf32, #tpu.memory_space<vmem>>, %arg2: memref<111x111xf32, #tpu.memory_space<vmem>>, %arg3: memref<111x1xf32, #tpu.memory_space<vmem>>, %arg4: memref<1x111xf32, #tpu.memory_space<vmem>>, %arg5: memref<111x1xf32, #tpu.memory_space<vmem>>, %arg6: memref<1x111xf32, #tpu.memory_space<vmem>>, %arg7: memref<111x128xf32, #tpu.memory_space<vmem>>, %arg8: memref<1x128xf32, #tpu.memory_space<vmem>>, %arg9: memref<64x40xf32, #tpu.memory_space<vmem>>, %arg10: memref<1x40xf32, #tpu.memory_space<vmem>>, %arg11: memref<20x20xf32, #tpu.memory_space<vmem>>, %arg12: memref<1x20xf32, #tpu.memory_space<vmem>>, %arg13: memref<2x20xf32, #tpu.memory_space<vmem>>, %arg14: memref<1x1xf32, #tpu.memory_space<vmem>>, %arg15: memref<111x20xf32, #tpu.memory_space<vmem>>, %arg16: memref<111x1xf32, #tpu.memory_space<vmem>>) attributes {dimension_semantics = [], scalar_prefetch = 0 : i64, scratch_operands = 0 : i64, tpu.core_type = #tpu.core_type<tc>} {
    %c0 = arith.constant 0 : index
    %c0_0 = arith.constant 0 : index
    %0 = vector.load %arg0[%c0, %c0_0] : memref<111x111xf32, #tpu.memory_space<vmem>>, vector<111x111xf32>
    %c0_1 = arith.constant 0 : index
    %c0_2 = arith.constant 0 : index
    %1 = vector.load %arg1[%c0_1, %c0_2] : memref<111x111xf32, #tpu.memory_space<vmem>>, vector<111x111xf32>
    %c0_3 = arith.constant 0 : index
    %c0_4 = arith.constant 0 : index
    %2 = vector.load %arg2[%c0_3, %c0_4] : memref<111x111xf32, #tpu.memory_space<vmem>>, vector<111x111xf32>
    %c0_5 = arith.constant 0 : index
    %c0_6 = arith.constant 0 : index
    %3 = vector.load %arg3[%c0_5, %c0_6] : memref<111x1xf32, #tpu.memory_space<vmem>>, vector<111x1xf32>
    %c0_7 = arith.constant 0 : index
    %c0_8 = arith.constant 0 : index
    %4 = vector.load %arg4[%c0_7, %c0_8] : memref<1x111xf32, #tpu.memory_space<vmem>>, vector<1x111xf32>
    %c0_9 = arith.constant 0 : index
    %c0_10 = arith.constant 0 : index
    %5 = vector.load %arg5[%c0_9, %c0_10] : memref<111x1xf32, #tpu.memory_space<vmem>>, vector<111x1xf32>
    %c0_11 = arith.constant 0 : index
    %c0_12 = arith.constant 0 : index
    %6 = vector.load %arg6[%c0_11, %c0_12] : memref<1x111xf32, #tpu.memory_space<vmem>>, vector<1x111xf32>
    %7 = tpu.iota {dimensions = array<i32: 0>} : vector<111x111xi32>
    %8 = tpu.iota {dimensions = array<i32: 1>} : vector<111x111xi32>
    %9 = arith.cmpi eq, %7, %8 : vector<111x111xi32>
    %10 = arith.extui %9 : vector<111x111xi1> to vector<111x111xi32>
    %11 = arith.sitofp %10 : vector<111x111xi32> to vector<111x111xf32>
    %12 = vector.broadcast %3 : vector<111x1xf32> to vector<111x111xf32>
    %13 = arith.mulf %0, %12 : vector<111x111xf32>
    %14 = vector.broadcast %4 : vector<1x111xf32> to vector<111x111xf32>
    %15 = arith.mulf %13, %14 : vector<111x111xf32>
    %16 = arith.addf %15, %11 : vector<111x111xf32>
    %cst = arith.constant dense<0.000000e+00> : vector<111xf32>
    %17 = vector.multi_reduction <add>, %16, %cst [1] : vector<111x111xf32> to vector<111xf32>
    %18 = vector.shape_cast %17 : vector<111xf32> to vector<111x1xf32>
    %cst_13 = arith.constant dense<0.000000e+00> : vector<111xf32>
    %19 = vector.multi_reduction <add>, %16, %cst_13 [0] : vector<111x111xf32> to vector<111xf32>
    %20 = vector.shape_cast %19 : vector<111xf32> to vector<1x111xf32>
    %cst_14 = arith.constant 0.000000e+00 : f32
    %21 = vector.broadcast %cst_14 : f32 to vector<111x1xf32>
    %22 = arith.cmpf ogt, %18, %21 : vector<111x1xf32>
    %23 = math.rsqrt %18 : vector<111x1xf32>
    %cst_15 = arith.constant 0.000000e+00 : f32
    %24 = vector.broadcast %cst_15 : f32 to vector<111x1xf32>
    %25 = arith.select %22, %23, %24 : vector<111x1xi1>, vector<111x1xf32>
    %cst_16 = arith.constant 0.000000e+00 : f32
    %26 = vector.broadcast %cst_16 : f32 to vector<1x111xf32>
    %27 = arith.cmpf ogt, %20, %26 : vector<1x111xf32>
    %28 = math.rsqrt %20 : vector<1x111xf32>
    %cst_17 = arith.constant 0.000000e+00 : f32
    %29 = vector.broadcast %cst_17 : f32 to vector<1x111xf32>
    %30 = arith.select %27, %28, %29 : vector<1x111xi1>, vector<1x111xf32>
    %31 = vector.broadcast %25 : vector<111x1xf32> to vector<111x111xf32>
    %32 = arith.mulf %16, %31 : vector<111x111xf32>
    %33 = vector.broadcast %30 : vector<1x111xf32> to vector<111x111xf32>
    %34 = arith.mulf %32, %33 : vector<111x111xf32>
    %35 = vector.broadcast %5 : vector<111x1xf32> to vector<111x111xf32>
    %36 = arith.mulf %0, %35 : vector<111x111xf32>
    %37 = vector.broadcast %6 : vector<1x111xf32> to vector<111x111xf32>
    %38 = arith.mulf %36, %37 : vector<111x111xf32>
    %39 = arith.addf %38, %11 : vector<111x111xf32>
    %cst_18 = arith.constant dense<0.000000e+00> : vector<111xf32>
    %40 = vector.multi_reduction <add>, %39, %cst_18 [1] : vector<111x111xf32> to vector<111xf32>
    %41 = vector.shape_cast %40 : vector<111xf32> to vector<111x1xf32>
    %cst_19 = arith.constant dense<0.000000e+00> : vector<111xf32>
    %42 = vector.multi_reduction <add>, %39, %cst_19 [0] : vector<111x111xf32> to vector<111xf32>
    %43 = vector.shape_cast %42 : vector<111xf32> to vector<1x111xf32>
    %cst_20 = arith.constant 0.000000e+00 : f32
    %44 = vector.broadcast %cst_20 : f32 to vector<111x1xf32>
    %45 = arith.cmpf ogt, %41, %44 : vector<111x1xf32>
    %46 = math.rsqrt %41 : vector<111x1xf32>
    %cst_21 = arith.constant 0.000000e+00 : f32
    %47 = vector.broadcast %cst_21 : f32 to vector<111x1xf32>
    %48 = arith.select %45, %46, %47 : vector<111x1xi1>, vector<111x1xf32>
    %cst_22 = arith.constant 0.000000e+00 : f32
    %49 = vector.broadcast %cst_22 : f32 to vector<1x111xf32>
    %50 = arith.cmpf ogt, %43, %49 : vector<1x111xf32>
    %51 = math.rsqrt %43 : vector<1x111xf32>
    %cst_23 = arith.constant 0.000000e+00 : f32
    %52 = vector.broadcast %cst_23 : f32 to vector<1x111xf32>
    %53 = arith.select %50, %51, %52 : vector<1x111xi1>, vector<1x111xf32>
    %54 = vector.broadcast %48 : vector<111x1xf32> to vector<111x111xf32>
    %55 = arith.mulf %39, %54 : vector<111x111xf32>
    %56 = vector.broadcast %53 : vector<1x111xf32> to vector<111x111xf32>
    %57 = arith.mulf %55, %56 : vector<111x111xf32>
    %58 = arith.addf %0, %11 : vector<111x111xf32>
    %cst_24 = arith.constant dense<0.000000e+00> : vector<111xf32>
    %59 = vector.multi_reduction <add>, %58, %cst_24 [1] : vector<111x111xf32> to vector<111xf32>
    %60 = vector.shape_cast %59 : vector<111xf32> to vector<111x1xf32>
    %cst_25 = arith.constant dense<0.000000e+00> : vector<111xf32>
    %61 = vector.multi_reduction <add>, %58, %cst_25 [0] : vector<111x111xf32> to vector<111xf32>
    %62 = vector.shape_cast %61 : vector<111xf32> to vector<1x111xf32>
    %cst_26 = arith.constant 0.000000e+00 : f32
    %63 = vector.broadcast %cst_26 : f32 to vector<111x1xf32>
    %64 = arith.cmpf ogt, %60, %63 : vector<111x1xf32>
    %65 = math.rsqrt %60 : vector<111x1xf32>
    %cst_27 = arith.constant 0.000000e+00 : f32
    %66 = vector.broadcast %cst_27 : f32 to vector<111x1xf32>
    %67 = arith.select %64, %65, %66 : vector<111x1xi1>, vector<111x1xf32>
    %cst_28 = arith.constant 0.000000e+00 : f32
    %68 = vector.broadcast %cst_28 : f32 to vector<1x111xf32>
    %69 = arith.cmpf ogt, %62, %68 : vector<1x111xf32>
    %70 = math.rsqrt %62 : vector<1x111xf32>
    %cst_29 = arith.constant 0.000000e+00 : f32
    %71 = vector.broadcast %cst_29 : f32 to vector<1x111xf32>
    %72 = arith.select %69, %70, %71 : vector<1x111xi1>, vector<1x111xf32>
    %73 = vector.broadcast %67 : vector<111x1xf32> to vector<111x111xf32>
    %74 = arith.mulf %58, %73 : vector<111x111xf32>
    %75 = vector.broadcast %72 : vector<1x111xf32> to vector<111x111xf32>
    %76 = arith.mulf %74, %75 : vector<111x111xf32>
    %77 = vector.broadcast %3 : vector<111x1xf32> to vector<111x111xf32>
    %78 = arith.mulf %77, %34 : vector<111x111xf32>
    %79 = vector.broadcast %5 : vector<111x1xf32> to vector<111x111xf32>
    %80 = arith.mulf %79, %57 : vector<111x111xf32>
    %81 = arith.addf %78, %80 : vector<111x111xf32>
    %c0_30 = arith.constant 0 : index
    %c0_31 = arith.constant 0 : index
    %82 = vector.load %arg7[%c0_30, %c0_31] : memref<111x128xf32, #tpu.memory_space<vmem>>, vector<111x128xf32>
    %cst_32 = arith.constant dense<0.000000e+00> : vector<111x128xf32>
    %83 = tpu.matmul %2, %82, %cst_32 {dimension_numbers = #tpu.dot_dimension_numbers<[1], [0], [0], [1], [0, 0, 1, 1], [], []>} : vector<111x111xf32>, vector<111x128xf32>, vector<111x128xf32> -> vector<111x128xf32>
    %cst_33 = arith.constant dense<0.000000e+00> : vector<111x128xf32>
    %84 = tpu.matmul %81, %83, %cst_33 {dimension_numbers = #tpu.dot_dimension_numbers<[1], [0], [0], [1], [0, 0, 1, 1], [], []>} : vector<111x111xf32>, vector<111x128xf32>, vector<111x128xf32> -> vector<111x128xf32>
    %c0_34 = arith.constant 0 : index
    %c0_35 = arith.constant 0 : index
    %85 = vector.load %arg8[%c0_34, %c0_35] : memref<1x128xf32, #tpu.memory_space<vmem>>, vector<1x128xf32>
    %86 = vector.broadcast %85 : vector<1x128xf32> to vector<111x128xf32>
    %87 = arith.addf %84, %86 : vector<111x128xf32>
    %88 = vector.extract_strided_slice %87 {offsets = [0, 0], sizes = [111, 64], strides = [1, 1]} : vector<111x128xf32> to vector<111x64xf32>
    %cst_36 = arith.constant 0.000000e+00 : f32
    %89 = vector.broadcast %cst_36 : f32 to vector<111x64xf32>
    %90 = arith.cmpf oge, %88, %89 : vector<111x64xf32>
    %cst_37 = arith.constant 0.00999999977 : f32
    %91 = vector.broadcast %cst_37 : f32 to vector<111x64xf32>
    %92 = arith.mulf %91, %88 : vector<111x64xf32>
    %93 = arith.select %90, %88, %92 : vector<111x64xi1>, vector<111x64xf32>
    %94 = vector.broadcast %3 : vector<111x1xf32> to vector<111x64xf32>
    %95 = arith.mulf %94, %93 : vector<111x64xf32>
    %96 = vector.extract_strided_slice %87 {offsets = [0, 64], sizes = [111, 64], strides = [1, 1]} : vector<111x128xf32> to vector<111x64xf32>
    %cst_38 = arith.constant 0.000000e+00 : f32
    %97 = vector.broadcast %cst_38 : f32 to vector<111x64xf32>
    %98 = arith.cmpf oge, %96, %97 : vector<111x64xf32>
    %cst_39 = arith.constant 0.00999999977 : f32
    %99 = vector.broadcast %cst_39 : f32 to vector<111x64xf32>
    %100 = arith.mulf %99, %96 : vector<111x64xf32>
    %101 = arith.select %98, %96, %100 : vector<111x64xi1>, vector<111x64xf32>
    %102 = vector.broadcast %5 : vector<111x1xf32> to vector<111x64xf32>
    %103 = arith.mulf %102, %101 : vector<111x64xf32>
    %104 = arith.addf %95, %103 : vector<111x64xf32>
    %c0_40 = arith.constant 0 : index
    %c0_41 = arith.constant 0 : index
    %105 = vector.load %arg9[%c0_40, %c0_41] : memref<64x40xf32, #tpu.memory_space<vmem>>, vector<64x40xf32>
    %cst_42 = arith.constant dense<0.000000e+00> : vector<111x40xf32>
    %106 = tpu.matmul %104, %105, %cst_42 {dimension_numbers = #tpu.dot_dimension_numbers<[1], [0], [0], [1], [0, 0, 1, 1], [], []>} : vector<111x64xf32>, vector<64x40xf32>, vector<111x40xf32> -> vector<111x40xf32>
    %cst_43 = arith.constant dense<0.000000e+00> : vector<111x40xf32>
    %107 = tpu.matmul %81, %106, %cst_43 {dimension_numbers = #tpu.dot_dimension_numbers<[1], [0], [0], [1], [0, 0, 1, 1], [], []>} : vector<111x111xf32>, vector<111x40xf32>, vector<111x40xf32> -> vector<111x40xf32>
    %c0_44 = arith.constant 0 : index
    %c0_45 = arith.constant 0 : index
    %108 = vector.load %arg10[%c0_44, %c0_45] : memref<1x40xf32, #tpu.memory_space<vmem>>, vector<1x40xf32>
    %109 = vector.broadcast %108 : vector<1x40xf32> to vector<111x40xf32>
    %110 = arith.addf %107, %109 : vector<111x40xf32>
    %111 = vector.extract_strided_slice %110 {offsets = [0, 0], sizes = [111, 20], strides = [1, 1]} : vector<111x40xf32> to vector<111x20xf32>
    %cst_46 = arith.constant 0.000000e+00 : f32
    %112 = vector.broadcast %cst_46 : f32 to vector<111x20xf32>
    %113 = arith.cmpf oge, %111, %112 : vector<111x20xf32>
    %cst_47 = arith.constant 0.00999999977 : f32
    %114 = vector.broadcast %cst_47 : f32 to vector<111x20xf32>
    %115 = arith.mulf %114, %111 : vector<111x20xf32>
    %116 = arith.select %113, %111, %115 : vector<111x20xi1>, vector<111x20xf32>
    %117 = vector.broadcast %3 : vector<111x1xf32> to vector<111x20xf32>
    %118 = arith.mulf %117, %116 : vector<111x20xf32>
    %119 = vector.extract_strided_slice %110 {offsets = [0, 20], sizes = [111, 20], strides = [1, 1]} : vector<111x40xf32> to vector<111x20xf32>
    %cst_48 = arith.constant 0.000000e+00 : f32
    %120 = vector.broadcast %cst_48 : f32 to vector<111x20xf32>
    %121 = arith.cmpf oge, %119, %120 : vector<111x20xf32>
    %cst_49 = arith.constant 0.00999999977 : f32
    %122 = vector.broadcast %cst_49 : f32 to vector<111x20xf32>
    %123 = arith.mulf %122, %119 : vector<111x20xf32>
    %124 = arith.select %121, %119, %123 : vector<111x20xi1>, vector<111x20xf32>
    %125 = vector.broadcast %5 : vector<111x1xf32> to vector<111x20xf32>
    %126 = arith.mulf %125, %124 : vector<111x20xf32>
    %127 = arith.addf %118, %126 : vector<111x20xf32>
    %c0_50 = arith.constant 0 : index
    %c0_51 = arith.constant 0 : index
    %128 = vector.load %arg11[%c0_50, %c0_51] : memref<20x20xf32, #tpu.memory_space<vmem>>, vector<20x20xf32>
    %cst_52 = arith.constant dense<0.000000e+00> : vector<111x20xf32>
    %129 = tpu.matmul %127, %128, %cst_52 {dimension_numbers = #tpu.dot_dimension_numbers<[1], [0], [0], [1], [0, 0, 1, 1], [], []>} : vector<111x20xf32>, vector<20x20xf32>, vector<111x20xf32> -> vector<111x20xf32>
    %cst_53 = arith.constant dense<0.000000e+00> : vector<111x20xf32>
    %130 = tpu.matmul %76, %129, %cst_53 {dimension_numbers = #tpu.dot_dimension_numbers<[1], [0], [0], [1], [0, 0, 1, 1], [], []>} : vector<111x111xf32>, vector<111x20xf32>, vector<111x20xf32> -> vector<111x20xf32>
    %c0_54 = arith.constant 0 : index
    %c0_55 = arith.constant 0 : index
    %131 = vector.load %arg12[%c0_54, %c0_55] : memref<1x20xf32, #tpu.memory_space<vmem>>, vector<1x20xf32>
    %132 = vector.broadcast %131 : vector<1x20xf32> to vector<111x20xf32>
    %133 = arith.addf %130, %132 : vector<111x20xf32>
    %cst_56 = arith.constant 0.000000e+00 : f32
    %134 = vector.broadcast %cst_56 : f32 to vector<111x20xf32>
    %135 = arith.cmpf oge, %133, %134 : vector<111x20xf32>
    %cst_57 = arith.constant 0.00999999977 : f32
    %136 = vector.broadcast %cst_57 : f32 to vector<111x20xf32>
    %137 = arith.mulf %136, %133 : vector<111x20xf32>
    %138 = arith.select %135, %133, %137 : vector<111x20xi1>, vector<111x20xf32>
    %cst_58 = arith.constant dense<0.000000e+00> : vector<111x20xf32>
    %139 = tpu.matmul %1, %138, %cst_58 {dimension_numbers = #tpu.dot_dimension_numbers<[1], [0], [0], [1], [0, 0, 1, 1], [], []>} : vector<111x111xf32>, vector<111x20xf32>, vector<111x20xf32> -> vector<111x20xf32>
    %c0_59 = arith.constant 0 : index
    %c0_60 = arith.constant 0 : index
    %140 = vector.load %arg13[%c0_59, %c0_60] : memref<2x20xf32, #tpu.memory_space<vmem>>, vector<1x20xf32>
    %141 = vector.broadcast %140 : vector<1x20xf32> to vector<111x20xf32>
    %142 = arith.mulf %139, %141 : vector<111x20xf32>
    %cst_61 = arith.constant dense<0.000000e+00> : vector<111xf32>
    %143 = vector.multi_reduction <add>, %142, %cst_61 [1] : vector<111x20xf32> to vector<111xf32>
    %144 = vector.shape_cast %143 : vector<111xf32> to vector<111x1xf32>
    %c1 = arith.constant 1 : index
    %c0_62 = arith.constant 0 : index
    %145 = vector.load %arg13[%c1, %c0_62] : memref<2x20xf32, #tpu.memory_space<vmem>>, vector<1x20xf32>
    %146 = vector.broadcast %145 : vector<1x20xf32> to vector<111x20xf32>
    %147 = arith.mulf %138, %146 : vector<111x20xf32>
    %cst_63 = arith.constant dense<0.000000e+00> : vector<111xf32>
    %148 = vector.multi_reduction <add>, %147, %cst_63 [1] : vector<111x20xf32> to vector<111xf32>
    %149 = vector.shape_cast %148 : vector<111xf32> to vector<111x1xf32>
    %150 = arith.addf %144, %149 : vector<111x1xf32>
    %c0_64 = arith.constant 0 : index
    %c0_65 = arith.constant 0 : index
    %151 = vector.load %arg14[%c0_64, %c0_65] : memref<1x1xf32, #tpu.memory_space<vmem>>, vector<1x1xf32>
    %152 = vector.broadcast %151 : vector<1x1xf32> to vector<111x1xf32>
    %153 = arith.addf %150, %152 : vector<111x1xf32>
    %c0_66 = arith.constant 0 : index
    %c0_67 = arith.constant 0 : index
    %154 = vector.load %arg15[%c0_66, %c0_67] : memref<111x20xf32, #tpu.memory_space<vmem>>, vector<111x20xf32>
    tpu.vector_store %arg15[%c0_66, %c0_67], %138 {strides = array<i32>} : memref<111x20xf32, #tpu.memory_space<vmem>>, vector<111x20xf32>,
    %155 = math.tanh %153 : vector<111x1xf32>
    %c0_68 = arith.constant 0 : index
    %c0_69 = arith.constant 0 : index
    %156 = vector.load %arg16[%c0_68, %c0_69] : memref<111x1xf32, #tpu.memory_space<vmem>>, vector<111x1xf32>
    tpu.vector_store %arg16[%c0_68, %c0_69], %155 {strides = array<i32>} : memref<111x1xf32, #tpu.memory_space<vmem>>, vector<111x1xf32>,
    return
  }
}

module attributes {stable_mosaic.version = 11 : i64} {
  func.func @_cheb_pool_kernel(%arg0: memref<111x111xf32, #tpu.memory_space<vmem>>, %arg1: memref<111x20xf32, #tpu.memory_space<vmem>>, %arg2: memref<20x56xf32, #tpu.memory_space<vmem>>, %arg3: memref<20x56xf32, #tpu.memory_space<vmem>>, %arg4: memref<20x56xf32, #tpu.memory_space<vmem>>, %arg5: memref<1x56xf32, #tpu.memory_space<vmem>>, %arg6: memref<111x20xf32, #tpu.memory_space<vmem>>) attributes {dimension_semantics = [], scalar_prefetch = 0 : i64, scratch_operands = 0 : i64, tpu.core_type = #tpu.core_type<tc>} {
    %c0 = arith.constant 0 : index
    %c0_0 = arith.constant 0 : index
    %0 = vector.load %arg0[%c0, %c0_0] : memref<111x111xf32, #tpu.memory_space<vmem>>, vector<111x111xf32>
    %c0_1 = arith.constant 0 : index
    %c0_2 = arith.constant 0 : index
    %1 = vector.load %arg1[%c0_1, %c0_2] : memref<111x20xf32, #tpu.memory_space<vmem>>, vector<111x20xf32>
    %cst = arith.constant dense<0.000000e+00> : vector<111xf32>
    %2 = vector.multi_reduction <add>, %0, %cst [1] : vector<111x111xf32> to vector<111xf32>
    %3 = vector.shape_cast %2 : vector<111xf32> to vector<111x1xf32>
    %cst_3 = arith.constant dense<0.000000e+00> : vector<111xf32>
    %4 = vector.multi_reduction <add>, %0, %cst_3 [0] : vector<111x111xf32> to vector<111xf32>
    %5 = vector.shape_cast %4 : vector<111xf32> to vector<1x111xf32>
    %cst_4 = arith.constant 0.000000e+00 : f32
    %6 = vector.broadcast %cst_4 : f32 to vector<111x1xf32>
    %7 = arith.cmpf ogt, %3, %6 : vector<111x1xf32>
    %8 = math.rsqrt %3 : vector<111x1xf32>
    %cst_5 = arith.constant 0.000000e+00 : f32
    %9 = vector.broadcast %cst_5 : f32 to vector<111x1xf32>
    %10 = arith.select %7, %8, %9 : vector<111x1xi1>, vector<111x1xf32>
    %cst_6 = arith.constant 0.000000e+00 : f32
    %11 = vector.broadcast %cst_6 : f32 to vector<1x111xf32>
    %12 = arith.cmpf ogt, %5, %11 : vector<1x111xf32>
    %13 = math.rsqrt %5 : vector<1x111xf32>
    %cst_7 = arith.constant 0.000000e+00 : f32
    %14 = vector.broadcast %cst_7 : f32 to vector<1x111xf32>
    %15 = arith.select %12, %13, %14 : vector<1x111xi1>, vector<1x111xf32>
    %16 = vector.broadcast %10 : vector<111x1xf32> to vector<111x111xf32>
    %17 = arith.mulf %0, %16 : vector<111x111xf32>
    %18 = vector.broadcast %15 : vector<1x111xf32> to vector<111x111xf32>
    %19 = arith.mulf %17, %18 : vector<111x111xf32>
    %cst_8 = arith.constant 0.000000e+00 : f32
    %20 = vector.broadcast %cst_8 : f32 to vector<111x111xf32>
    %21 = arith.subf %20, %19 : vector<111x111xf32>
    %cst_9 = arith.constant dense<0.000000e+00> : vector<111x20xf32>
    %22 = tpu.matmul %21, %1, %cst_9 {dimension_numbers = #tpu.dot_dimension_numbers<[1], [0], [0], [1], [0, 0, 1, 1], [], []>} : vector<111x111xf32>, vector<111x20xf32>, vector<111x20xf32> -> vector<111x20xf32>
    %cst_10 = arith.constant dense<0.000000e+00> : vector<111x20xf32>
    %23 = tpu.matmul %21, %22, %cst_10 {dimension_numbers = #tpu.dot_dimension_numbers<[1], [0], [0], [1], [0, 0, 1, 1], [], []>} : vector<111x111xf32>, vector<111x20xf32>, vector<111x20xf32> -> vector<111x20xf32>
    %cst_11 = arith.constant 2.000000e+00 : f32
    %24 = vector.broadcast %cst_11 : f32 to vector<111x20xf32>
    %25 = arith.mulf %24, %23 : vector<111x20xf32>
    %26 = arith.subf %25, %1 : vector<111x20xf32>
    %c0_12 = arith.constant 0 : index
    %c0_13 = arith.constant 0 : index
    %27 = vector.load %arg2[%c0_12, %c0_13] : memref<20x56xf32, #tpu.memory_space<vmem>>, vector<20x56xf32>
    %cst_14 = arith.constant dense<0.000000e+00> : vector<111x56xf32>
    %28 = tpu.matmul %1, %27, %cst_14 {dimension_numbers = #tpu.dot_dimension_numbers<[1], [0], [0], [1], [0, 0, 1, 1], [], []>} : vector<111x20xf32>, vector<20x56xf32>, vector<111x56xf32> -> vector<111x56xf32>
    %c0_15 = arith.constant 0 : index
    %c0_16 = arith.constant 0 : index
    %29 = vector.load %arg3[%c0_15, %c0_16] : memref<20x56xf32, #tpu.memory_space<vmem>>, vector<20x56xf32>
    %cst_17 = arith.constant dense<0.000000e+00> : vector<111x56xf32>
    %30 = tpu.matmul %22, %29, %cst_17 {dimension_numbers = #tpu.dot_dimension_numbers<[1], [0], [0], [1], [0, 0, 1, 1], [], []>} : vector<111x20xf32>, vector<20x56xf32>, vector<111x56xf32> -> vector<111x56xf32>
    %31 = arith.addf %28, %30 : vector<111x56xf32>
    %c0_18 = arith.constant 0 : index
    %c0_19 = arith.constant 0 : index
    %32 = vector.load %arg4[%c0_18, %c0_19] : memref<20x56xf32, #tpu.memory_space<vmem>>, vector<20x56xf32>
    %cst_20 = arith.constant dense<0.000000e+00> : vector<111x56xf32>
    %33 = tpu.matmul %26, %32, %cst_20 {dimension_numbers = #tpu.dot_dimension_numbers<[1], [0], [0], [1], [0, 0, 1, 1], [], []>} : vector<111x20xf32>, vector<20x56xf32>, vector<111x56xf32> -> vector<111x56xf32>
    %34 = arith.addf %31, %33 : vector<111x56xf32>
    %c0_21 = arith.constant 0 : index
    %c0_22 = arith.constant 0 : index
    %35 = vector.load %arg5[%c0_21, %c0_22] : memref<1x56xf32, #tpu.memory_space<vmem>>, vector<1x56xf32>
    %36 = vector.broadcast %35 : vector<1x56xf32> to vector<111x56xf32>
    %37 = arith.addf %34, %36 : vector<111x56xf32>
    %cst_23 = arith.constant dense<0xFF800000> : vector<111xf32>
    %38 = vector.multi_reduction <maximumf>, %37, %cst_23 [1] : vector<111x56xf32> to vector<111xf32>
    %39 = vector.shape_cast %38 : vector<111xf32> to vector<111x1xf32>
    %40 = vector.broadcast %39 : vector<111x1xf32> to vector<111x56xf32>
    %41 = arith.subf %37, %40 : vector<111x56xf32>
    %42 = math.exp %41 : vector<111x56xf32>
    %cst_24 = arith.constant dense<0.000000e+00> : vector<111xf32>
    %43 = vector.multi_reduction <add>, %42, %cst_24 [1] : vector<111x56xf32> to vector<111xf32>
    %44 = vector.shape_cast %43 : vector<111xf32> to vector<111x1xf32>
    %45 = vector.broadcast %44 : vector<111x1xf32> to vector<111x56xf32>
    %46 = arith.divf %42, %45 : vector<111x56xf32>
    %cst_25 = arith.constant dense<0xFF800000> : vector<111xf32>
    %47 = vector.multi_reduction <maximumf>, %46, %cst_25 [1] : vector<111x56xf32> to vector<111xf32>
    %48 = vector.shape_cast %47 : vector<111xf32> to vector<111x1xf32>
    %49 = vector.broadcast %48 : vector<111x1xf32> to vector<111x56xf32>
    %50 = arith.subf %46, %49 : vector<111x56xf32>
    %51 = math.exp %50 : vector<111x56xf32>
    %cst_26 = arith.constant dense<0.000000e+00> : vector<111xf32>
    %52 = vector.multi_reduction <add>, %51, %cst_26 [1] : vector<111x56xf32> to vector<111xf32>
    %53 = vector.shape_cast %52 : vector<111xf32> to vector<111x1xf32>
    %54 = vector.broadcast %53 : vector<111x1xf32> to vector<111x56xf32>
    %55 = arith.divf %51, %54 : vector<111x56xf32>
    %cst_27 = arith.constant dense<0.000000e+00> : vector<56x20xf32>
    %56 = tpu.matmul %55, %1, %cst_27 {dimension_numbers = #tpu.dot_dimension_numbers<[0], [0], [1], [1], [0, 1, 1, 1], [], []>} : vector<111x56xf32>, vector<111x20xf32>, vector<56x20xf32> -> vector<56x20xf32>
    %cst_28 = arith.constant dense<0.000000e+00> : vector<111x20xf32>
    %57 = tpu.matmul %46, %56, %cst_28 {dimension_numbers = #tpu.dot_dimension_numbers<[1], [0], [0], [1], [0, 0, 1, 1], [], []>} : vector<111x56xf32>, vector<56x20xf32>, vector<111x20xf32> -> vector<111x20xf32>
    %c0_29 = arith.constant 0 : index
    %c0_30 = arith.constant 0 : index
    %58 = vector.load %arg6[%c0_29, %c0_30] : memref<111x20xf32, #tpu.memory_space<vmem>>, vector<111x20xf32>
    tpu.vector_store %arg6[%c0_29, %c0_30], %57 {strides = array<i32>} : memref<111x20xf32, #tpu.memory_space<vmem>>, vector<111x20xf32>,
    return
  }
}

</mosaic_0001>

<bundles_post_ra>
// kernel: brain_connectomic_graph_forward.3
= control target key start
LH: loop header
LB: loop body
LE: loop exit
PB: predicated region body
PF: predicated region fallthrough
CT: control target
= control target key end

     0   :  { %vm51_vm0 = vcmask 908288   ;;  %vm91_vm1 = vcmask 907264   ;;  %vm243_vm2 = vcmask 1046528   ;;  %vm2581_vm3 = vmmov 1   ;;  %s3461_s0 = inlined_call_operand.vmem [shape: f32[111,111], index: 0, kind: input, shape index: {}]   ;;  %s3462_s1 = inlined_call_operand.vmem [shape: f32[111,20], index: 1, kind: input, shape index: {}]   ;;  %s3463_s3 = inlined_call_operand.vmem [shape: f32[20,56], index: 3, kind: input, shape index: {}]   ;;  %s3464_s2 = inlined_call_operand.vmem [shape: f32[20,56], index: 2, kind: input, shape index: {}]   ;;  %s3465_s4 = inlined_call_operand.vmem [shape: f32[20,56], index: 4, kind: input, shape index: {}]   ;;  %s3466_s5 = inlined_call_operand.vmem [shape: f32[1,56], index: 5, kind: input, shape index: {}]   ;;  %s3467_s6 = inlined_call_operand.vmem [shape: f32[111,20], index: 6, kind: output, shape index: {}]  }
   0x1   :  { %v2623_v0 = vld [vmem:[%s3461_s0 + $0x10] sm:$0xff]  ;;  %v2628_v1 = vld [vmem:[%s3461_s0] sm:$0xff]  ;;  %v2633_v2 = vld [vmem:[%s3461_s0 + $0x18] sm:$0xff] }
   0x2   :  { %v58_v3 = vsel %vm51_vm0, %v2623_v0, 0.0  ;;  %v52_v4 = vsel %vm51_vm0, %v2628_v1, 0.0  ;;  %v2642_v5 = vld [vmem:[%s3461_s0 + $0x8] sm:$0xff]  ;;  %v61_v7 = vsel %vm51_vm0, %v2633_v2, 0.0  ;;  %v2656_v10 = vld [vmem:[%s3461_s0 + $0x20] sm:$0xff]  ;;  %v2671_v14 = vld [vmem:[%s3462_s1 + $0x10] sm:$0xff] }
   0x3   :  { %59 = vadd.xlane.f32.xlu1 %v58_v3  ;;  %53 = vadd.xlane.f32.xlu0 %v52_v4  ;;  %v55_v6 = vsel %vm51_vm0, %v2642_v5, 0.0  ;;  %v2651_v9 = vld [vmem:[%s3461_s0 + $0x28] sm:$0xff]  ;;  %v2661_v12 = vld [vmem:[%s3462_s1] sm:$0xff]  ;;  %v2680_v16 = vld [vmem:[%s3462_s1 + $0x18] sm:$0xff]  ;;  %v64_v18 = vsel %vm51_vm0, %v2656_v10, 0.0 }
   0x4   :  { %v95_v8 = vadd.f32 %v55_v6, %v52_v4  ;;  %v2666_v13 = vld [vmem:[%s3462_s1 + $0x8] sm:$0xff]  ;;  %v67_v17 = vsel %vm51_vm0, %v2651_v9, 0.0  ;;  %v2688_v20 = vpack.c.bf16 %v2680_v16, %v2671_v14  ;;  %v2693_v21 = vld [vmem:[%s3461_s0 + $0x38] sm:$0xff]  ;;  %v2698_v22 = vld [vmem:[%s3461_s0 + $0x30] sm:$0xff] }
   0x5   :  { %v2675_v15 = vpack.c.bf16 %v2666_v13, %v2661_v12  ;;  %v73_v24 = vsel %vm51_vm0, %v2693_v21, 0.0  ;;  %v70_v25 = vsel %vm51_vm0, %v2698_v22, 0.0  ;;  %v2710_v27 = vld [vmem:[%s3461_s0 + $0x48] sm:$0xff]  ;;  %v2715_v28 = vld [vmem:[%s3461_s0 + $0x40] sm:$0xff]  ;;  %v2725_v33 = vld [vmem:[%s3461_s0 + $0x58] sm:$0xff] }
   0x6   :  { %v96_v11 = vadd.f32 %v95_v8, %v58_v3  ;;  %v79_v30 = vsel %vm51_vm0, %v2710_v27, 0.0  ;;  %v76_v31 = vsel %vm51_vm0, %v2715_v28, 0.0  ;;  %v2730_v34 = vld [vmem:[%s3461_s0 + $0x50] sm:$0xff]  ;;  %v2735_v35 = vld [vmem:[%s3462_s1 + $0x20] sm:$0xff]  ;;  %v2740_v36 = vld [vmem:[%s3462_s1 + $0x28] sm:$0xff]  ;;  %v85_v39 = vsel %vm51_vm0, %v2725_v33, 0.0 }
   0x7   :  { %62 = vadd.xlane.f32.xlu1 %v61_v7  ;;  %56 = vadd.xlane.f32.xlu0 %v55_v6  ;;  %v2744_v38 = vpack.c.bf16 %v2740_v36, %v2735_v35  ;;  %v82_v40 = vsel %vm51_vm0, %v2730_v34, 0.0  ;;  %v2753_v42 = vld [vmem:[%s3461_s0 + $0x68] sm:$0x7f]  ;;  %v2759_v43 = vld [vmem:[%s3461_s0 + $0x60] sm:$0xff]  ;;  %v2765_v44 = vld [vmem:[%s3462_s1 + $0x30] sm:$0xff] }
   0x8   :  { %v97_v19 = vadd.f32 %v96_v11, %v61_v7  ;;  %2302 = vmatprep.subr.bf16.mxu0 %v2675_v15  ;;  %v2770_v45 = vld [vmem:[%s3462_s1 + $0x38] sm:$0xff]  ;;  %v92_v48 = vsel %vm91_vm1, %v2753_v42, 0.0  ;;  %v88_v49 = vsel %vm51_vm0, %v2759_v43, 0.0  ;;  %v2784_v51 = vld [vmem:[%s3462_s1 + $0x40] sm:$0xff]  ;;  %v2789_v52 = vld [vmem:[%s3462_s1 + $0x48] sm:$0xff] }
   0x9   :  { %2304 = vmatpush3.bf16.msra.mxu0 %v2675_v15  ;;  %v2774_v47 = vpack.c.bf16 %v2770_v45, %v2765_v44  ;;  %v2793_v54 = vpack.c.bf16 %v2789_v52, %v2784_v51  ;;  %v2800_v56 = vld [vmem:[%s3462_s1 + $0x50] sm:$0xff]  ;;  %v2805_v57 = vld [vmem:[%s3462_s1 + $0x58] sm:$0xff]  ;;  %v2816_v59 = vld [vmem:[%s3462_s1 + $0x60] sm:$0xff] }
   0xa   :  { %v98_v23 = vadd.f32 %v97_v19, %v64_v18  ;;  %2306 = vmatprep.subr.bf16.mxu0 %v2688_v20  ;;  %v2809_v58 = vpack.c.bf16 %v2805_v57, %v2800_v56  ;;  %v2821_v60 = vld [vmem:[%s3462_s1 + $0x68] sm:$0x7f]  ;;  %vm2827_vm4 = vmpackc.low %vm243_vm2, %vm2581_vm3  ;;  %v551_v63 = vld [vmem:[%s3463_s3] sm:$0xff] }
   0xb   :  { %68 = vadd.xlane.f32.xlu1 %v67_v17  ;;  %65 = vadd.xlane.f32.xlu0 %v64_v18  ;;  %v2825_v61 = vpack.c.bf16 %v2821_v60, %v2816_v59  ;;  %v552_v3 = vld [vmem:[%s3463_s3 + $0x8] sm:$0xff] }
   0xc   :  { %v99_v26 = vadd.f32 %v98_v23, %v67_v17  ;;  %v2843_v4 = vpack.c.bf16 %v552_v3, %v551_v63 }
   0xd   :  { %2308 = vmatpush3.bf16.msra.mxu0 %v2688_v20 }
   0xe   :  { %v100_v29 = vadd.f32 %v99_v26, %v70_v25  ;;  %2310 = vmatprep.subr.bf16.mxu0 %v2744_v38 }
   0xf   :  { %74 = vadd.xlane.f32.xlu1 %v73_v24  ;;  %71 = vadd.xlane.f32.xlu0 %v70_v25 }
  0x10   :  { %v101_v32 = vadd.f32 %v100_v29, %v73_v24 }
  0x11   :  { %2312 = vmatpush3.bf16.msra.mxu0 %v2744_v38 }
  0x12   :  { %v102_v37 = vadd.f32 %v101_v32, %v76_v31  ;;  %2314 = vmatprep.subr.bf16.mxu0 %v2774_v47 }
  0x13   :  { %80 = vadd.xlane.f32.xlu1 %v79_v30  ;;  %77 = vadd.xlane.f32.xlu0 %v76_v31 }
  0x14   :  { %v103_v41 = vadd.f32 %v102_v37, %v79_v30 }
  0x15   :  { %2316 = vmatpush3.bf16.msra.mxu0 %v2774_v47 }
  0x16   :  { %v104_v46 = vadd.f32 %v103_v41, %v82_v40  ;;  %2318 = vmatprep.subr.bf16.mxu0 %v2793_v54 }
  0x17   :  { %86 = vadd.xlane.f32.xlu1 %v85_v39  ;;  %83 = vadd.xlane.f32.xlu0 %v82_v40 }
  0x18   :  { %v105_v50 = vadd.f32 %v104_v46, %v85_v39 }
  0x19   :  { %2320 = vmatpush3.bf16.msra.mxu0 %v2793_v54 }
  0x1a   :  { %v106_v53 = vadd.f32 %v105_v50, %v88_v49  ;;  %2322 = vmatprep.subr.bf16.mxu0 %v2809_v58 }
  0x1b   :  { %93 = vadd.xlane.f32.xlu1 %v92_v48  ;;  %89 = vadd.xlane.f32.xlu0 %v88_v49 }
  0x1c   :  { %v107_v55 = vadd.f32 %v106_v53, %v92_v48 }
  0x1d   :  { %2324 = vmatpush3.bf16.msra.mxu0 %v2809_v58 }
  0x1e   :  { %2327 = vmatprep.subr.msk.bf16.mxu0 %vm2827_vm4, %v2825_v61  ;;  %v108_v6 = vrot.slane %v107_v55, 4 }
  0x20   :  { %v109_v7 = vadd.f32 %v108_v6, %v107_v55 }
  0x21   :  { %2330 = vmatpush3.bf16.msk.msra.mxu0 %vm2827_vm4, %v2825_v61 }
  0x22   :  { %2362 = vmatprep.subr.bf16.mxu0 %v2843_v4  ;;  %v110_v8 = vrot.slane %v109_v7, 2 }
  0x24   :  { %v111_v11 = vadd.f32 %v110_v8, %v109_v7 }
  0x26   :  { %v112_v17 = vrot.slane %v111_v11, 1 }
  0x28   :  { %v113_v18 = vadd.f32 %v112_v17, %v111_v11 }
  0x2a   :  { %2439 = vrsqrt.f32 %v113_v18  ;;  %vm156_vm5 = vcmp.gt.f32.partialorder %v113_v18, 0.0 }
  0x34   :  { %v2440_v30 = vpop.eup %2439 }
  0x35   :  { %v2846_v41 = vsel %vm156_vm5, %v2440_v30, 0.0 }
  0x90   :  { %v60_v19 = vpop.xlane.xlu1 %59  ;;  %v54_v23 = vpop.xlane.xlu0 %53 }
  0x91   :  { %2441 = vrsqrt.f32 %v60_v19  ;;  %vm116_vm6 = vcmp.gt.f32.partialorder %v60_v19, 0.0  ;;  %vm114_vm7 = vcmp.gt.f32.partialorder %v54_v23, 0.0 }
  0x92   :  { %2443 = vrsqrt.f32 %v54_v23 }
  0x94   :  { %v63_v24 = vpop.xlane.xlu1 %62  ;;  %v57_v25 = vpop.xlane.xlu0 %56 }
  0x95   :  { %2445 = vrsqrt.f32 %v63_v24  ;;  %vm117_vm8 = vcmp.gt.f32.partialorder %v63_v24, 0.0  ;;  %vm115_vm9 = vcmp.gt.f32.partialorder %v57_v25, 0.0 }
  0x96   :  { %2447 = vrsqrt.f32 %v57_v25 }
  0x98   :  { %v69_v26 = vpop.xlane.xlu1 %68  ;;  %v66_v29 = vpop.xlane.xlu0 %65 }
  0x99   :  { %2449 = vrsqrt.f32 %v69_v26  ;;  %vm119_vm10 = vcmp.gt.f32.partialorder %v69_v26, 0.0  ;;  %vm118_vm11 = vcmp.gt.f32.partialorder %v66_v29, 0.0 }
  0x9a   :  { %2451 = vrsqrt.f32 %v66_v29 }
  0x9b   :  { %v2442_v31 = vpop.eup %2441 }
  0x9c   :  { %v2444_v32 = vpop.eup %2443  ;;  %v144_v37 = vsel %vm116_vm6, %v2442_v31, 0.0  ;;  %v75_v39 = vpop.xlane.xlu1 %74  ;;  %vm596_vm6 = vcmask 1043456  }
  0x9d   :  { %v72_v40 = vpop.xlane.xlu0 %71  ;;  %v142_v46 = vsel %vm114_vm7, %v2444_v32, 0.0  ;;  %2453 = vrsqrt.f32 %v75_v39  ;;  %v161_v50 = vmul.f32 %v144_v37, %v2623_v0  ;;  %vm121_vm12 = vcmp.gt.f32.partialorder %v75_v39, 0.0 }
  0x9e   :  { %v159_v48 = vmul.f32 %v142_v46, %v2628_v1  ;;  %2455 = vrsqrt.f32 %v72_v40  ;;  %vm120_vm13 = vcmp.gt.f32.partialorder %v72_v40, 0.0  ;;  %vm554_vm7 = vcmask 162816  }
  0x9f   :  { %v2446_v49 = vpop.eup %2445  ;;  %v2854_v18 = vmul.f32 %v161_v50, %v2846_v41 }
  0xa0   :  { %v2448_v53 = vpop.eup %2447  ;;  %v145_v55 = vsel %vm117_vm8, %v2446_v49, 0.0  ;;  %v81_v63 = vpop.xlane.xlu1 %80  ;;  %v173_v6 = vmul.f32 %v159_v48, %v2846_v41  ;;  %vm1132_vm8 = vcmask 457728  }
  0xa1   :  { %v78_v3 = vpop.xlane.xlu0 %77  ;;  %v162_v7 = vmul.f32 %v145_v55, %v2633_v2  ;;  %v143_v8 = vsel %vm115_vm9, %v2448_v53, 0.0  ;;  %2457 = vrsqrt.f32 %v81_v63  ;;  %v189_v29 = vsub.f32 0.0, %v2854_v18  ;;  %v916_v18 = vld [vmem:[%s3465_s4 + $0x10] sm:$0xf] }
  0xa2   :  { %v160_v11 = vmul.f32 %v143_v8, %v2642_v5  ;;  %v187_v17 = vsub.f32 0.0, %v173_v6  ;;  %2459 = vrsqrt.f32 %v78_v3  ;;  %vm123_vm14 = vcmp.gt.f32.partialorder %v81_v63, 0.0 }
  0xa3   :  { %v2450_v1 = vpop.eup %2449  ;;  %v2862_v24 = vmul.f32 %v162_v7, %v2846_v41  ;;  %vm122_vm15 = vcmp.gt.f32.partialorder %v78_v3, 0.0  ;;  %vm1172_vm9 = vcmask 456704  }
  0xa4   :  { %v2452_v0 = vpop.eup %2451  ;;  %v2857_v19 = vmul.f32 %v160_v11, %v2846_v41  ;;  %v147_v23 = vsel %vm119_vm10, %v2450_v1, 0.0  ;;  %2066 = vmatprep.mubr.msk.f32.mxu0 %vm51_vm0, %v187_v17  ;;  %2115 = vmatprep.mubr.msk.f32.mxu1 %vm51_vm0, %v187_v17  ;;  %v87_v2 = vpop.xlane.xlu1 %86  ;;  %vm2583_vm10 = vmmov 0  }
  0xa5   :  { %v84_v5 = vpop.xlane.xlu0 %83  ;;  %v164_v25 = vmul.f32 %v147_v23, %v2651_v9  ;;  %v146_v30 = vsel %vm118_vm11, %v2452_v0, 0.0  ;;  %2461 = vrsqrt.f32 %v87_v2  ;;  %vm125_vm1 = vcmp.gt.f32.partialorder %v87_v2, 0.0 }
  0xa6   :  { %v188_v26 = vsub.f32 0.0, %v2857_v19  ;;  %v163_v31 = vmul.f32 %v146_v30, %v2656_v10  ;;  %2463 = vrsqrt.f32 %v84_v5  ;;  %v190_v10 = vsub.f32 0.0, %v2862_v24 }
  0xa7   :  { %v2454_v32 = vpop.eup %2453  ;;  %v2876_v50 = vmul.f32 %v164_v25, %v2846_v41  ;;  %vm124_vm2 = vcmp.gt.f32.partialorder %v84_v5, 0.0 }
  0xa8   :  { %v2456_v37 = vpop.eup %2455  ;;  %v2869_v46 = vmul.f32 %v163_v31, %v2846_v41  ;;  %v149_v48 = vsel %vm121_vm12, %v2454_v32, 0.0  ;;  %2067 = vmatmul.mubr.msk.f32.vlgmr.msra.gmra.mrb[0].mxu0 %vm51_vm0, %v188_v26  ;;  %v94_v9 = vpop.xlane.xlu1 %93 }
  0xa9   :  { %v90_v49 = vpop.xlane.xlu0 %89  ;;  %v148_v53 = vsel %vm120_vm13, %v2456_v37, 0.0  ;;  %2069 = vmatprep.mubr.msk.f32.mxu0 %vm51_vm0, %v189_v29  ;;  %2364 = vmatpush3.bf16.msra.mxu0 %v2843_v4  ;;  %v166_v40 = vmul.f32 %v149_v48, %v2693_v21  ;;  %2465 = vrsqrt.f32 %v94_v9  ;;  %v192_v4 = vsub.f32 0.0, %v2876_v50 }
  0xaa   :  { %v191_v39 = vsub.f32 0.0, %v2869_v46  ;;  %v165_v55 = vmul.f32 %v148_v53, %v2698_v22  ;;  %2467 = vrsqrt.f32 %v90_v49  ;;  %vm127_vm3 = vcmp.gt.f32.partialorder %v94_v9, 0.0 }
  0xab   :  { %v2458_v6 = vpop.eup %2457  ;;  %v2896_v21 = vmul.f32 %v166_v40, %v2846_v41  ;;  %vm126_vm5 = vcmp.gt.f32.partialorder %v90_v49, 0.0 }
  0xac   :  { %v2886_v7 = vmul.f32 %v165_v55, %v2846_v41  ;;  %2070 = vmatmul.mubr.msk.f32.gmra.mrb[2].mxu0 %vm51_vm0, %v190_v10  ;;  %v2460_v8 = vpop.eup %2459  ;;  %v151_v11 = vsel %vm123_vm14, %v2458_v6, 0.0 }
  0xad   :  { %2072 = vmatprep.mubr.msk.f32.mxu0 %vm51_vm0, %v191_v39  ;;  %v168_v63 = vmul.f32 %v151_v11, %v2710_v27  ;;  %v150_v17 = vsel %vm122_vm15, %v2460_v8, 0.0  ;;  %v194_v27 = vsub.f32 0.0, %v2896_v21 }
  0xae   :  { %v193_v22 = vsub.f32 0.0, %v2886_v7  ;;  %v167_v1 = vmul.f32 %v150_v17, %v2715_v28  ;;  %v549_v17 = vld [vmem:[%s3464_s2 + $0x8] sm:$0xff] }
  0xaf   :  { %v2462_v0 = vpop.eup %2461  ;;  %v2912_v28 = vmul.f32 %v168_v63, %v2846_v41  ;;  %v548_v63 = vld [vmem:[%s3464_s2] sm:$0xff] }
  0xb0   :  { %2073 = vmatmul.mubr.msk.f32.gmra.mrb[4].mxu0 %vm51_vm0, %v192_v4  ;;  %v2464_v3 = vpop.eup %2463  ;;  %v2905_v23 = vmul.f32 %v167_v1, %v2846_v41  ;;  %v153_v25 = vsel %vm125_vm1, %v2462_v0, 0.0  ;;  %v2365_v1 = vpack.c.bf16 %v549_v17, %v548_v63 }
  0xb1   :  { %2075 = vmatprep.mubr.msk.f32.mxu0 %vm51_vm0, %v193_v22  ;;  %v170_v2 = vmul.f32 %v153_v25, %v2725_v33  ;;  %v152_v30 = vsel %vm124_vm2, %v2464_v3, 0.0  ;;  %v196_v33 = vsub.f32 0.0, %v2912_v28 }
  0xb2   :  { %v195_v31 = vsub.f32 0.0, %v2905_v23  ;;  %v169_v32 = vmul.f32 %v152_v30, %v2730_v34  ;;  %v914_v30 = vld [vmem:[%s3465_s4] sm:$0xff] }
  0xb3   :  { %v2466_v37 = vpop.eup %2465  ;;  %v2928_v34 = vmul.f32 %v170_v2, %v2846_v41  ;;  %v550_v2 = vld [vmem:[%s3464_s2 + $0x10] sm:$0xf] }
  0xb4   :  { %2076 = vmatmul.mubr.msk.f32.gmra.mrb[6].mxu0 %vm51_vm0, %v194_v27  ;;  %v2468_v5 = vpop.eup %2467  ;;  %v2921_v48 = vmul.f32 %v169_v32, %v2846_v41  ;;  %v155_v53 = vsel %vm127_vm3, %v2466_v37, 0.0  ;;  %v915_v32 = vld [vmem:[%s3465_s4 + $0x8] sm:$0xff] }
  0xb5   :  { %2078 = vmatprep.mubr.msk.f32.mxu0 %vm51_vm0, %v195_v31  ;;  %v172_v9 = vmul.f32 %v155_v53, %v2753_v42  ;;  %v154_v40 = vsel %vm126_vm5, %v2468_v5, 0.0  ;;  %v198_v8 = vsub.f32 0.0, %v2928_v34  ;;  %v2369_v53 = vpack.c.bf16 %v915_v32, %v914_v30 }
  0xb6   :  { %v197_v55 = vsub.f32 0.0, %v2921_v48  ;;  %v171_v6 = vmul.f32 %v154_v40, %v2759_v43 }
  0xb7   :  { %v2944_v42 = vmul.f32 %v172_v9, %v2846_v41 }
  0xb8   :  { %2079 = vmatmul.mubr.msk.f32.gmra.mrb[8].mxu0 %vm51_vm0, %v196_v33  ;;  %v2937_v49 = vmul.f32 %v171_v6, %v2846_v41  ;;  %v553_v41 = vld [vmem:[%s3463_s3 + $0x10] sm:$0xf] }
  0xb9   :  { %2081 = vmatprep.mubr.msk.f32.mxu0 %vm51_vm0, %v197_v55  ;;  %v200_v43 = vsub.f32 0.0, %v2944_v42  ;;  %2140 = vmatprep.subr.msk.mxu0 %vm596_vm6, %v553_v41 }
  0xba   :  { %v199_v11 = vsub.f32 0.0, %v2937_v49  ;;  %2141 = vmatpush3.msk.msra.mxu0 %vm596_vm6, %v553_v41 }
  0xbb   :  { %2366 = vmatprep.subr.bf16.mxu0 %v2365_v1 }
  0xbc   :  { %2082 = vmatmul.mubr.msk.f32.gmra.mrb[10].mxu0 %vm51_vm0, %v198_v8 }
  0xbd   :  { %2084 = vmatprep.mubr.msk.f32.mxu0 %vm51_vm0, %v199_v11 }
  0xc0   :  { %2085 = vmatmul.mubr.msk.f32.gmra.mrb[12].mxu0 %vm51_vm0, %v200_v43 }
 0x17b   :  { %v2068_v0 = vpop.f32.mrb[0].mxu0 }
 0x17c   :  { %v313_v3 = vpop.f32.mrb[1].mxu0 }
 0x17d   :  { %2142 = vmatprep.mubr.msk.f32.mxu0 %vm554_vm7, %v313_v3  ;;  %v2331_v25 = vpack.c.bf16 %v2068_v0, %v313_v3 }
 0x17e   :  { %2143 = vmatmul.mubr.msk.f32.vlgmr.msra.gmra.mrb[14].mxu0 %vm554_vm7, %v2068_v0 }
 0x17f   :  { %v2071_v37 = vpop.f32.mrb[2].mxu0  ;;  %2332 = vmatprep.subr.bf16.mxu1 %v2331_v25  ;;  %2368 = vmatpush3.bf16.msra.mxu0 %v2365_v1 }
 0x180   :  { %v323_v5 = vpop.f32.mrb[3].mxu0  ;;  %2334 = vmatpush3.bf16.msra.mxu1 %v2331_v25  ;;  %2167 = vmatprep.subr.msk.mxu0 %vm596_vm6, %v550_v2 }
 0x181   :  { %v2335_v9 = vpack.c.bf16 %v2071_v37, %v323_v5  ;;  %2145 = vmatprep.mubr.msk.f32.mxu0 %vm554_vm7, %v323_v5 }
 0x182   :  { %2146 = vmatmul.mubr.msk.f32.gmra.mrb[16].mxu0 %vm554_vm7, %v2071_v37 }
 0x183   :  { %v2074_v40 = vpop.f32.mrb[4].mxu0  ;;  %2336 = vmatprep.subr.bf16.mxu1 %v2335_v9  ;;  %2168 = vmatpush3.msk.msra.mxu0 %vm596_vm6, %v550_v2 }
 0x184   :  { %v333_v6 = vpop.f32.mrb[5].mxu0  ;;  %2338 = vmatpush3.bf16.msra.mxu1 %v2335_v9  ;;  %2370 = vmatprep.subr.bf16.mxu0 %v2369_v53 }
 0x185   :  { %v2339_v41 = vpack.c.bf16 %v2074_v40, %v333_v6  ;;  %2148 = vmatprep.mubr.msk.f32.mxu0 %vm554_vm7, %v333_v6 }
 0x186   :  { %2149 = vmatmul.mubr.msk.f32.gmra.mrb[18].mxu0 %vm554_vm7, %v2074_v40 }
 0x187   :  { %v2077_v63 = vpop.f32.mrb[6].mxu0  ;;  %2340 = vmatprep.subr.bf16.mxu1 %v2339_v41 }
 0x188   :  { %v343_v17 = vpop.f32.mrb[7].mxu0  ;;  %2342 = vmatpush3.bf16.msra.mxu1 %v2339_v41 }
 0x189   :  { %v2343_v1 = vpack.c.bf16 %v2077_v63, %v343_v17  ;;  %2151 = vmatprep.mubr.msk.f32.mxu0 %vm554_vm7, %v343_v17 }
 0x18a   :  { %2152 = vmatmul.mubr.msk.f32.gmra.mrb[20].mxu0 %vm554_vm7, %v2077_v63 }
 0x18b   :  { %v2080_v0 = vpop.f32.mrb[8].mxu0  ;;  %2344 = vmatprep.subr.bf16.mxu1 %v2343_v1 }
 0x18c   :  { %v353_v3 = vpop.f32.mrb[9].mxu0  ;;  %2346 = vmatpush3.bf16.msra.mxu1 %v2343_v1 }
 0x18d   :  { %v2347_v25 = vpack.c.bf16 %v2080_v0, %v353_v3  ;;  %2154 = vmatprep.mubr.msk.f32.mxu0 %vm554_vm7, %v353_v3 }
 0x18e   :  { %2155 = vmatmul.mubr.msk.f32.gmra.mrb[22].mxu0 %vm554_vm7, %v2080_v0 }
 0x18f   :  { %v2083_v2 = vpop.f32.mrb[10].mxu0  ;;  %2348 = vmatprep.subr.bf16.mxu1 %v2347_v25 }
 0x190   :  { %v363_v30 = vpop.f32.mrb[11].mxu0  ;;  %2350 = vmatpush3.bf16.msra.mxu1 %v2347_v25 }
 0x191   :  { %v2351_v32 = vpack.c.bf16 %v2083_v2, %v363_v30  ;;  %2157 = vmatprep.mubr.msk.f32.mxu0 %vm554_vm7, %v363_v30 }
 0x192   :  { %2158 = vmatmul.mubr.msk.f32.gmra.mrb[24].mxu0 %vm554_vm7, %v2083_v2 }
 0x193   :  { %v2086_v37 = vpop.f32.mrb[12].mxu0  ;;  %2352 = vmatprep.subr.bf16.mxu1 %v2351_v32 }
 0x194   :  { %v373_v5 = vpop.f32.mrb[13].mxu0  ;;  %2354 = vmatpush3.bf16.msra.mxu1 %v2351_v32 }
 0x195   :  { %v2355_v9 = vpack.c.bf16 %v2086_v37, %v373_v5  ;;  %2160 = vmatprep.mubr.msk.f32.mxu0 %vm554_vm7, %v373_v5 }
 0x196   :  { %2161 = vmatmul.mubr.msk.f32.gmra.mrb[26].mxu0 %vm554_vm7, %v2086_v37 }
 0x197   :  { %2357 = vmatprep.subr.msk.bf16.mxu1 %vm2827_vm4, %v2355_v9  ;;  %2169 = vmatprep.mubr.msk.f32.mxu0 %vm554_vm7, %v2661_v12 }
 0x198   :  { %2360 = vmatpush3.bf16.msk.msra.mxu1 %vm2827_vm4, %v2355_v9 }
 0x19a   :  { %2170 = vmatmul.mubr.msk.f32.vlgmr.msra.gmra.mrb[14].mxu0 %vm554_vm7, %v2666_v13 }
 0x19b   :  { %2116 = vmatmul.mubr.msk.f32.vlgmr.msra.gmra.mrb[0].mxu1 %vm51_vm0, %v188_v26  ;;  %2172 = vmatprep.mubr.msk.f32.mxu0 %vm554_vm7, %v2671_v14 }
 0x19c   :  { %2118 = vmatprep.mubr.msk.f32.mxu1 %vm51_vm0, %v189_v29  ;;  %2372 = vmatpush3.bf16.msra.mxu0 %v2369_v53 }
 0x19d   :  { %2194 = vmatprep.subr.msk.mxu0 %vm596_vm6, %v916_v18 }
 0x19e   :  { %2173 = vmatmul.mubr.msk.f32.gmra.mrb[16].mxu0 %vm554_vm7, %v2680_v16 }
 0x19f   :  { %2119 = vmatmul.mubr.msk.f32.gmra.mrb[2].mxu1 %vm51_vm0, %v190_v10  ;;  %2175 = vmatprep.mubr.msk.f32.mxu0 %vm554_vm7, %v2735_v35 }
 0x1a0   :  { %2121 = vmatprep.mubr.msk.f32.mxu1 %vm51_vm0, %v191_v39  ;;  %2195 = vmatpush3.msk.msra.mxu0 %vm596_vm6, %v916_v18 }
 0x1a2   :  { %2176 = vmatmul.mubr.msk.f32.gmra.mrb[18].mxu0 %vm554_vm7, %v2740_v36 }
 0x1a3   :  { %2122 = vmatmul.mubr.msk.f32.gmra.mrb[4].mxu1 %vm51_vm0, %v192_v4  ;;  %2178 = vmatprep.mubr.msk.f32.mxu0 %vm554_vm7, %v2765_v44 }
 0x1a4   :  { %2124 = vmatprep.mubr.msk.f32.mxu1 %vm51_vm0, %v193_v22 }
 0x1a6   :  { %2179 = vmatmul.mubr.msk.f32.gmra.mrb[20].mxu0 %vm554_vm7, %v2770_v45 }
 0x1a7   :  { %2125 = vmatmul.mubr.msk.f32.gmra.mrb[6].mxu1 %vm51_vm0, %v194_v27  ;;  %2181 = vmatprep.mubr.msk.f32.mxu0 %vm554_vm7, %v2784_v51 }
 0x1a8   :  { %2127 = vmatprep.mubr.msk.f32.mxu1 %vm51_vm0, %v195_v31 }
 0x1aa   :  { %2182 = vmatmul.mubr.msk.f32.gmra.mrb[22].mxu0 %vm554_vm7, %v2789_v52 }
 0x1ab   :  { %2128 = vmatmul.mubr.msk.f32.gmra.mrb[8].mxu1 %vm51_vm0, %v196_v33  ;;  %2184 = vmatprep.mubr.msk.f32.mxu0 %vm554_vm7, %v2800_v56 }
 0x1ac   :  { %2130 = vmatprep.mubr.msk.f32.mxu1 %vm51_vm0, %v197_v55 }
 0x1ae   :  { %2185 = vmatmul.mubr.msk.f32.gmra.mrb[24].mxu0 %vm554_vm7, %v2805_v57 }
 0x1af   :  { %2131 = vmatmul.mubr.msk.f32.gmra.mrb[10].mxu1 %vm51_vm0, %v198_v8  ;;  %2187 = vmatprep.mubr.msk.f32.mxu0 %vm554_vm7, %v2816_v59 }
 0x1b0   :  { %2133 = vmatprep.mubr.msk.f32.mxu1 %vm51_vm0, %v199_v11 }
 0x1b2   :  { %2188 = vmatmul.mubr.msk.f32.gmra.mrb[26].mxu0 %vm554_vm7, %v2821_v60 }
 0x1b3   :  { %2134 = vmatmul.mubr.msk.f32.gmra.mrb[12].mxu1 %vm51_vm0, %v200_v43 }
 0x26e   :  { %v2117_v19 = vpop.f32.mrb[0].mxu1 }
 0x26f   :  { %v521_v24 = vmul.f32 2.0, %v2117_v19  ;;  %v451_v26 = vpop.f32.mrb[1].mxu1 }
 0x270   :  { %v520_v29 = vmul.f32 2.0, %v451_v26 }
 0x271   :  { %v535_v50 = vsub.f32 %v521_v24, %v2666_v13 }
 0x272   :  { %v534_v46 = vsub.f32 %v520_v29, %v2661_v12  ;;  %v2120_v10 = vpop.f32.mrb[2].mxu1 }
 0x273   :  { %v523_v39 = vmul.f32 2.0, %v2120_v10  ;;  %v461_v7 = vpop.f32.mrb[3].mxu1 }
 0x274   :  { %v522_v4 = vmul.f32 2.0, %v461_v7  ;;  %2196 = vmatprep.mubr.msk.f32.mxu0 %vm554_vm7, %v534_v46 }
 0x275   :  { %2197 = vmatmul.mubr.msk.f32.vlgmr.msra.gmra.mrb[14].mxu0 %vm554_vm7, %v535_v50  ;;  %v537_v23 = vsub.f32 %v523_v39, %v2680_v16 }
 0x276   :  { %v536_v21 = vsub.f32 %v522_v4, %v2671_v14  ;;  %v2123_v22 = vpop.f32.mrb[4].mxu1 }
 0x277   :  { %v525_v27 = vmul.f32 2.0, %v2123_v22  ;;  %v471_v28 = vpop.f32.mrb[5].mxu1 }
 0x278   :  { %v524_v31 = vmul.f32 2.0, %v471_v28  ;;  %2199 = vmatprep.mubr.msk.f32.mxu0 %vm554_vm7, %v536_v21 }
 0x279   :  { %2200 = vmatmul.mubr.msk.f32.gmra.mrb[16].mxu0 %vm554_vm7, %v537_v23  ;;  %v539_v48 = vsub.f32 %v525_v27, %v2740_v36 }
 0x27a   :  { %v538_v12 = vsub.f32 %v524_v31, %v2735_v35  ;;  %v2126_v13 = vpop.f32.mrb[6].mxu1 }
 0x27b   :  { %v527_v33 = vmul.f32 2.0, %v2126_v13  ;;  %v481_v34 = vpop.f32.mrb[7].mxu1 }
 0x27c   :  { %v526_v55 = vmul.f32 2.0, %v481_v34  ;;  %2202 = vmatprep.mubr.msk.f32.mxu0 %vm554_vm7, %v538_v12 }
 0x27d   :  { %2203 = vmatmul.mubr.msk.f32.gmra.mrb[18].mxu0 %vm554_vm7, %v539_v48  ;;  %v541_v49 = vsub.f32 %v527_v33, %v2770_v45 }
 0x27e   :  { %v540_v14 = vsub.f32 %v526_v55, %v2765_v44  ;;  %v2129_v16 = vpop.f32.mrb[8].mxu1 }
 0x27f   :  { %v529_v8 = vmul.f32 2.0, %v2129_v16  ;;  %v491_v42 = vpop.f32.mrb[9].mxu1 }
 0x280   :  { %v528_v11 = vmul.f32 2.0, %v491_v42  ;;  %2205 = vmatprep.mubr.msk.f32.mxu0 %vm554_vm7, %v540_v14 }
 0x281   :  { %2206 = vmatmul.mubr.msk.f32.gmra.mrb[20].mxu0 %vm554_vm7, %v541_v49  ;;  %v543_v43 = vsub.f32 %v529_v8, %v2789_v52 }
 0x282   :  { %v542_v35 = vsub.f32 %v528_v11, %v2784_v51  ;;  %v2132_v36 = vpop.f32.mrb[10].mxu1 }
 0x283   :  { %v531_v53 = vmul.f32 2.0, %v2132_v36  ;;  %v501_v40 = vpop.f32.mrb[11].mxu1 }
 0x284   :  { %v530_v6 = vmul.f32 2.0, %v501_v40  ;;  %2208 = vmatprep.mubr.msk.f32.mxu0 %vm554_vm7, %v542_v35 }
 0x285   :  { %2209 = vmatmul.mubr.msk.f32.gmra.mrb[22].mxu0 %vm554_vm7, %v543_v43  ;;  %v545_v41 = vsub.f32 %v531_v53, %v2805_v57 }
 0x286   :  { %v544_v44 = vsub.f32 %v530_v6, %v2800_v56  ;;  %v2135_v45 = vpop.f32.mrb[12].mxu1  ;;  %v1866_v56 = vld [vmem:[%s3466_s5] ss:$0 sm:$0xff] }
 0x287   :  { %v533_v63 = vmul.f32 2.0, %v2135_v45  ;;  %v511_v17 = vpop.f32.mrb[13].mxu1 }
 0x288   :  { %v532_v1 = vmul.f32 2.0, %v511_v17  ;;  %2211 = vmatprep.mubr.msk.f32.mxu0 %vm554_vm7, %v544_v44 }
 0x289   :  { %2212 = vmatmul.mubr.msk.f32.gmra.mrb[24].mxu0 %vm554_vm7, %v545_v41  ;;  %v547_v52 = vsub.f32 %v533_v63, %v2821_v60 }
 0x28a   :  { %v546_v51 = vsub.f32 %v532_v1, %v2816_v59 }
 0x28c   :  { %2214 = vmatprep.mubr.msk.f32.mxu0 %vm554_vm7, %v546_v51 }
 0x28d   :  { %2215 = vmatmul.mubr.msk.f32.gmra.mrb[26].mxu0 %vm554_vm7, %v547_v52 }
 0x348   :  { %v2198_v57 = vpop.f32.mrb[14].mxu0 }
 0x349   :  { %v1119_v0 = vadd.f32 %v2198_v57, %v1866_v56  ;;  %v1028_v3 = vpop.f32.mrb[15].mxu0 }
 0x34a   :  { %v1118_v25 = vadd.f32 %v1866_v56, %v1028_v3 }
 0x34b   :  { %v1136_v2 = vsel %vm1132_vm8, %v1119_v0, -inf }
 0x34c   :  { %1137 = vmax.xlane.f32.xlu1 %v1136_v2  ;;  %v2201_v30 = vpop.f32.mrb[16].mxu0  ;;  %v1133_v59 = vsel %vm1132_vm8, %v1118_v25, -inf }
 0x34d   :  { %v1121_v60 = vadd.f32 %v2201_v30, %v1866_v56  ;;  %1134 = vmax.xlane.f32.xlu0 %v1133_v59  ;;  %v1038_v32 = vpop.f32.mrb[17].mxu0 }
 0x34e   :  { %v1120_v37 = vadd.f32 %v1866_v56, %v1038_v32 }
 0x34f   :  { %v1142_v5 = vsel %vm1132_vm8, %v1121_v60, -inf }
 0x350   :  { %1143 = vmax.xlane.f32.xlu1 %v1142_v5  ;;  %v2204_v9 = vpop.f32.mrb[18].mxu0  ;;  %v1139_v18 = vsel %vm1132_vm8, %v1120_v37, -inf }
 0x351   :  { %v1123_v19 = vadd.f32 %v2204_v9, %v1866_v56  ;;  %1140 = vmax.xlane.f32.xlu0 %v1139_v18  ;;  %v1048_v24 = vpop.f32.mrb[19].mxu0 }
 0x352   :  { %v1122_v26 = vadd.f32 %v1866_v56, %v1048_v24 }
 0x353   :  { %v1148_v29 = vsel %vm1132_vm8, %v1123_v19, -inf }
 0x354   :  { %1149 = vmax.xlane.f32.xlu1 %v1148_v29  ;;  %v2207_v46 = vpop.f32.mrb[20].mxu0  ;;  %v1145_v10 = vsel %vm1132_vm8, %v1122_v26, -inf }
 0x355   :  { %v1125_v50 = vadd.f32 %v2207_v46, %v1866_v56  ;;  %1146 = vmax.xlane.f32.xlu0 %v1145_v10  ;;  %v1058_v39 = vpop.f32.mrb[21].mxu0 }
 0x356   :  { %v1124_v7 = vadd.f32 %v1866_v56, %v1058_v39 }
 0x357   :  { %v1154_v4 = vsel %vm1132_vm8, %v1125_v50, -inf }
 0x358   :  { %1155 = vmax.xlane.f32.xlu1 %v1154_v4  ;;  %v2210_v21 = vpop.f32.mrb[22].mxu0  ;;  %v1151_v22 = vsel %vm1132_vm8, %v1124_v7, -inf }
 0x359   :  { %v3108_v23 = vadd.f32 %v2210_v21, %v1866_v56  ;;  %1152 = vmax.xlane.f32.xlu0 %v1151_v22  ;;  %v1068_v27 = vpop.f32.mrb[23].mxu0 }
 0x35a   :  { %v3110_v28 = vadd.f32 %v1866_v56, %v1068_v27 }
 0x35b   :  { %v1160_v31 = vsel %vm1132_vm8, %v3108_v23, -inf }
 0x35c   :  { %1161 = vmax.xlane.f32.xlu1 %v1160_v31  ;;  %v2213_v12 = vpop.f32.mrb[24].mxu0  ;;  %v1157_v13 = vsel %vm1132_vm8, %v3110_v28, -inf }
 0x35d   :  { %v3116_v48 = vadd.f32 %v2213_v12, %v1866_v56  ;;  %1158 = vmax.xlane.f32.xlu0 %v1157_v13  ;;  %v1078_v33 = vpop.f32.mrb[25].mxu0 }
 0x35e   :  { %v3118_v34 = vadd.f32 %v1866_v56, %v1078_v33 }
 0x35f   :  { %v1166_v55 = vsel %vm1132_vm8, %v3116_v48, -inf }
 0x360   :  { %1167 = vmax.xlane.f32.xlu1 %v1166_v55  ;;  %v2216_v14 = vpop.f32.mrb[26].mxu0  ;;  %v1163_v16 = vsel %vm1132_vm8, %v3118_v34, -inf }
 0x361   :  { %v3124_v49 = vadd.f32 %v2216_v14, %v1866_v56  ;;  %1164 = vmax.xlane.f32.xlu0 %v1163_v16  ;;  %v1088_v8 = vpop.f32.mrb[27].mxu0 }
 0x362   :  { %v3126_v42 = vadd.f32 %v1866_v56, %v1088_v8 }
 0x363   :  { %v1173_v11 = vsel %vm1172_vm9, %v3124_v49, -inf }
 0x364   :  { %1174 = vmax.xlane.f32.xlu1 %v1173_v11  ;;  %v1169_v35 = vsel %vm1132_vm8, %v3126_v42, -inf }
 0x365   :  { %1170 = vmax.xlane.f32.xlu0 %v1169_v35 }
 0x3d9   :  { %v1138_v36 = vpop.xlane.xlu1 %1137 }
 0x3da   :  { %v1177_v43 = vsub.f32 %v1119_v0, %v1138_v36  ;;  %v1135_v53 = vpop.xlane.xlu0 %1134 }
 0x3db   :  { %v1176_v40 = vsub.f32 %v1118_v25, %v1135_v53 }
 0x3dc   :  { %v1192_v6 = vmul.f32 1.442695, %v1177_v43 }
 0x3dd   :  { %v1190_v44 = vmul.f32 1.442695, %v1176_v40  ;;  %v1144_v45 = vpop.xlane.xlu1 %1143 }
 0x3de   :  { %2469 = vpow2.f32 %v1192_v6  ;;  %v1179_v41 = vsub.f32 %v1121_v60, %v1144_v45  ;;  %v1141_v63 = vpop.xlane.xlu0 %1140 }
 0x3df   :  { %2471 = vpow2.f32 %v1190_v44  ;;  %v1178_v17 = vsub.f32 %v1120_v37, %v1141_v63 }
 0x3e0   :  { %v1196_v1 = vmul.f32 1.442695, %v1179_v41 }
 0x3e1   :  { %v1194_v51 = vmul.f32 1.442695, %v1178_v17  ;;  %v1150_v52 = vpop.xlane.xlu1 %1149 }
 0x3e2   :  { %2473 = vpow2.f32 %v1196_v1  ;;  %v1181_v56 = vsub.f32 %v1123_v19, %v1150_v52  ;;  %v1147_v57 = vpop.xlane.xlu0 %1146 }
 0x3e3   :  { %2475 = vpow2.f32 %v1194_v51  ;;  %v1180_v3 = vsub.f32 %v1122_v26, %v1147_v57 }
 0x3e4   :  { %v1200_v2 = vmul.f32 1.442695, %v1181_v56 }
 0x3e5   :  { %v1198_v0 = vmul.f32 1.442695, %v1180_v3  ;;  %v1156_v30 = vpop.xlane.xlu1 %1155 }
 0x3e6   :  { %2477 = vpow2.f32 %v1200_v2  ;;  %v1183_v25 = vsub.f32 %v1125_v50, %v1156_v30  ;;  %v1153_v59 = vpop.xlane.xlu0 %1152 }
 0x3e7   :  { %2479 = vpow2.f32 %v1198_v0  ;;  %v1182_v32 = vsub.f32 %v1124_v7, %v1153_v59 }
 0x3e8   :  { %v3132_v60 = vpop.eup %2469  ;;  %v1204_v5 = vmul.f32 1.442695, %v1183_v25 }
 0x3e9   :  { %v3134_v37 = vpop.eup %2471  ;;  %v1202_v9 = vmul.f32 1.442695, %v1182_v32  ;;  %v1162_v18 = vpop.xlane.xlu1 %1161  ;;  %v1221_v19 = vsel %vm1132_vm8, %v3132_v60, 0.0 }
 0x3ea   :  { %2481 = vpow2.f32 %v1204_v5  ;;  %v1185_v24 = vsub.f32 %v3108_v23, %v1162_v18  ;;  %v1159_v26 = vpop.xlane.xlu0 %1158  ;;  %1222 = vadd.xlane.f32.xlu1 %v1221_v19  ;;  %v1218_v29 = vsel %vm1132_vm8, %v3134_v37, 0.0 }
 0x3eb   :  { %2483 = vpow2.f32 %v1202_v9  ;;  %v1184_v46 = vsub.f32 %v3110_v28, %v1159_v26  ;;  %1219 = vadd.xlane.f32.xlu0 %v1218_v29 }
 0x3ec   :  { %v3142_v10 = vpop.eup %2473  ;;  %v1208_v50 = vmul.f32 1.442695, %v1185_v24 }
 0x3ed   :  { %v3144_v39 = vpop.eup %2475  ;;  %v1206_v7 = vmul.f32 1.442695, %v1184_v46  ;;  %v1168_v4 = vpop.xlane.xlu1 %1167  ;;  %v1227_v21 = vsel %vm1132_vm8, %v3142_v10, 0.0 }
 0x3ee   :  { %2485 = vpow2.f32 %v1208_v50  ;;  %v1187_v22 = vsub.f32 %v3116_v48, %v1168_v4  ;;  %v1165_v23 = vpop.xlane.xlu0 %1164  ;;  %1228 = vadd.xlane.f32.xlu1 %v1227_v21  ;;  %v1224_v27 = vsel %vm1132_vm8, %v3144_v39, 0.0 }
 0x3ef   :  { %2487 = vpow2.f32 %v1206_v7  ;;  %v1186_v28 = vsub.f32 %v3118_v34, %v1165_v23  ;;  %1225 = vadd.xlane.f32.xlu0 %v1224_v27 }
 0x3f0   :  { %v3152_v31 = vpop.eup %2477  ;;  %v1212_v12 = vmul.f32 1.442695, %v1187_v22 }
 0x3f1   :  { %v3154_v13 = vpop.eup %2479  ;;  %v1210_v33 = vmul.f32 1.442695, %v1186_v28  ;;  %v1175_v55 = vpop.xlane.xlu1 %1174  ;;  %v1233_v14 = vsel %vm1132_vm8, %v3152_v31, 0.0 }
 0x3f2   :  { %2489 = vpow2.f32 %v1212_v12  ;;  %v1189_v48 = vsub.f32 %v3124_v49, %v1175_v55  ;;  %1234 = vadd.xlane.f32.xlu1 %v1233_v14  ;;  %v1171_v16 = vpop.xlane.xlu0 %1170  ;;  %v1230_v8 = vsel %vm1132_vm8, %v3154_v13, 0.0 }
 0x3f3   :  { %2491 = vpow2.f32 %v1210_v33  ;;  %v1188_v34 = vsub.f32 %v3126_v42, %v1171_v16  ;;  %1231 = vadd.xlane.f32.xlu0 %v1230_v8 }
 0x3f4   :  { %v3162_v11 = vpop.eup %2481  ;;  %v1216_v35 = vmul.f32 1.442695, %v1189_v48 }
 0x3f5   :  { %v3164_v36 = vpop.eup %2483  ;;  %v1214_v43 = vmul.f32 1.442695, %v1188_v34  ;;  %v1239_v53 = vsel %vm1132_vm8, %v3162_v11, 0.0 }
 0x3f6   :  { %2493 = vpow2.f32 %v1216_v35  ;;  %1240 = vadd.xlane.f32.xlu1 %v1239_v53  ;;  %v1236_v49 = vsel %vm1132_vm8, %v3164_v36, 0.0 }
 0x3f7   :  { %2495 = vpow2.f32 %v1214_v43  ;;  %1237 = vadd.xlane.f32.xlu0 %v1236_v49 }
 0x3f8   :  { %v3170_v40 = vpop.eup %2485 }
 0x3f9   :  { %v3172_v42 = vpop.eup %2487  ;;  %v1245_v6 = vsel %vm1132_vm8, %v3170_v40, 0.0 }
 0x3fa   :  { %1246 = vadd.xlane.f32.xlu1 %v1245_v6  ;;  %v1242_v44 = vsel %vm1132_vm8, %v3172_v42, 0.0 }
 0x3fb   :  { %1243 = vadd.xlane.f32.xlu0 %v1242_v44 }
 0x3fc   :  { %v3178_v45 = vpop.eup %2489 }
 0x3fd   :  { %v3180_v41 = vpop.eup %2491  ;;  %v1251_v63 = vsel %vm1132_vm8, %v3178_v45, 0.0 }
 0x3fe   :  { %1252 = vadd.xlane.f32.xlu1 %v1251_v63  ;;  %v1248_v17 = vsel %vm1132_vm8, %v3180_v41, 0.0 }
 0x3ff   :  { %1249 = vadd.xlane.f32.xlu0 %v1248_v17 }
 0x400   :  { %v3186_v1 = vpop.eup %2493 }
 0x401   :  { %v3188_v51 = vpop.eup %2495  ;;  %v1257_v52 = vsel %vm1172_vm9, %v3186_v1, 0.0 }
 0x402   :  { %1258 = vadd.xlane.f32.xlu1 %v1257_v52  ;;  %v1254_v56 = vsel %vm1132_vm8, %v3188_v51, 0.0 }
 0x403   :  { %1255 = vadd.xlane.f32.xlu0 %v1254_v56 }
 0x477   :  { %v1223_v57 = vpop.xlane.xlu1 %1222 }
 0x478   :  { %2497 = vrcp.f32 %v1223_v57  ;;  %v1220_v3 = vpop.xlane.xlu0 %1219 }
 0x479   :  { %2499 = vrcp.f32 %v1220_v3 }
 0x47b   :  { %v1229_v2 = vpop.xlane.xlu1 %1228 }
 0x47c   :  { %2501 = vrcp.f32 %v1229_v2  ;;  %v1226_v0 = vpop.xlane.xlu0 %1225 }
 0x47d   :  { %2503 = vrcp.f32 %v1226_v0 }
 0x47f   :  { %v1235_v30 = vpop.xlane.xlu1 %1234 }
 0x480   :  { %2505 = vrcp.f32 %v1235_v30  ;;  %v1232_v25 = vpop.xlane.xlu0 %1231 }
 0x481   :  { %2507 = vrcp.f32 %v1232_v25 }
 0x482   :  { %v2498_v59 = vpop.eup %2497 }
 0x483   :  { %v2500_v32 = vpop.eup %2499  ;;  %v1241_v5 = vpop.xlane.xlu1 %1240  ;;  %v3195_v9 = vmul.f32 %v2498_v59, %v3132_v60 }
 0x484   :  { %2509 = vrcp.f32 %v1241_v5  ;;  %v1238_v18 = vpop.xlane.xlu0 %1237  ;;  %v3198_v19 = vmul.f32 %v2500_v32, %v3134_v37 }
 0x485   :  { %2511 = vrcp.f32 %v1238_v18  ;;  %v1291_v24 = vsel %vm1132_vm8, %v3195_v9, -inf }
 0x486   :  { %v2502_v26 = vpop.eup %2501  ;;  %1292 = vmax.xlane.f32.xlu1 %v1291_v24  ;;  %v1288_v29 = vsel %vm1132_vm8, %v3198_v19, -inf }
 0x487   :  { %v2504_v46 = vpop.eup %2503  ;;  %v1247_v50 = vpop.xlane.xlu1 %1246  ;;  %1289 = vmax.xlane.f32.xlu0 %v1288_v29  ;;  %v3205_v60 = vmul.f32 %v2502_v26, %v3142_v10 }
 0x488   :  { %2513 = vrcp.f32 %v1247_v50  ;;  %v1244_v7 = vpop.xlane.xlu0 %1243  ;;  %v3208_v37 = vmul.f32 %v2504_v46, %v3144_v39 }
 0x489   :  { %2515 = vrcp.f32 %v1244_v7  ;;  %v1297_v4 = vsel %vm1132_vm8, %v3205_v60, -inf }
 0x48a   :  { %v2506_v21 = vpop.eup %2505  ;;  %1298 = vmax.xlane.f32.xlu1 %v1297_v4  ;;  %v1294_v22 = vsel %vm1132_vm8, %v3208_v37, -inf }
 0x48b   :  { %v2508_v23 = vpop.eup %2507  ;;  %v1253_v27 = vpop.xlane.xlu1 %1252  ;;  %1295 = vmax.xlane.f32.xlu0 %v1294_v22  ;;  %v3215_v10 = vmul.f32 %v2506_v21, %v3152_v31 }
 0x48c   :  { %2517 = vrcp.f32 %v1253_v27  ;;  %v1250_v28 = vpop.xlane.xlu0 %1249  ;;  %v3218_v39 = vmul.f32 %v2508_v23, %v3154_v13 }
 0x48d   :  { %2519 = vrcp.f32 %v1250_v28  ;;  %v1303_v12 = vsel %vm1132_vm8, %v3215_v10, -inf }
 0x48e   :  { %v2510_v33 = vpop.eup %2509  ;;  %1304 = vmax.xlane.f32.xlu1 %v1303_v12  ;;  %v1300_v55 = vsel %vm1132_vm8, %v3218_v39, -inf }
 0x48f   :  { %v2512_v14 = vpop.eup %2511  ;;  %v1259_v48 = vpop.xlane.xlu1 %1258  ;;  %1301 = vmax.xlane.f32.xlu0 %v1300_v55  ;;  %v3225_v31 = vmul.f32 %v2510_v33, %v3162_v11 }
 0x490   :  { %2521 = vrcp.f32 %v1259_v48  ;;  %v1256_v16 = vpop.xlane.xlu0 %1255  ;;  %v3228_v13 = vmul.f32 %v2512_v14, %v3164_v36 }
 0x491   :  { %2523 = vrcp.f32 %v1256_v16  ;;  %v1309_v8 = vsel %vm1132_vm8, %v3225_v31, -inf }
 0x492   :  { %v2514_v34 = vpop.eup %2513  ;;  %1310 = vmax.xlane.f32.xlu1 %v1309_v8  ;;  %v1306_v35 = vsel %vm1132_vm8, %v3228_v13, -inf }
 0x493   :  { %v2516_v43 = vpop.eup %2515  ;;  %1307 = vmax.xlane.f32.xlu0 %v1306_v35  ;;  %v3235_v53 = vmul.f32 %v2514_v34, %v3170_v40 }
 0x494   :  { %v3238_v11 = vmul.f32 %v2516_v43, %v3172_v42 }
 0x495   :  { %v1315_v36 = vsel %vm1132_vm8, %v3235_v53, -inf }
 0x496   :  { %v2518_v49 = vpop.eup %2517  ;;  %1316 = vmax.xlane.f32.xlu1 %v1315_v36  ;;  %v1312_v6 = vsel %vm1132_vm8, %v3238_v11, -inf }
 0x497   :  { %v2520_v44 = vpop.eup %2519  ;;  %1313 = vmax.xlane.f32.xlu0 %v1312_v6  ;;  %v3245_v63 = vmul.f32 %v2518_v49, %v3178_v45 }
 0x498   :  { %v3248_v17 = vmul.f32 %v2520_v44, %v3180_v41 }
 0x499   :  { %v1321_v40 = vsel %vm1132_vm8, %v3245_v63, -inf }
 0x49a   :  { %v2522_v42 = vpop.eup %2521  ;;  %1322 = vmax.xlane.f32.xlu1 %v1321_v40  ;;  %v1318_v52 = vsel %vm1132_vm8, %v3248_v17, -inf }
 0x49b   :  { %v2524_v56 = vpop.eup %2523  ;;  %1319 = vmax.xlane.f32.xlu0 %v1318_v52  ;;  %v3255_v57 = vmul.f32 %v2522_v42, %v3186_v1 }
 0x49c   :  { %v3258_v3 = vmul.f32 %v2524_v56, %v3188_v51 }
 0x49d   :  { %v1327_v45 = vsel %vm1172_vm9, %v3255_v57, -inf }
 0x49e   :  { %1328 = vmax.xlane.f32.xlu1 %v1327_v45  ;;  %v1324_v41 = vsel %vm1132_vm8, %v3258_v3, -inf }
 0x49f   :  { %1325 = vmax.xlane.f32.xlu0 %v1324_v41 }
 0x513   :  { %v1293_v2 = vpop.xlane.xlu1 %1292 }
 0x514   :  { %v1331_v0 = vsub.f32 %v3195_v9, %v1293_v2  ;;  %v1290_v30 = vpop.xlane.xlu0 %1289 }
 0x515   :  { %v1330_v25 = vsub.f32 %v3198_v19, %v1290_v30 }
 0x516   :  { %v1346_v59 = vmul.f32 1.442695, %v1331_v0 }
 0x517   :  { %v1344_v1 = vmul.f32 1.442695, %v1330_v25  ;;  %v1299_v32 = vpop.xlane.xlu1 %1298 }
 0x518   :  { %2525 = vpow2.f32 %v1346_v59  ;;  %v1333_v51 = vsub.f32 %v3205_v60, %v1299_v32  ;;  %v1296_v5 = vpop.xlane.xlu0 %1295 }
 0x519   :  { %2527 = vpow2.f32 %v1344_v1  ;;  %v1332_v18 = vsub.f32 %v3208_v37, %v1296_v5 }
 0x51a   :  { %v1350_v24 = vmul.f32 1.442695, %v1333_v51 }
 0x51b   :  { %v1348_v26 = vmul.f32 1.442695, %v1332_v18  ;;  %v1305_v29 = vpop.xlane.xlu1 %1304 }
 0x51c   :  { %2529 = vpow2.f32 %v1350_v24  ;;  %v1335_v46 = vsub.f32 %v3215_v10, %v1305_v29  ;;  %v1302_v50 = vpop.xlane.xlu0 %1301 }
 0x51d   :  { %2531 = vpow2.f32 %v1348_v26  ;;  %v1334_v7 = vsub.f32 %v3218_v39, %v1302_v50 }
 0x51e   :  { %v1354_v4 = vmul.f32 1.442695, %v1335_v46 }
 0x51f   :  { %v1352_v21 = vmul.f32 1.442695, %v1334_v7  ;;  %v1311_v22 = vpop.xlane.xlu1 %1310 }
 0x520   :  { %2533 = vpow2.f32 %v1354_v4  ;;  %v1337_v23 = vsub.f32 %v3225_v31, %v1311_v22  ;;  %v1308_v27 = vpop.xlane.xlu0 %1307 }
 0x521   :  { %2535 = vpow2.f32 %v1352_v21  ;;  %v1336_v28 = vsub.f32 %v3228_v13, %v1308_v27 }
 0x522   :  { %v3272_v12 = vpop.eup %2525  ;;  %v1358_v33 = vmul.f32 1.442695, %v1337_v23 }
 0x523   :  { %v3274_v55 = vpop.eup %2527  ;;  %v1356_v14 = vmul.f32 1.442695, %v1336_v28  ;;  %v1317_v48 = vpop.xlane.xlu1 %1316  ;;  %v1375_v16 = vsel %vm1132_vm8, %v3272_v12, 0.0 }
 0x524   :  { %2537 = vpow2.f32 %v1358_v33  ;;  %v1339_v8 = vsub.f32 %v3235_v53, %v1317_v48  ;;  %1376 = vadd.xlane.f32.xlu1 %v1375_v16  ;;  %v1314_v34 = vpop.xlane.xlu0 %1313  ;;  %v1372_v35 = vsel %vm1132_vm8, %v3274_v55, 0.0 }
 0x525   :  { %2539 = vpow2.f32 %v1356_v14  ;;  %v1338_v43 = vsub.f32 %v3238_v11, %v1314_v34  ;;  %1373 = vadd.xlane.f32.xlu0 %v1372_v35  ;;  %v2582_v35 = vmov 0.0|0.0  }
 0x526   :  { %v3282_v36 = vpop.eup %2529  ;;  %v1362_v49 = vmul.f32 1.442695, %v1339_v8  ;;  %2373 = vmatprep.subr.bf16.mxu1 %v2582_v35 }
 0x527   :  { %v3284_v6 = vpop.eup %2531  ;;  %v1360_v44 = vmul.f32 1.442695, %v1338_v43  ;;  %v1323_v40 = vpop.xlane.xlu1 %1322  ;;  %v1381_v42 = vsel %vm1132_vm8, %v3282_v36, 0.0  ;;  %v2584_v43 = vmov 0.0   ;;  %2375 = vmatpush3.bf16.msra.mxu1 %v2675_v15 }
 0x528   :  { %2541 = vpow2.f32 %v1362_v49  ;;  %v1341_v52 = vsub.f32 %v3245_v63, %v1323_v40  ;;  %1382 = vadd.xlane.f32.xlu1 %v1381_v42  ;;  %v1320_v56 = vpop.xlane.xlu0 %1319  ;;  %v1378_v45 = vsel %vm1132_vm8, %v3284_v6, 0.0  ;;  %2245 = vmatprep.mubr.msk.f32.mxu1 %vm2583_vm10, %v2584_v43 }
 0x529   :  { %2543 = vpow2.f32 %v1360_v44  ;;  %v1340_v41 = vsub.f32 %v3248_v17, %v1320_v56  ;;  %1379 = vadd.xlane.f32.xlu0 %v1378_v45  ;;  %2376 = vmatprep.subr.bf16.mxu1 %v2582_v35 }
 0x52a   :  { %v3292_v2 = vpop.eup %2533  ;;  %v1366_v0 = vmul.f32 1.442695, %v1341_v52 }
 0x52b   :  { %v3294_v30 = vpop.eup %2535  ;;  %v1364_v25 = vmul.f32 1.442695, %v1340_v41  ;;  %v1329_v59 = vpop.xlane.xlu1 %1328  ;;  %v1387_v1 = vsel %vm1132_vm8, %v3292_v2, 0.0  ;;  %2378 = vmatpush3.bf16.msra.mxu1 %v2688_v20 }
 0x52c   :  { %2545 = vpow2.f32 %v1366_v0  ;;  %v1343_v32 = vsub.f32 %v3255_v57, %v1329_v59  ;;  %1388 = vadd.xlane.f32.xlu1 %v1387_v1  ;;  %v1326_v51 = vpop.xlane.xlu0 %1325  ;;  %v1384_v5 = vsel %vm1132_vm8, %v3294_v30, 0.0  ;;  %2379 = vmatprep.subr.bf16.mxu1 %v2582_v35 }
 0x52d   :  { %2547 = vpow2.f32 %v1364_v25  ;;  %v1342_v18 = vsub.f32 %v3258_v3, %v1326_v51  ;;  %1385 = vadd.xlane.f32.xlu0 %v1384_v5 }
 0x52e   :  { %v3302_v24 = vpop.eup %2537  ;;  %v1370_v26 = vmul.f32 1.442695, %v1343_v32 }
 0x52f   :  { %v3304_v29 = vpop.eup %2539  ;;  %v1368_v46 = vmul.f32 1.442695, %v1342_v18  ;;  %v1393_v50 = vsel %vm1132_vm8, %v3302_v24, 0.0  ;;  %2381 = vmatpush3.bf16.msra.mxu1 %v2744_v38 }
 0x530   :  { %2549 = vpow2.f32 %v1370_v26  ;;  %1394 = vadd.xlane.f32.xlu1 %v1393_v50  ;;  %v1390_v7 = vsel %vm1132_vm8, %v3304_v29, 0.0  ;;  %2382 = vmatprep.subr.bf16.mxu1 %v2582_v35 }
 0x531   :  { %2551 = vpow2.f32 %v1368_v46  ;;  %1391 = vadd.xlane.f32.xlu0 %v1390_v7 }
 0x532   :  { %v3310_v4 = vpop.eup %2541 }
 0x533   :  { %v3312_v21 = vpop.eup %2543  ;;  %v1399_v22 = vsel %vm1132_vm8, %v3310_v4, 0.0  ;;  %2384 = vmatpush3.bf16.msra.mxu1 %v2774_v47 }
 0x534   :  { %1400 = vadd.xlane.f32.xlu1 %v1399_v22  ;;  %v1396_v23 = vsel %vm1132_vm8, %v3312_v21, 0.0  ;;  %2385 = vmatprep.subr.bf16.mxu1 %v2582_v35 }
 0x535   :  { %1397 = vadd.xlane.f32.xlu0 %v1396_v23 }
 0x536   :  { %v3318_v27 = vpop.eup %2545 }
 0x537   :  { %v3320_v28 = vpop.eup %2547  ;;  %v1405_v33 = vsel %vm1132_vm8, %v3318_v27, 0.0  ;;  %2387 = vmatpush3.bf16.msra.mxu1 %v2793_v54 }
 0x538   :  { %1406 = vadd.xlane.f32.xlu1 %v1405_v33  ;;  %v1402_v14 = vsel %vm1132_vm8, %v3320_v28, 0.0  ;;  %2388 = vmatprep.subr.bf16.mxu1 %v2582_v35 }
 0x539   :  { %1403 = vadd.xlane.f32.xlu0 %v1402_v14 }
 0x53a   :  { %v3326_v48 = vpop.eup %2549 }
 0x53b   :  { %v3328_v16 = vpop.eup %2551  ;;  %v1411_v8 = vsel %vm1172_vm9, %v3326_v48, 0.0  ;;  %2390 = vmatpush3.bf16.msra.mxu1 %v2809_v58 }
 0x53c   :  { %1412 = vadd.xlane.f32.xlu1 %v1411_v8  ;;  %v1408_v34 = vsel %vm1132_vm8, %v3328_v16, 0.0  ;;  %2391 = vmatprep.subr.bf16.mxu1 %v2582_v35 }
 0x53d   :  { %1409 = vadd.xlane.f32.xlu0 %v1408_v34 }
 0x53f   :  { %2394 = vmatpush3.bf16.msk.msra.mxu1 %vm2827_vm4, %v2825_v61 }
 0x5b1   :  { %v1377_v15 = vpop.xlane.xlu1 %1376 }
 0x5b2   :  { %v1374_v49 = vpop.xlane.xlu0 %1373 }
 0x5b3   :  { %2553 = vrcp.f32 %v1374_v49 }
 0x5b4   :  { %2555 = vrcp.f32 %v1377_v15 }
 0x5b5   :  { %v1383_v38 = vpop.xlane.xlu1 %1382 }
 0x5b6   :  { %v1380_v20 = vpop.xlane.xlu0 %1379 }
 0x5b7   :  { %2557 = vrcp.f32 %v1380_v20 }
 0x5b8   :  { %2559 = vrcp.f32 %v1383_v38 }
 0x5b9   :  { %v1389_v58 = vpop.xlane.xlu1 %1388 }
 0x5ba   :  { %v1386_v47 = vpop.xlane.xlu0 %1385 }
 0x5bb   :  { %2561 = vrcp.f32 %v1386_v47 }
 0x5bc   :  { %2563 = vrcp.f32 %v1389_v58 }
 0x5bd   :  { %v2554_v44 = vpop.eup %2553  ;;  %v1395_v45 = vpop.xlane.xlu1 %1394 }
 0x5be   :  { %v1415_v54 = vmul.f32 %v2554_v44, %v3274_v55  ;;  %v2556_v40 = vpop.eup %2555  ;;  %v1392_v61 = vpop.xlane.xlu0 %1391 }
 0x5bf   :  { %v1417_v42 = vmul.f32 %v2556_v40, %v3272_v12  ;;  %2565 = vrcp.f32 %v1392_v61 }
 0x5c0   :  { %1442 = vxpose.xlu0.b32.start [1/14] (short) (narrow) %v1415_v54, 56  ;;  %2567 = vrcp.f32 %v1395_v45 }
 0x5c1   :  { %v2558_v62 = vpop.eup %2557  ;;  %v1401_v12 = vpop.xlane.xlu1 %1400 }
 0x5c2   :  { %v1419_v52 = vmul.f32 %v2558_v62, %v3284_v6  ;;  %v2560_v56 = vpop.eup %2559  ;;  %v1398_v55 = vpop.xlane.xlu0 %1397 }
 0x5c3   :  { %v1421_v41 = vmul.f32 %v2560_v56, %v3282_v36  ;;  %2569 = vrcp.f32 %v1398_v55 }
 0x5c4   :  { %1443 = vxpose.xlu0.b32.cont [2/14] (short) (narrow) %v1417_v42, 56  ;;  %2571 = vrcp.f32 %v1401_v12 }
 0x5c5   :  { %v2562_v0 = vpop.eup %2561  ;;  %v1407_v36 = vpop.xlane.xlu1 %1406 }
 0x5c6   :  { %v1423_v25 = vmul.f32 %v2562_v0, %v3294_v30  ;;  %v2564_v59 = vpop.eup %2563  ;;  %v1404_v6 = vpop.xlane.xlu0 %1403 }
 0x5c7   :  { %v1425_v1 = vmul.f32 %v2564_v59, %v3292_v2  ;;  %2573 = vrcp.f32 %v1404_v6 }
 0x5c8   :  { %1444 = vxpose.xlu0.b32.cont [3/14] (short) (narrow) %v1419_v52, 56  ;;  %2575 = vrcp.f32 %v1407_v36 }
 0x5c9   :  { %v2566_v32 = vpop.eup %2565  ;;  %v1413_v2 = vpop.xlane.xlu1 %1412 }
 0x5ca   :  { %v1427_v51 = vmul.f32 %v2566_v32, %v3304_v29  ;;  %v2568_v5 = vpop.eup %2567  ;;  %v1410_v30 = vpop.xlane.xlu0 %1409 }
 0x5cb   :  { %v1429_v18 = vmul.f32 %v2568_v5, %v3302_v24  ;;  %2577 = vrcp.f32 %v1410_v30 }
 0x5cc   :  { %1445 = vxpose.xlu0.b32.cont [4/14] (short) (narrow) %v1421_v41, 56  ;;  %2579 = vrcp.f32 %v1413_v2 }
 0x5cd   :  { %v2570_v26 = vpop.eup %2569 }
 0x5ce   :  { %v1431_v46 = vmul.f32 %v2570_v26, %v3312_v21  ;;  %v2572_v50 = vpop.eup %2571 }
 0x5cf   :  { %v1433_v7 = vmul.f32 %v2572_v50, %v3310_v4 }
 0x5d0   :  { %1446 = vxpose.xlu0.b32.cont [5/14] (short) (narrow) %v1423_v25, 56 }
 0x5d1   :  { %v2574_v22 = vpop.eup %2573 }
 0x5d2   :  { %v1435_v29 = vmul.f32 %v2574_v22, %v3320_v28  ;;  %v2576_v23 = vpop.eup %2575 }
 0x5d3   :  { %v1437_v24 = vmul.f32 %v2576_v23, %v3318_v27 }
 0x5d4   :  { %1447 = vxpose.xlu0.b32.cont [6/14] (short) (narrow) %v1425_v1, 56 }
 0x5d5   :  { %v2578_v33 = vpop.eup %2577 }
 0x5d6   :  { %v1439_v14 = vmul.f32 %v2578_v33, %v3328_v16  ;;  %v2580_v21 = vpop.eup %2579 }
 0x5d7   :  { %v1441_v8 = vmul.f32 %v2580_v21, %v3326_v48 }
 0x5d8   :  { %1448 = vxpose.xlu0.b32.cont [7/14] (short) (narrow) %v1427_v51, 56 }
 0x5dc   :  { %1449 = vxpose.xlu0.b32.cont [8/14] (short) (narrow) %v1429_v18, 56 }
 0x5e0   :  { %1450 = vxpose.xlu0.b32.cont [9/14] (short) (narrow) %v1431_v46, 56 }
 0x5e4   :  { %1451 = vxpose.xlu0.b32.cont [10/14] (short) (narrow) %v1433_v7, 56 }
 0x5e8   :  { %1452 = vxpose.xlu0.b32.cont [11/14] (short) (narrow) %v1435_v29, 56 }
 0x5ec   :  { %1453 = vxpose.xlu0.b32.cont [12/14] (short) (narrow) %v1437_v24, 56 }
 0x5f0   :  { %1454 = vxpose.xlu0.b32.cont [13/14] (short) (narrow) %v1439_v14, 56 }
 0x5f4   :  { %1455 = vxpose.xlu0.b32.end [14/14] (short) (narrow) %v1441_v8, 56 }
 0x640   :  { %v1458_v34 = vpop.trf.xlu0 }
 0x641   :  { %2246 = vmatmul.mubr.msk.f32.vlgmr.msra.gmra.mrb[14].mxu1 %vm51_vm0, %v1458_v34 }
 0x642   :  { %2248 = vmatprep.mubr.msk.f32.mxu1 %vm2583_vm10, %v2584_v43 }
 0x644   :  { %v1459_v4 = vpop.trf.xlu0 }
 0x645   :  { %2249 = vmatmul.mubr.msk.f32.gmra.mrb[16].mxu1 %vm51_vm0, %v1459_v4 }
 0x646   :  { %2251 = vmatprep.mubr.msk.f32.mxu1 %vm2583_vm10, %v2584_v43 }
 0x648   :  { %v1460_v27 = vpop.trf.xlu0 }
 0x649   :  { %2252 = vmatmul.mubr.msk.f32.gmra.mrb[18].mxu1 %vm51_vm0, %v1460_v27 }
 0x64a   :  { %2254 = vmatprep.mubr.msk.f32.mxu1 %vm2583_vm10, %v2584_v43 }
 0x64c   :  { %v1461_v28 = vpop.trf.xlu0 }
 0x64d   :  { %2255 = vmatmul.mubr.msk.f32.gmra.mrb[20].mxu1 %vm51_vm0, %v1461_v28 }
 0x64e   :  { %2257 = vmatprep.mubr.msk.f32.mxu1 %vm2583_vm10, %v2584_v43 }
 0x650   :  { %v1462_v48 = vpop.trf.xlu0 }
 0x651   :  { %2258 = vmatmul.mubr.msk.f32.gmra.mrb[22].mxu1 %vm51_vm0, %v1462_v48 }
 0x652   :  { %2260 = vmatprep.mubr.msk.f32.mxu1 %vm2583_vm10, %v2584_v43 }
 0x654   :  { %v1463_v16 = vpop.trf.xlu0 }
 0x655   :  { %2261 = vmatmul.mubr.msk.f32.gmra.mrb[24].mxu1 %vm51_vm0, %v1463_v16 }
 0x656   :  { %2263 = vmatprep.mubr.msk.f32.mxu1 %vm2583_vm10, %v2584_v43 }
 0x658   :  { %v1464_v35 = vpop.trf.xlu0 }
 0x659   :  { %2264 = vmatmul.mubr.msk.f32.gmra.mrb[26].mxu1 %vm51_vm0, %v1464_v35  ;;  %vm1785_vm0 = vcmask 161792  }
 0x65a   :  { %2280 = vmatprep.mubr.msk.f32.mxu1 %vm1132_vm8, %v3198_v19 }
 0x714   :  { %v1561_v15 = vpop.f32.mrb[14].mxu1 }
 0x715   :  { %v2247_v49 = vpop.f32.mrb[15].mxu1 }
 0x718   :  { %v1566_v20 = vpop.f32.mrb[16].mxu1 }
 0x719   :  { %v2395_v38 = vpack.c.bf16 %v1566_v20, %v1561_v15  ;;  %v2250_v44 = vpop.f32.mrb[17].mxu1 }
 0x71b   :  { %2396 = vmatprep.subr.bf16.mxu1 %v2395_v38 }
 0x71c   :  { %v1571_v47 = vpop.f32.mrb[18].mxu1  ;;  %2398 = vmatpush3.bf16.msra.mxu1 %v2395_v38 }
 0x71d   :  { %v2253_v54 = vpop.f32.mrb[19].mxu1 }
 0x720   :  { %v1576_v40 = vpop.f32.mrb[20].mxu1 }
 0x721   :  { %v2399_v58 = vpack.c.bf16 %v1576_v40, %v1571_v47  ;;  %v2256_v42 = vpop.f32.mrb[21].mxu1 }
 0x723   :  { %2400 = vmatprep.subr.bf16.mxu1 %v2399_v58 }
 0x724   :  { %v1581_v43 = vpop.f32.mrb[22].mxu1  ;;  %2402 = vmatpush3.bf16.msra.mxu1 %v2399_v58 }
 0x725   :  { %v2259_v62 = vpop.f32.mrb[23].mxu1 }
 0x728   :  { %v1586_v61 = vpop.f32.mrb[24].mxu1 }
 0x729   :  { %v2403_v52 = vpack.c.bf16 %v1586_v61, %v1581_v43  ;;  %v2262_v56 = vpop.f32.mrb[25].mxu1 }
 0x72b   :  { %2404 = vmatprep.subr.bf16.mxu1 %v2403_v52 }
 0x72c   :  { %2406 = vmatpush3.bf16.msra.mxu1 %v2403_v52  ;;  %v1591_v19 = vpop.f32.mrb[26].mxu1 }
 0x72d   :  { %2278 = vmatprep.subr.mxu1 %v1591_v19  ;;  %v2265_v45 = vpop.f32.mrb[27].mxu1 }
 0x730   :  { %2279 = vmatpush3.msra.mxu1 %v1591_v19 }
 0x731   :  { %2281 = vmatmul.mubr.msk.f32.vlgmr.msra.gmra.mrb[28].mxu1 %vm1132_vm8, %v3195_v9 }
 0x732   :  { %2283 = vmatprep.mubr.msk.f32.mxu1 %vm1132_vm8, %v3208_v37 }
 0x735   :  { %2284 = vmatmul.mubr.msk.f32.gmra.mrb[30].mxu1 %vm1132_vm8, %v3205_v60 }
 0x736   :  { %2286 = vmatprep.mubr.msk.f32.mxu1 %vm1132_vm8, %v3218_v39 }
 0x739   :  { %2287 = vmatmul.mubr.msk.f32.gmra.mrb[32].mxu1 %vm1132_vm8, %v3215_v10 }
 0x73a   :  { %2289 = vmatprep.mubr.msk.f32.mxu1 %vm1132_vm8, %v3228_v13 }
 0x73d   :  { %2290 = vmatmul.mubr.msk.f32.gmra.mrb[34].mxu1 %vm1132_vm8, %v3225_v31 }
 0x73e   :  { %2292 = vmatprep.mubr.msk.f32.mxu1 %vm1132_vm8, %v3238_v11 }
 0x741   :  { %2293 = vmatmul.mubr.msk.f32.gmra.mrb[36].mxu1 %vm1132_vm8, %v3235_v53 }
 0x742   :  { %2295 = vmatprep.mubr.msk.f32.mxu1 %vm1132_vm8, %v3248_v17 }
 0x745   :  { %2296 = vmatmul.mubr.msk.f32.gmra.mrb[38].mxu1 %vm1132_vm8, %v3245_v63 }
 0x746   :  { %2298 = vmatprep.mubr.msk.f32.mxu1 %vm1132_vm8, %v3258_v3 }
 0x749   :  { %2299 = vmatmul.mubr.msk.f32.gmra.mrb[40].mxu1 %vm1132_vm8, %v3255_v57 }
 0x804   :  { %v2282_v9 = vpop.f32.mrb[28].mxu1 }
 0x805   :  { %1773 = vst.msk [vmem:[%s3467_s6 + $0x8] sm:$0xff] %vm554_vm7, %v2282_v9  ;;  %v1703_v60 = vpop.f32.mrb[29].mxu1 }
 0x806   :  { %1772 = vst.msk [vmem:[%s3467_s6] sm:$0xff] %vm554_vm7, %v1703_v60 }
 0x808   :  { %v2285_v37 = vpop.f32.mrb[30].mxu1 }
 0x809   :  { %1775 = vst.msk [vmem:[%s3467_s6 + $0x18] sm:$0xff] %vm554_vm7, %v2285_v37  ;;  %v1713_v10 = vpop.f32.mrb[31].mxu1 }
 0x80a   :  { %1774 = vst.msk [vmem:[%s3467_s6 + $0x10] sm:$0xff] %vm554_vm7, %v1713_v10 }
 0x80c   :  { %v2288_v39 = vpop.f32.mrb[32].mxu1 }
 0x80d   :  { %1777 = vst.msk [vmem:[%s3467_s6 + $0x28] sm:$0xff] %vm554_vm7, %v2288_v39  ;;  %v1723_v31 = vpop.f32.mrb[33].mxu1 }
 0x80e   :  { %1776 = vst.msk [vmem:[%s3467_s6 + $0x20] sm:$0xff] %vm554_vm7, %v1723_v31 }
 0x810   :  { %v2291_v13 = vpop.f32.mrb[34].mxu1 }
 0x811   :  { %1779 = vst.msk [vmem:[%s3467_s6 + $0x38] sm:$0xff] %vm554_vm7, %v2291_v13  ;;  %v1733_v53 = vpop.f32.mrb[35].mxu1 }
 0x812   :  { %1778 = vst.msk [vmem:[%s3467_s6 + $0x30] sm:$0xff] %vm554_vm7, %v1733_v53 }
 0x814   :  { %v2294_v11 = vpop.f32.mrb[36].mxu1 }
 0x815   :  { %1781 = vst.msk [vmem:[%s3467_s6 + $0x48] sm:$0xff] %vm554_vm7, %v2294_v11  ;;  %v1743_v63 = vpop.f32.mrb[37].mxu1 }
 0x816   :  { %1780 = vst.msk [vmem:[%s3467_s6 + $0x40] sm:$0xff] %vm554_vm7, %v1743_v63 }
 0x818   :  { %v2297_v17 = vpop.f32.mrb[38].mxu1 }
 0x819   :  { %1783 = vst.msk [vmem:[%s3467_s6 + $0x58] sm:$0xff] %vm554_vm7, %v2297_v17  ;;  %v1753_v57 = vpop.f32.mrb[39].mxu1 }
 0x81a   :  { %1782 = vst.msk [vmem:[%s3467_s6 + $0x50] sm:$0xff] %vm554_vm7, %v1753_v57 }
 0x81c   :  { %v2300_v3 = vpop.f32.mrb[40].mxu1 }
 0x81d   :  { %1786 = vst.msk [vmem:[%s3467_s6 + $0x68] sm:$0x7f] %vm1785_vm0, %v2300_v3  ;;  %v1763_v41 = vpop.f32.mrb[41].mxu1 }
 0x81e   :  { %1784 = vst.msk [vmem:[%s3467_s6 + $0x60] sm:$0xff] %vm554_vm7, %v1763_v41 }

// kernel: brain_connectomic_graph_forward.2
= control target key start
LH: loop header
LB: loop body
LE: loop exit
PB: predicated region body
PF: predicated region fallthrough
CT: control target
= control target key end

     0   :  { %v3615_v0 = vmov 0   ;;  %vm303_vm0 = vcmask 908288   ;;  %vm937_vm1 = vcmask 1046528   ;;  %vm3616_vm2 = vmmov 1   ;;  %s5213_s3 = inlined_call_operand.vmem [shape: f32[111,1], index: 3, kind: input, shape index: {}]   ;;  %s5214_s5 = inlined_call_operand.vmem [shape: f32[111,1], index: 5, kind: input, shape index: {}]   ;;  %s5215_s7 = inlined_call_operand.vmem [shape: f32[111,128], index: 7, kind: input, shape index: {}]   ;;  %s5216_s2 = inlined_call_operand.vmem [shape: f32[111,111], index: 2, kind: input, shape index: {}]   ;;  %s5217_s0 = inlined_call_operand.vmem [shape: f32[111,111], index: 0, kind: input, shape index: {}]   ;;  %s5218_s4 = inlined_call_operand.vmem [shape: f32[1,111], index: 4, kind: input, shape index: {}]   ;;  %s5219_s6 = inlined_call_operand.vmem [shape: f32[1,111], index: 6, kind: input, shape index: {}]   ;;  %s5220_s9 = inlined_call_operand.vmem [shape: f32[64,40], index: 9, kind: input, shape index: {}]   ;;  %s5221_s8 = inlined_call_operand.vmem [shape: f32[1,128], index: 8, kind: input, shape index: {}]   ;;  %s5222_s11 = inlined_call_operand.vmem [shape: f32[20,20], index: 11, kind: input, shape index: {}]   ;;  %s5223_s10 = inlined_call_operand.vmem [shape: f32[1,40], index: 10, kind: input, shape index: {}]   ;;  %s5224_s1 = inlined_call_operand.vmem [shape: f32[111,111], index: 1, kind: input, shape index: {}]   ;;  %s5225_s12 = inlined_call_operand.vmem [shape: f32[1,20], index: 12, kind: input, shape index: {}]   ;;  %s5226_s13 = inlined_call_operand.vmem [shape: f32[2,20], index: 13, kind: input, shape index: {}]   ;;  %s5227_s15 = inlined_call_operand.vmem [shape: f32[111,20], index: 15, kind: output, shape index: {0}]   ;;  %s5228_s14 = inlined_call_operand.<no memory space> [shape: f32[1,1], index: 14, kind: input, shape index: {}]   ;;  %s5229_s16 = inlined_call_operand.vmem [shape: f32[111,1], index: 16, kind: output, shape index: {1}]  }
   0x1   :  { %5275 = sst [smem:[#allocation33_spill]] %s5213_s3  ;;  %3482 = vset.pattern.permute.xlu1 %v3615_v0  ;;  %3481 = vset.pattern.permute.xlu0 %v3615_v0  ;;  %v112_v3 = vld [vmem:[%s5214_s5 + $0x8] sm:$0xff]  ;;  %v111_v4 = vld [vmem:[%s5214_s5] sm:$0xff]  ;;  %v113_v5 = vld [vmem:[%s5214_s5 + $0x10] sm:$0xff]  ;;  %v5277_v39 = vmov 0 }
   0x2   :  { %s5276_s23 = sld [smem:[#allocation33_spill]]  ;;  %v881_v7 = vld [vmem:[%s5215_s7] sm:$0xff]  ;;  %v882_v8 = vld [vmem:[%s5215_s7 + $0x8] sm:$0xff]  ;;  %v883_v10 = vld [vmem:[%s5215_s7 + $0x10] sm:$0xff] }
   0x3   :  { %v3292_v9 = vpack.c.bf16 %v882_v8, %v881_v7  ;;  %v884_v11 = vld [vmem:[%s5215_s7 + $0x18] sm:$0xff]  ;;  %v885_v13 = vld [vmem:[%s5215_s7 + $0x20] sm:$0xff]  ;;  %v886_v14 = vld [vmem:[%s5215_s7 + $0x28] sm:$0xff] }
   0x4   :  { %v3296_v12 = vpack.c.bf16 %v884_v11, %v883_v10  ;;  %v114_v15 = vld [vmem:[%s5214_s5 + $0x18] sm:$0xff]  ;;  %v3300_v17 = vpack.c.bf16 %v886_v14, %v885_v13  ;;  %v887_v18 = vld [vmem:[%s5215_s7 + $0x30] sm:$0xff]  ;;  %v115_v20 = vld [vmem:[%s5214_s5 + $0x20] sm:$0xff] }
   0x5   :  { %3293 = vmatprep.subr.bf16.mxu0 %v3292_v9  ;;  %v888_v19 = vld [vmem:[%s5215_s7 + $0x38] sm:$0xff]  ;;  %v82_v22 = vld [vmem:[%s5216_s2] sm:$0xff]  ;;  %v890_v25 = vld [vmem:[%s5215_s7 + $0x48] sm:$0xff] }
   0x6   :  { %3295 = vmatpush3.bf16.msra.mxu0 %v3292_v9  ;;  %3011 = vmatprep.mubr.msk.f32.mxu0 %vm303_vm0, %v82_v22  ;;  %v3304_v23 = vpack.c.bf16 %v888_v19, %v887_v18  ;;  %v889_v24 = vld [vmem:[%s5215_s7 + $0x40] sm:$0xff]  ;;  %v116_v26 = vld [vmem:[%s5214_s5 + $0x28] sm:$0xff]  ;;  %v891_v29 = vld [vmem:[%s5215_s7 + $0x50] sm:$0xff] }
   0x7   :  { %3297 = vmatprep.subr.bf16.mxu0 %v3296_v12  ;;  %v3308_v28 = vpack.c.bf16 %v890_v25, %v889_v24  ;;  %v892_v30 = vld [vmem:[%s5215_s7 + $0x58] sm:$0xff]  ;;  %v117_v31 = vld [vmem:[%s5214_s5 + $0x30] sm:$0xff]  ;;  %v893_v34 = vld [vmem:[%s5215_s7 + $0x60] sm:$0xff] }
   0x8   :  { %v97_v1 = vld [vmem:[%s5276_s23 + $0x8] sm:$0xff]  ;;  %v96_v2 = vld [vmem:[%s5276_s23] sm:$0xff]  ;;  %v98_v6 = vld [vmem:[%s5276_s23 + $0x10] sm:$0xff]  ;;  %v3312_v33 = vpack.c.bf16 %v892_v30, %v891_v29 }
   0x9   :  { %192 = vperm.xlu1 %3482, %v97_v1   ;;  %187 = vperm.xlu0 %3481, %v96_v2   ;;  %v99_v16 = vld [vmem:[%s5276_s23 + $0x18] sm:$0xff]  ;;  %v100_v21 = vld [vmem:[%s5276_s23 + $0x20] sm:$0xff]  ;;  %v101_v27 = vld [vmem:[%s5276_s23 + $0x28] sm:$0xff]  ;;  %v126_v1 = vlaneseq }
   0xa   :  { %3299 = vmatpush3.bf16.msra.mxu0 %v3296_v12  ;;  %v102_v32 = vld [vmem:[%s5276_s23 + $0x30] sm:$0xff]  ;;  %v894_v35 = vld [vmem:[%s5215_s7 + $0x68] sm:$0x7f]  ;;  %v118_v36 = vld [vmem:[%s5214_s5 + $0x38] sm:$0xff]  ;;  %v5231_v12 = vmov 0.0  }
   0xb   :  { %3301 = vmatprep.subr.bf16.mxu0 %v3300_v17  ;;  %v103_v37 = vld [vmem:[%s5276_s23 + $0x38] sm:$0xff]  ;;  %v3316_v38 = vpack.c.bf16 %v894_v35, %v893_v34  ;;  %vm3799_vm3 = vmpackc.low %vm937_vm1, %vm3616_vm2  ;;  %v119_v40 = vld [vmem:[%s5214_s5 + $0x40] sm:$0xff]  ;;  %v3895_v2 = vshrl.u32 %v126_v1, 7 }
   0xc   :  { %v5278_v39 = vsel %vm3799_vm3, 4294967295, %v5277_v39  ;;  %v104_v41 = vld [vmem:[%s5276_s23 + $0x40] sm:$0xff]  ;;  %v120_v42 = vld [vmem:[%s5214_s5 + $0x48] sm:$0xff]  ;;  %v84_v45 = vld [vmem:[%s5216_s2 + $0x10] sm:$0xff] }
   0xd   :  { %446 = vperm.xlu1 %3482, %v112_v3   ;;  %441 = vperm.xlu0 %3481, %v111_v4   ;;  %5279 = vst [vmem:[#allocation3_spill] sm:$0xff] %v5278_v39  ;;  %v105_v43 = vld [vmem:[%s5276_s23 + $0x48] sm:$0xff]  ;;  %v121_v46 = vld [vmem:[%s5214_s5 + $0x50] sm:$0xff]  ;;  %v85_v48 = vld [vmem:[%s5216_s2 + $0x18] sm:$0xff]  ;;  %v3897_v3 = vand.u32 127, %v126_v1  ;;  %v128_v4 = vadd.s32 8, %v3895_v2 }
   0xe   :  { %3303 = vmatpush3.bf16.msra.mxu0 %v3300_v17  ;;  %v83_v44 = vld [vmem:[%s5216_s2 + $0x8] sm:$0xff]  ;;  %v106_v47 = vld [vmem:[%s5276_s23 + $0x50] sm:$0xff]  ;;  %v86_v49 = vld [vmem:[%s5216_s2 + $0x20] sm:$0xff] }
   0xf   :  { %3305 = vmatprep.subr.bf16.mxu0 %v3304_v23  ;;  %v122_v50 = vld [vmem:[%s5214_s5 + $0x58] sm:$0xff]  ;;  %v87_v52 = vld [vmem:[%s5216_s2 + $0x28] sm:$0xff]  ;;  %v88_v53 = vld [vmem:[%s5216_s2 + $0x30] sm:$0xff]  ;;  %vm143_vm4 = vcmp.eq.s32.totalorder %v3895_v2, %v3897_v3  ;;  %vm144_vm5 = vcmp.eq.s32.totalorder %v128_v4, %v3897_v3 }
  0x10   :  { %v107_v51 = vld [vmem:[%s5276_s23 + $0x58] sm:$0xff]  ;;  %v123_v54 = vld [vmem:[%s5214_s5 + $0x60] sm:$0xff]  ;;  %v124_v58 = vld [vmem:[%s5214_s5 + $0x68] sm:$0x7f]  ;;  %v3921_v13 = vsel %vm143_vm4, 1.0, %v5231_v12  ;;  %v3924_v14 = vsel %vm144_vm5, 1.0, %v5231_v12 }
  0x11   :  { %451 = vperm.xlu1 %3482, %v113_v5   ;;  %197 = vperm.xlu0 %3481, %v98_v6   ;;  %v108_v55 = vld [vmem:[%s5276_s23 + $0x60] sm:$0xff]  ;;  %v89_v56 = vld [vmem:[%s5216_s2 + $0x38] sm:$0xff]  ;;  %v109_v59 = vld [vmem:[%s5276_s23 + $0x68] sm:$0x7f]  ;;  %5280 = vst [vmem:[#allocation4_spill] sm:$0xff] %v3921_v13  ;;  %vm343_vm4 = vcmask 907264  }
  0x12   :  { %3307 = vmatpush3.bf16.msra.mxu0 %v3304_v23  ;;  %v90_v57 = vld [vmem:[%s5216_s2 + $0x40] sm:$0xff]  ;;  %v91_v60 = vld [vmem:[%s5216_s2 + $0x48] sm:$0xff]  ;;  %v92_v61 = vld [vmem:[%s5216_s2 + $0x50] sm:$0xff]  ;;  %5281 = vst [vmem:[#allocation5_spill] sm:$0xff] %v3924_v14 }
  0x13   :  { %3309 = vmatprep.subr.bf16.mxu0 %v3308_v28  ;;  %v93_v62 = vld [vmem:[%s5216_s2 + $0x58] sm:$0xff]  ;;  %v94_v63 = vld [vmem:[%s5216_s2 + $0x60] sm:$0xff]  ;;  %v95_v0 = vld [vmem:[%s5216_s2 + $0x68] sm:$0x7f] }
  0x14   :  { %v54_v5 = vld [vmem:[%s5217_s0] sm:$0xff]  ;;  %v55_v6 = vld [vmem:[%s5217_s0 + $0x8] sm:$0xff]  ;;  %v56_v25 = vld [vmem:[%s5217_s0 + $0x10] sm:$0xff] }
  0x15   :  { %456 = vperm.xlu1 %3482, %v114_v15   ;;  %202 = vperm.xlu0 %3481, %v99_v16   ;;  %v3916_v9 = vld [vmem:[%s5218_s4] ss:$0 sm:$0xff]  ;;  %v129_v15 = vadd.s32 16, %v3895_v2 }
  0x16   :  { %3311 = vmatpush3.bf16.msra.mxu0 %v3308_v28 }
  0x17   :  { %3313 = vmatprep.subr.bf16.mxu0 %v3312_v33  ;;  %vm145_vm6 = vcmp.eq.s32.totalorder %v129_v15, %v3897_v3 }
  0x19   :  { %461 = vperm.xlu1 %3482, %v115_v20   ;;  %207 = vperm.xlu0 %3481, %v100_v21   ;;  %v3936_v20 = vld [vmem:[%s5219_s6] ss:$0 sm:$0xff] }
  0x1a   :  { %3315 = vmatpush3.bf16.msra.mxu0 %v3312_v33 }
  0x1b   :  { %3318 = vmatprep.subr.msk.bf16.mxu0 %vm3799_vm3, %v3316_v38 }
  0x1d   :  { %466 = vperm.xlu1 %3482, %v116_v26   ;;  %212 = vperm.xlu0 %3481, %v101_v27   ;;  %v130_v26 = vadd.s32 24, %v3895_v2 }
  0x1e   :  { %3321 = vmatpush3.bf16.msk.msra.mxu0 %vm3799_vm3, %v3316_v38  ;;  %v3970_v38 = vsel %vm145_vm6, 1.0, %v5231_v12 }
  0x1f   :  { %5282 = vst [vmem:[#allocation6_spill] sm:$0xff] %v3970_v38  ;;  %vm146_vm7 = vcmp.eq.s32.totalorder %v130_v26, %v3897_v3 }
  0x21   :  { %471 = vperm.xlu1 %3482, %v117_v31   ;;  %217 = vperm.xlu0 %3481, %v102_v32  }
  0x22   :  { %3012 = vmatmul.mubr.msk.f32.vlgmr.msra.gmra.mrb[0].mxu0 %vm303_vm0, %v83_v44 }
  0x23   :  { %3014 = vmatprep.mubr.msk.f32.mxu0 %vm303_vm0, %v84_v45 }
  0x25   :  { %476 = vperm.xlu1 %3482, %v118_v36   ;;  %222 = vperm.xlu0 %3481, %v103_v37  }
  0x26   :  { %3015 = vmatmul.mubr.msk.f32.gmra.mrb[2].mxu0 %vm303_vm0, %v85_v48 }
  0x27   :  { %3017 = vmatprep.mubr.msk.f32.mxu0 %vm303_vm0, %v86_v49 }
  0x29   :  { %481 = vperm.xlu1 %3482, %v119_v40   ;;  %227 = vperm.xlu0 %3481, %v104_v41   ;;  %v57_v40 = vld [vmem:[%s5217_s0 + $0x18] sm:$0xff]  ;;  %v131_v41 = vadd.s32 32, %v3895_v2 }
  0x2a   :  { %3018 = vmatmul.mubr.msk.f32.gmra.mrb[4].mxu0 %vm303_vm0, %v87_v52 }
  0x2b   :  { %3020 = vmatprep.mubr.msk.f32.mxu0 %vm303_vm0, %v88_v53  ;;  %v3996_v53 = vsel %vm146_vm7, 1.0, %v5231_v12  ;;  %vm147_vm8 = vcmp.eq.s32.totalorder %v131_v41, %v3897_v3 }
  0x2c   :  { %5283 = vst [vmem:[#allocation7_spill] sm:$0xff] %v3996_v53 }
  0x2d   :  { %486 = vperm.xlu1 %3482, %v120_v42   ;;  %232 = vperm.xlu0 %3481, %v105_v43  }
  0x2e   :  { %3021 = vmatmul.mubr.msk.f32.gmra.mrb[6].mxu0 %vm303_vm0, %v89_v56 }
  0x2f   :  { %3023 = vmatprep.mubr.msk.f32.mxu0 %vm303_vm0, %v90_v57 }
  0x31   :  { %491 = vperm.xlu1 %3482, %v121_v46   ;;  %237 = vperm.xlu0 %3481, %v106_v47  }
  0x32   :  { %3024 = vmatmul.mubr.msk.f32.gmra.mrb[8].mxu0 %vm303_vm0, %v91_v60 }
  0x33   :  { %3026 = vmatprep.mubr.msk.f32.mxu0 %vm303_vm0, %v92_v61 }
  0x35   :  { %496 = vperm.xlu1 %3482, %v122_v50   ;;  %242 = vperm.xlu0 %3481, %v107_v51  }
  0x36   :  { %3027 = vmatmul.mubr.msk.f32.gmra.mrb[10].mxu0 %vm303_vm0, %v93_v62 }
  0x37   :  { %3029 = vmatprep.mubr.msk.f32.mxu0 %vm303_vm0, %v94_v63 }
  0x39   :  { %501 = vperm.xlu1 %3482, %v123_v54   ;;  %247 = vperm.xlu0 %3481, %v108_v55   ;;  %v58_v54 = vld [vmem:[%s5217_s0 + $0x20] sm:$0xff]  ;;  %v132_v55 = vadd.s32 40, %v3895_v2 }
  0x3a   :  { %3030 = vmatmul.mubr.msk.f32.gmra.mrb[12].mxu0 %vm303_vm0, %v95_v0 }
  0x3b   :  { %vm148_vm9 = vcmp.eq.s32.totalorder %v132_v55, %v3897_v3 }
  0x3d   :  { %506 = vperm.xlu1 %3482, %v124_v58   ;;  %252 = vperm.xlu0 %3481, %v109_v59  }
  0x88   :  { %v3909_v7 = vpop.permute.xlu1 %192  ;;  %v3911_v8 = vpop.permute.xlu0 %187 }
  0x89   :  { %v255_v10 = vmul.f32 %v3911_v8, %v54_v5  ;;  %v256_v11 = vmul.f32 %v3909_v7, %v55_v6 }
  0x8b   :  { %v275_v16 = vmul.f32 %v3916_v9, %v255_v10  ;;  %v276_v17 = vmul.f32 %v3916_v9, %v256_v11  ;;  %v59_v10 = vld [vmem:[%s5217_s0 + $0x28] sm:$0xff]  ;;  %v133_v11 = vadd.s32 48, %v3895_v2 }
  0x8c   :  { %v3929_v18 = vpop.permute.xlu1 %446  ;;  %v3931_v19 = vpop.permute.xlu0 %441 }
  0x8d   :  { %v3939_v21 = vadd.f32 %v3921_v13, %v275_v16  ;;  %v509_v22 = vmul.f32 %v3931_v19, %v54_v5  ;;  %v3943_v23 = vadd.f32 %v3924_v14, %v276_v17  ;;  %v510_v24 = vmul.f32 %v3929_v18, %v55_v6 }
  0x8e   :  { %v4024_v6 = vsel %vm147_vm8, 1.0, %v5231_v12  ;;  %vm149_vm10 = vcmp.eq.s32.totalorder %v133_v11, %v3897_v3 }
  0x8f   :  { %v304_v27 = vsel %vm303_vm0, %v3939_v21, 0.0  ;;  %v529_v28 = vmul.f32 %v3936_v20, %v509_v22  ;;  %v307_v29 = vsel %vm303_vm0, %v3943_v23, 0.0  ;;  %v530_v30 = vmul.f32 %v3936_v20, %v510_v24  ;;  %5284 = vst [vmem:[#allocation8_spill] sm:$0xff] %v4024_v6 }
  0x90   :  { %v3957_v31 = vpop.permute.xlu1 %451  ;;  %v3959_v32 = vpop.permute.xlu0 %197  ;;  %305 = vadd.xlane.f32.xlu0 %v304_v27  ;;  %v347_v33 = vadd.f32 %v307_v29, %v304_v27 }
  0x91   :  { %v3962_v34 = vadd.f32 %v3921_v13, %v529_v28  ;;  %v257_v35 = vmul.f32 %v3959_v32, %v56_v25  ;;  %v3966_v36 = vadd.f32 %v3924_v14, %v530_v30  ;;  %v511_v37 = vmul.f32 %v3957_v31, %v56_v25 }
  0x93   :  { %v557_v42 = vsel %vm303_vm0, %v3962_v34, 0.0  ;;  %v277_v43 = vmul.f32 %v3916_v9, %v257_v35  ;;  %v560_v44 = vsel %vm303_vm0, %v3966_v36, 0.0  ;;  %v531_v45 = vmul.f32 %v3936_v20, %v511_v37  ;;  %v60_v37 = vld [vmem:[%s5217_s0 + $0x30] sm:$0xff] }
  0x94   :  { %v3983_v46 = vpop.permute.xlu1 %456  ;;  %v3985_v47 = vpop.permute.xlu0 %202  ;;  %558 = vadd.xlane.f32.xlu1 %v557_v42  ;;  %308 = vadd.xlane.f32.xlu0 %v307_v29  ;;  %v599_v48 = vadd.f32 %v560_v44, %v557_v42  ;;  %v4052_v35 = vsel %vm148_vm9, 1.0, %v5231_v12 }
  0x95   :  { %v3988_v49 = vadd.f32 %v3970_v38, %v277_v43  ;;  %v258_v50 = vmul.f32 %v3985_v47, %v57_v40  ;;  %v3992_v51 = vadd.f32 %v3970_v38, %v531_v45  ;;  %v512_v52 = vmul.f32 %v3983_v46, %v57_v40  ;;  %5285 = vst [vmem:[#allocation9_spill] sm:$0xff] %v4052_v35 }
  0x96   :  { %v134_v40 = vadd.s32 56, %v3895_v2 }
  0x97   :  { %v310_v56 = vsel %vm303_vm0, %v3988_v49, 0.0  ;;  %v278_v57 = vmul.f32 %v3916_v9, %v258_v50  ;;  %v563_v58 = vsel %vm303_vm0, %v3992_v51, 0.0  ;;  %v532_v59 = vmul.f32 %v3936_v20, %v512_v52 }
  0x98   :  { %v4009_v60 = vpop.permute.xlu1 %461  ;;  %v4011_v61 = vpop.permute.xlu0 %207  ;;  %311 = vadd.xlane.f32.xlu1 %v310_v56  ;;  %v348_v62 = vadd.f32 %v347_v33, %v310_v56  ;;  %561 = vadd.xlane.f32.xlu0 %v560_v44  ;;  %v600_v63 = vadd.f32 %v599_v48, %v563_v58  ;;  %vm150_vm11 = vcmp.eq.s32.totalorder %v134_v40, %v3897_v3 }
  0x99   :  { %v4014_v0 = vadd.f32 %v3996_v53, %v278_v57  ;;  %v259_v1 = vmul.f32 %v4011_v61, %v58_v54  ;;  %v4018_v4 = vadd.f32 %v3996_v53, %v532_v59  ;;  %v513_v5 = vmul.f32 %v4009_v60, %v58_v54  ;;  %v61_v59 = vld [vmem:[%s5217_s0 + $0x38] sm:$0xff] }
  0x9b   :  { %v313_v15 = vsel %vm303_vm0, %v4014_v0, 0.0  ;;  %v279_v16 = vmul.f32 %v3916_v9, %v259_v1  ;;  %v566_v17 = vsel %vm303_vm0, %v4018_v4, 0.0  ;;  %v533_v22 = vmul.f32 %v3936_v20, %v513_v5 }
  0x9c   :  { %v4037_v24 = vpop.permute.xlu1 %466  ;;  %v4039_v25 = vpop.permute.xlu0 %212  ;;  %314 = vadd.xlane.f32.xlu1 %v313_v15  ;;  %v349_v26 = vadd.f32 %v348_v62, %v313_v15  ;;  %564 = vadd.xlane.f32.xlu0 %v563_v58  ;;  %v601_v27 = vadd.f32 %v600_v63, %v566_v17  ;;  %v4080_v58 = vsel %vm149_vm10, 1.0, %v5231_v12  ;;  %v135_v62 = vadd.s32 64, %v3895_v2 }
  0x9d   :  { %v4042_v28 = vadd.f32 %v4024_v6, %v279_v16  ;;  %v260_v29 = vmul.f32 %v4039_v25, %v59_v10  ;;  %v4046_v30 = vadd.f32 %v4024_v6, %v533_v22  ;;  %v514_v33 = vmul.f32 %v4037_v24, %v59_v10  ;;  %5286 = vst [vmem:[#allocation10_spill] sm:$0xff] %v4080_v58 }
  0x9e   :  { %vm151_vm12 = vcmp.eq.s32.totalorder %v135_v62, %v3897_v3  ;;  %v5292_v6 = vmov 0.0  }
  0x9f   :  { %v316_v41 = vsel %vm303_vm0, %v4042_v28, 0.0  ;;  %v280_v42 = vmul.f32 %v3916_v9, %v260_v29  ;;  %v569_v43 = vsel %vm303_vm0, %v4046_v30, 0.0  ;;  %v534_v44 = vmul.f32 %v3936_v20, %v514_v33 }
  0xa0   :  { %v4065_v45 = vpop.permute.xlu1 %471  ;;  %v4067_v48 = vpop.permute.xlu0 %217  ;;  %317 = vadd.xlane.f32.xlu1 %v316_v41  ;;  %v350_v50 = vadd.f32 %v349_v26, %v316_v41  ;;  %567 = vadd.xlane.f32.xlu0 %v566_v17  ;;  %v602_v52 = vadd.f32 %v601_v27, %v569_v43  ;;  %v4108_v33 = vsel %vm150_vm11, 1.0, %v5231_v12  ;;  %v136_v41 = vadd.s32 72, %v3895_v2 }
  0xa1   :  { %v4070_v54 = vadd.f32 %v4052_v35, %v280_v42  ;;  %v261_v55 = vmul.f32 %v4067_v48, %v60_v37  ;;  %v4074_v56 = vadd.f32 %v4052_v35, %v534_v44  ;;  %v515_v57 = vmul.f32 %v4065_v45, %v60_v37  ;;  %5287 = vst [vmem:[#allocation11_spill] sm:$0xff] %v4108_v33  ;;  %v62_v37 = vld [vmem:[%s5217_s0 + $0x40] sm:$0xff] }
  0xa2   :  { %vm152_vm13 = vcmp.eq.s32.totalorder %v136_v41, %v3897_v3 }
  0xa3   :  { %v319_v63 = vsel %vm303_vm0, %v4070_v54, 0.0  ;;  %v281_v1 = vmul.f32 %v3916_v9, %v261_v55  ;;  %v572_v5 = vsel %vm303_vm0, %v4074_v56, 0.0  ;;  %v535_v10 = vmul.f32 %v3936_v20, %v515_v57 }
  0xa4   :  { %v4093_v11 = vpop.permute.xlu1 %476  ;;  %v4095_v15 = vpop.permute.xlu0 %222  ;;  %320 = vadd.xlane.f32.xlu1 %v319_v63  ;;  %v351_v16 = vadd.f32 %v350_v50, %v319_v63  ;;  %570 = vadd.xlane.f32.xlu0 %v569_v43  ;;  %v603_v17 = vadd.f32 %v602_v52, %v572_v5 }
  0xa5   :  { %v4098_v22 = vadd.f32 %v4080_v58, %v281_v1  ;;  %v262_v26 = vmul.f32 %v4095_v15, %v61_v59  ;;  %v4102_v27 = vadd.f32 %v4080_v58, %v535_v10  ;;  %v516_v29 = vmul.f32 %v4093_v11, %v61_v59 }
  0xa7   :  { %v322_v42 = vsel %vm303_vm0, %v4098_v22, 0.0  ;;  %v282_v43 = vmul.f32 %v3916_v9, %v262_v26  ;;  %v575_v44 = vsel %vm303_vm0, %v4102_v27, 0.0  ;;  %v536_v40 = vmul.f32 %v3936_v20, %v516_v29 }
  0xa8   :  { %v4121_v50 = vpop.permute.xlu1 %481  ;;  %v4123_v52 = vpop.permute.xlu0 %227  ;;  %323 = vadd.xlane.f32.xlu1 %v322_v42  ;;  %v352_v55 = vadd.f32 %v351_v16, %v322_v42  ;;  %573 = vadd.xlane.f32.xlu0 %v572_v5  ;;  %v604_v57 = vadd.f32 %v603_v17, %v575_v44  ;;  %v4136_v26 = vsel %vm151_vm12, 1.0, %v5231_v12  ;;  %v63_v5 = vld [vmem:[%s5217_s0 + $0x48] sm:$0xff]  ;;  %v137_v16 = vadd.s32 80, %v3895_v2 }
  0xa9   :  { %5288 = vst [vmem:[#allocation12_spill] sm:$0xff] %v4121_v50  ;;  %v4126_v59 = vadd.f32 %v4108_v33, %v282_v43  ;;  %v263_v63 = vmul.f32 %v4123_v52, %v62_v37  ;;  %v4130_v1 = vadd.f32 %v4108_v33, %v536_v40  ;;  %v517_v10 = vmul.f32 %v4121_v50, %v62_v37 }
  0xaa   :  { %5289 = vst [vmem:[#allocation13_spill] sm:$0xff] %v4136_v26  ;;  %vm153_vm14 = vcmp.eq.s32.totalorder %v137_v16, %v3897_v3 }
  0xab   :  { %v325_v17 = vsel %vm303_vm0, %v4126_v59, 0.0  ;;  %v283_v29 = vmul.f32 %v3916_v9, %v263_v63  ;;  %v578_v37 = vsel %vm303_vm0, %v4130_v1, 0.0  ;;  %v537_v62 = vmul.f32 %v3936_v20, %v517_v10 }
  0xac   :  { %v4149_v42 = vpop.permute.xlu1 %486  ;;  %v4151_v43 = vpop.permute.xlu0 %232  ;;  %326 = vadd.xlane.f32.xlu1 %v325_v17  ;;  %v353_v40 = vadd.f32 %v352_v55, %v325_v17  ;;  %576 = vadd.xlane.f32.xlu0 %v575_v44  ;;  %v605_v12 = vadd.f32 %v604_v57, %v578_v37  ;;  %v4164_v10 = vsel %vm152_vm13, 1.0, %v5292_v6  ;;  %v64_v44 = vld [vmem:[%s5217_s0 + $0x50] sm:$0xff]  ;;  %v138_v55 = vadd.s32 88, %v3895_v2 }
  0xad   :  { %5290 = vst [vmem:[#allocation14_spill] sm:$0xff] %v4149_v42  ;;  %5291 = vst [vmem:[#allocation15_spill] sm:$0xff] %v4151_v43  ;;  %v4154_v33 = vadd.f32 %v4136_v26, %v283_v29  ;;  %v264_v58 = vmul.f32 %v4151_v43, %v63_v5  ;;  %v4158_v63 = vadd.f32 %v4136_v26, %v537_v62 }
  0xae   :  { %v518_v35 = vmul.f32 %v4149_v42, %v63_v5  ;;  %5293 = vst [vmem:[#allocation16_spill] sm:$0xff] %v4164_v10  ;;  %vm154_vm15 = vcmp.eq.s32.totalorder %v138_v55, %v3897_v3 }
  0xaf   :  { %v328_v57 = vsel %vm303_vm0, %v4154_v33, 0.0  ;;  %v284_v17 = vmul.f32 %v3916_v9, %v264_v58  ;;  %v581_v5 = vsel %vm303_vm0, %v4158_v63, 0.0 }
  0xb0   :  { %v538_v41 = vmul.f32 %v3936_v20, %v518_v35  ;;  %v4177_v29 = vpop.permute.xlu1 %491  ;;  %v4179_v62 = vpop.permute.xlu0 %237  ;;  %329 = vadd.xlane.f32.xlu1 %v328_v57  ;;  %v354_v26 = vadd.f32 %v353_v40, %v328_v57  ;;  %579 = vadd.xlane.f32.xlu0 %v578_v37  ;;  %v606_v53 = vadd.f32 %v605_v12, %v581_v5  ;;  %v4192_v35 = vsel %vm153_vm14, 1.0, %v5292_v6  ;;  %v65_v37 = vld [vmem:[%s5217_s0 + $0x58] sm:$0xff] }
  0xb1   :  { %5294 = vst [vmem:[#allocation17_spill] sm:$0xff] %v4177_v29  ;;  %5295 = vst [vmem:[#allocation18_spill] sm:$0xff] %v4179_v62  ;;  %v4182_v38 = vadd.f32 %v4164_v10, %v284_v17  ;;  %v265_v14 = vmul.f32 %v4179_v62, %v64_v44  ;;  %v519_v13 = vmul.f32 %v4177_v29, %v64_v44  ;;  %v139_v12 = vadd.s32 96, %v3895_v2 }
  0xb2   :  { %v4186_v58 = vadd.f32 %v4164_v10, %v538_v41  ;;  %5296 = vst [vmem:[#allocation19_spill] sm:$0xff] %v4192_v35 }
  0xb3   :  { %v331_v40 = vsel %vm303_vm0, %v4182_v38, 0.0  ;;  %v285_v57 = vmul.f32 %v3916_v9, %v265_v14  ;;  %v539_v16 = vmul.f32 %v3936_v20, %v519_v13  ;;  %v4220_v13 = vsel %vm154_vm15, 1.0, %v5292_v6 }
  0xb4   :  { %v584_v44 = vsel %vm303_vm0, %v4186_v58, 0.0  ;;  %v4205_v17 = vpop.permute.xlu1 %496  ;;  %v4207_v41 = vpop.permute.xlu0 %242  ;;  %332 = vadd.xlane.f32.xlu1 %v331_v40  ;;  %v355_v10 = vadd.f32 %v354_v26, %v331_v40  ;;  %582 = vadd.xlane.f32.xlu0 %v581_v5  ;;  %5300 = vst [vmem:[#allocation23_spill] sm:$0xff] %v4220_v13  ;;  %v66_v26 = vld [vmem:[%s5217_s0 + $0x60] sm:$0xff]  ;;  %vm155_vm1 = vcmp.eq.s32.totalorder %v139_v12, %v3897_v3 }
  0xb5   :  { %5297 = vst [vmem:[#allocation20_spill] sm:$0xff] %v4205_v17  ;;  %5298 = vst [vmem:[#allocation21_spill] sm:$0xff] %v4207_v41  ;;  %v607_v29 = vadd.f32 %v606_v53, %v584_v44  ;;  %v4210_v62 = vadd.f32 %v4192_v35, %v285_v57  ;;  %v266_v43 = vmul.f32 %v4207_v41, %v65_v37  ;;  %v140_v53 = vadd.s32 104, %v3895_v2 }
  0xb6   :  { %v4214_v14 = vadd.f32 %v4192_v35, %v539_v16  ;;  %v520_v42 = vmul.f32 %v4205_v17, %v65_v37 }
  0xb7   :  { %v334_v5 = vsel %vm303_vm0, %v4210_v62, 0.0  ;;  %v286_v40 = vmul.f32 %v3916_v9, %v266_v43  ;;  %vm156_vm2 = vcmp.eq.s32.totalorder %v140_v53, %v3897_v3 }
  0xb8   :  { %5299 = vst [vmem:[#allocation22_spill] sm:$0xff] %v4214_v14  ;;  %v587_v37 = vsel %vm303_vm0, %v4214_v14, 0.0  ;;  %v540_v55 = vmul.f32 %v3936_v20, %v520_v42  ;;  %v4233_v57 = vpop.permute.xlu1 %501  ;;  %v4235_v16 = vpop.permute.xlu0 %247  ;;  %335 = vadd.xlane.f32.xlu1 %v334_v5  ;;  %v356_v35 = vadd.f32 %v355_v10, %v334_v5  ;;  %585 = vadd.xlane.f32.xlu0 %v584_v44  ;;  %v67_v42 = vld [vmem:[%s5217_s0 + $0x68] sm:$0x7f]  ;;  %v4251_v10 = vsel %vm155_vm1, 1.0, %v5292_v6 }
  0xb9   :  { %5301 = vst [vmem:[#allocation24_spill] sm:$0xff] %v4233_v57  ;;  %5302 = vst [vmem:[#allocation25_spill] sm:$0xff] %v4235_v16  ;;  %v608_v17 = vadd.f32 %v607_v29, %v587_v37  ;;  %v4238_v2 = vadd.f32 %v4220_v13, %v286_v40  ;;  %v267_v41 = vmul.f32 %v4235_v16, %v66_v26 }
  0xba   :  { %v4242_v43 = vadd.f32 %v4220_v13, %v540_v55  ;;  %v521_v14 = vmul.f32 %v4233_v57, %v66_v26  ;;  %5303 = vst [vmem:[#allocation26_spill] sm:$0xff] %v4251_v10 }
  0xbb   :  { %v337_v29 = vsel %vm303_vm0, %v4238_v2, 0.0  ;;  %v287_v44 = vmul.f32 %v3916_v9, %v267_v41 }
  0xbc   :  { %v590_v5 = vsel %vm303_vm0, %v4242_v43, 0.0  ;;  %v541_v26 = vmul.f32 %v3936_v20, %v521_v14  ;;  %v4260_v40 = vpop.permute.xlu1 %506  ;;  %v4262_v55 = vpop.permute.xlu0 %252  ;;  %338 = vadd.xlane.f32.xlu1 %v337_v29  ;;  %v357_v12 = vadd.f32 %v356_v35, %v337_v29  ;;  %588 = vadd.xlane.f32.xlu0 %v587_v37  ;;  %v4273_v14 = vsel %vm156_vm2, 1.0, %v5292_v6 }
  0xbd   :  { %5304 = vst [vmem:[#allocation27_spill] sm:$0xff] %v4260_v40  ;;  %5305 = vst [vmem:[#allocation28_spill] sm:$0xff] %v4262_v55  ;;  %v609_v13 = vadd.f32 %v608_v17, %v590_v5  ;;  %v522_v3 = vmul.f32 %v4260_v40, %v67_v42  ;;  %v4266_v53 = vadd.f32 %v4251_v10, %v287_v44 }
  0xbe   :  { %v268_v41 = vmul.f32 %v4262_v55, %v67_v42  ;;  %v4270_v57 = vadd.f32 %v4251_v10, %v541_v26  ;;  %5307 = vst [vmem:[#allocation30_spill] sm:$0xff] %v4273_v14 }
  0xbf   :  { %v340_v16 = vsel %vm303_vm0, %v4266_v53, 0.0  ;;  %v542_v37 = vmul.f32 %v3936_v20, %v522_v3 }
  0xc0   :  { %5306 = vst [vmem:[#allocation29_spill] sm:$0xff] %v4270_v57  ;;  %v288_v35 = vmul.f32 %v3916_v9, %v268_v41  ;;  %v593_v17 = vsel %vm303_vm0, %v4270_v57, 0.0  ;;  %341 = vadd.xlane.f32.xlu1 %v340_v16  ;;  %v358_v29 = vadd.f32 %v357_v12, %v340_v16  ;;  %591 = vadd.xlane.f32.xlu0 %v590_v5 }
  0xc1   :  { %v610_v42 = vadd.f32 %v609_v13, %v593_v17  ;;  %v4285_v6 = vadd.f32 %v4273_v14, %v542_v37 }
  0xc2   :  { %v4282_v44 = vadd.f32 %v4273_v14, %v288_v35 }
  0xc3   :  { %5309 = vst [vmem:[#allocation32_spill] sm:$0xff] %v4285_v6  ;;  %v596_v9 = vsel %vm343_vm4, %v4285_v6, 0.0 }
  0xc4   :  { %5308 = vst [vmem:[#allocation31_spill] sm:$0xff] %v4282_v44  ;;  %v344_v26 = vsel %vm343_vm4, %v4282_v44, 0.0  ;;  %594 = vadd.xlane.f32.xlu0 %v593_v17  ;;  %v611_v20 = vadd.f32 %v610_v42, %v596_v9 }
  0xc5   :  { %345 = vadd.xlane.f32.xlu1 %v344_v26  ;;  %v359_v41 = vadd.f32 %v358_v29, %v344_v26 }
  0xc6   :  { %v612_v37 = vrot.slane %v611_v20, 4 }
  0xc7   :  { %v360_v55 = vrot.slane %v359_v41, 4 }
  0xc8   :  { %597 = vadd.xlane.f32.xlu0 %v596_v9  ;;  %v613_v6 = vadd.f32 %v612_v37, %v611_v20 }
  0xc9   :  { %v361_v26 = vadd.f32 %v360_v55, %v359_v41 }
  0xca   :  { %v614_v9 = vrot.slane %v613_v6, 2 }
  0xf5   :  { %v3013_v16 = vpop.f32.mrb[0].mxu0 }
  0xf6   :  { %v1007_v5 = vpop.f32.mrb[1].mxu0 }
  0xf7   :  { %v3322_v13 = vpack.c.bf16 %v3013_v16, %v1007_v5 }
  0xf9   :  { %v3016_v12 = vpop.f32.mrb[2].mxu0  ;;  %3323 = vmatprep.subr.bf16.mxu1 %v3322_v13 }
  0xfa   :  { %v1017_v3 = vpop.f32.mrb[3].mxu0  ;;  %3325 = vmatpush3.bf16.msra.mxu1 %v3322_v13 }
  0xfb   :  { %v3326_v35 = vpack.c.bf16 %v3016_v12, %v1017_v3  ;;  %v362_v12 = vrot.slane %v361_v26, 2  ;;  %v615_v3 = vadd.f32 %v614_v9, %v613_v6 }
  0xfd   :  { %v3019_v14 = vpop.f32.mrb[4].mxu0  ;;  %3327 = vmatprep.subr.bf16.mxu1 %v3326_v35  ;;  %v616_v20 = vrot.slane %v615_v3, 1 }
  0xfe   :  { %v1027_v10 = vpop.f32.mrb[5].mxu0  ;;  %3329 = vmatpush3.bf16.msra.mxu1 %v3326_v35 }
  0xff   :  { %v3330_v40 = vpack.c.bf16 %v3019_v14, %v1027_v10  ;;  %v363_v14 = vadd.f32 %v362_v12, %v361_v26 }
 0x101   :  { %v3022_v29 = vpop.f32.mrb[6].mxu0  ;;  %3331 = vmatprep.subr.bf16.mxu1 %v3330_v40  ;;  %v364_v41 = vrot.slane %v363_v14, 1 }
 0x102   :  { %v1037_v17 = vpop.f32.mrb[7].mxu0  ;;  %3333 = vmatpush3.bf16.msra.mxu1 %v3330_v40 }
 0x103   :  { %v3334_v42 = vpack.c.bf16 %v3022_v29, %v1037_v17  ;;  %v617_v29 = vadd.f32 %v616_v20, %v615_v3  ;;  %v365_v6 = vadd.f32 %v364_v41, %v363_v14 }
 0x105   :  { %v3025_v16 = vpop.f32.mrb[8].mxu0  ;;  %3335 = vmatprep.subr.bf16.mxu1 %v3334_v42  ;;  %vm660_vm7 = vcmp.gt.f32.partialorder %v617_v29, 0.0  ;;  %vm408_vm9 = vcmp.gt.f32.partialorder %v365_v6, 0.0 }
 0x106   :  { %v1047_v5 = vpop.f32.mrb[9].mxu0  ;;  %3337 = vmatpush3.bf16.msra.mxu1 %v3334_v42 }
 0x107   :  { %v3338_v13 = vpack.c.bf16 %v3025_v16, %v1047_v5 }
 0x109   :  { %v3028_v57 = vpop.f32.mrb[10].mxu0  ;;  %3339 = vmatprep.subr.bf16.mxu1 %v3338_v13 }
 0x10a   :  { %v1057_v35 = vpop.f32.mrb[11].mxu0  ;;  %3341 = vmatpush3.bf16.msra.mxu1 %v3338_v13 }
 0x10b   :  { %v3342_v10 = vpack.c.bf16 %v3028_v57, %v1057_v35 }
 0x10d   :  { %v3031_v37 = vpop.f32.mrb[12].mxu0  ;;  %3343 = vmatprep.subr.bf16.mxu1 %v3342_v10 }
 0x10e   :  { %v1067_v40 = vpop.f32.mrb[13].mxu0  ;;  %3345 = vmatpush3.bf16.msra.mxu1 %v3342_v10 }
 0x10f   :  { %v3346_v55 = vpack.c.bf16 %v3031_v37, %v1067_v40 }
 0x111   :  { %3348 = vmatprep.subr.msk.bf16.mxu1 %vm3799_vm3, %v3346_v55 }
 0x112   :  { %3351 = vmatpush3.bf16.msk.msra.mxu1 %vm3799_vm3, %v3346_v55 }
 0x11d   :  { %v306_v17 = vpop.xlane.xlu0 %305 }
 0x11e   :  { %3483 = vrsqrt.f32 %v306_v17  ;;  %vm366_vm5 = vcmp.gt.f32.partialorder %v306_v17, 0.0 }
 0x11f   :  { %3485 = vrsqrt.f32 %v617_v29 }
 0x121   :  { %v559_v57 = vpop.xlane.xlu1 %558  ;;  %v309_v42 = vpop.xlane.xlu0 %308 }
 0x122   :  { %3487 = vrsqrt.f32 %v559_v57  ;;  %vm618_vm6 = vcmp.gt.f32.partialorder %v559_v57, 0.0  ;;  %vm367_vm8 = vcmp.gt.f32.partialorder %v309_v42, 0.0 }
 0x123   :  { %3489 = vrsqrt.f32 %v309_v42 }
 0x124   :  { %3491 = vrsqrt.f32 %v365_v6 }
 0x125   :  { %v312_v26 = vpop.xlane.xlu1 %311  ;;  %v562_v9 = vpop.xlane.xlu0 %561 }
 0x126   :  { %3493 = vrsqrt.f32 %v312_v26  ;;  %vm368_vm10 = vcmp.gt.f32.partialorder %v312_v26, 0.0  ;;  %vm619_vm11 = vcmp.gt.f32.partialorder %v562_v9, 0.0 }
 0x127   :  { %3495 = vrsqrt.f32 %v562_v9 }
 0x128   :  { %v3484_v16 = vpop.eup %3483 }
 0x129   :  { %v315_v5 = vpop.xlane.xlu1 %314  ;;  %v565_v13 = vpop.xlane.xlu0 %564  ;;  %v394_v3 = vsel %vm366_vm5, %v3484_v16, 0.0 }
 0x12a   :  { %3497 = vrsqrt.f32 %v315_v5  ;;  %v3486_v12 = vpop.eup %3485  ;;  %v411_v55 = vmul.f32 %v394_v3, %v3939_v21  ;;  %vm369_vm12 = vcmp.gt.f32.partialorder %v315_v5, 0.0  ;;  %vm620_vm13 = vcmp.gt.f32.partialorder %v565_v13, 0.0 }
 0x12b   :  { %3499 = vrsqrt.f32 %v565_v13  ;;  %v4297_v17 = vsel %vm660_vm7, %v3486_v12, 0.0 }
 0x12c   :  { %v3488_v35 = vpop.eup %3487 }
 0x12d   :  { %v3490_v10 = vpop.eup %3489  ;;  %v646_v14 = vsel %vm618_vm6, %v3488_v35, 0.0  ;;  %v318_v20 = vpop.xlane.xlu1 %317 }
 0x12e   :  { %v568_v37 = vpop.xlane.xlu0 %567  ;;  %v3492_v40 = vpop.eup %3491  ;;  %v663_v41 = vmul.f32 %v646_v14, %v3962_v34  ;;  %v395_v39 = vsel %vm367_vm8, %v3490_v10, 0.0  ;;  %3501 = vrsqrt.f32 %v318_v20  ;;  %vm370_vm14 = vcmp.gt.f32.partialorder %v318_v20, 0.0 }
 0x12f   :  { %v412_v16 = vmul.f32 %v395_v39, %v3943_v23  ;;  %3503 = vrsqrt.f32 %v568_v37  ;;  %v4301_v42 = vsel %vm408_vm9, %v3492_v40, 0.0  ;;  %vm621_vm15 = vcmp.gt.f32.partialorder %v568_v37, 0.0 }
 0x130   :  { %v3494_v44 = vpop.eup %3493  ;;  %v677_v29 = vmul.f32 %v663_v41, %v4297_v17  ;;  %v425_v12 = vmul.f32 %v411_v55, %v4301_v42 }
 0x131   :  { %v3496_v57 = vpop.eup %3495  ;;  %v396_v35 = vsel %vm368_vm10, %v3494_v44, 0.0  ;;  %v321_v21 = vpop.xlane.xlu1 %320  ;;  %v426_v39 = vmul.f32 %v412_v16, %v4301_v42 }
 0x132   :  { %v571_v3 = vpop.xlane.xlu0 %570  ;;  %v413_v34 = vmul.f32 %v396_v35, %v3988_v49  ;;  %v647_v10 = vsel %vm619_vm11, %v3496_v57, 0.0  ;;  %3505 = vrsqrt.f32 %v321_v21  ;;  %v853_v26 = vmul.f32 %v677_v29, %v3931_v19 }
 0x133   :  { %v664_v23 = vmul.f32 %v647_v10, %v3966_v36  ;;  %3507 = vrsqrt.f32 %v571_v3  ;;  %v839_v16 = vmul.f32 %v425_v12, %v3911_v8  ;;  %v840_v36 = vmul.f32 %v426_v39, %v3909_v7 }
 0x134   :  { %v3498_v6 = vpop.eup %3497  ;;  %v427_v41 = vmul.f32 %v413_v34, %v4301_v42  ;;  %vm371_vm1 = vcmp.gt.f32.partialorder %v321_v21, 0.0  ;;  %vm622_vm2 = vcmp.gt.f32.partialorder %v571_v3, 0.0 }
 0x135   :  { %v3500_v14 = vpop.eup %3499  ;;  %v678_v44 = vmul.f32 %v664_v23, %v4297_v17  ;;  %v397_v9 = vsel %vm369_vm12, %v3498_v6, 0.0  ;;  %v324_v40 = vpop.xlane.xlu1 %323  ;;  %v4315_v13 = vadd.f32 %v853_v26, %v839_v16 }
 0x136   :  { %v574_v49 = vpop.xlane.xlu0 %573  ;;  %v414_v55 = vmul.f32 %v397_v9, %v4014_v0  ;;  %v648_v57 = vsel %vm620_vm13, %v3500_v14, 0.0  ;;  %3509 = vrsqrt.f32 %v324_v40  ;;  %v841_v39 = vmul.f32 %v427_v41, %v3959_v32 }
 0x137   :  { %v854_v5 = vmul.f32 %v678_v44, %v3929_v18  ;;  %v665_v29 = vmul.f32 %v648_v57, %v3992_v51  ;;  %3511 = vrsqrt.f32 %v574_v49  ;;  %3060 = vmatprep.mubr.msk.f32.mxu1 %vm303_vm0, %v4315_v13  ;;  %vm372_vm5 = vcmp.gt.f32.partialorder %v324_v40, 0.0 }
 0x138   :  { %v3502_v35 = vpop.eup %3501  ;;  %v428_v14 = vmul.f32 %v414_v55, %v4301_v42  ;;  %vm623_vm6 = vcmp.gt.f32.partialorder %v574_v49, 0.0 }
 0x139   :  { %v3504_v10 = vpop.eup %3503  ;;  %v679_v34 = vmul.f32 %v665_v29, %v4297_v17  ;;  %v398_v23 = vsel %vm370_vm14, %v3502_v35, 0.0  ;;  %v327_v0 = vpop.xlane.xlu1 %326  ;;  %v4318_v12 = vadd.f32 %v854_v5, %v840_v36 }
 0x13a   :  { %v577_v6 = vpop.xlane.xlu0 %576  ;;  %v649_v51 = vsel %vm621_vm15, %v3504_v10, 0.0  ;;  %v415_v26 = vmul.f32 %v398_v23, %v4042_v28  ;;  %3513 = vrsqrt.f32 %v327_v0  ;;  %v842_v36 = vmul.f32 %v428_v14, %v3985_v47 }
 0x13b   :  { %v855_v20 = vmul.f32 %v679_v34, %v3957_v31  ;;  %v666_v44 = vmul.f32 %v649_v51, %v4018_v4  ;;  %3061 = vmatmul.mubr.msk.f32.vlgmr.msra.gmra.mrb[0].mxu1 %vm303_vm0, %v4318_v12  ;;  %3515 = vrsqrt.f32 %v577_v6  ;;  %vm373_vm7 = vcmp.gt.f32.partialorder %v327_v0, 0.0 }
 0x13c   :  { %v3506_v37 = vpop.eup %3505  ;;  %v429_v4 = vmul.f32 %v415_v26, %v4301_v42  ;;  %vm624_vm8 = vcmp.gt.f32.partialorder %v577_v6, 0.0 }
 0x13d   :  { %v3508_v9 = vpop.eup %3507  ;;  %v680_v41 = vmul.f32 %v666_v44, %v4297_v17  ;;  %v330_v55 = vpop.xlane.xlu1 %329  ;;  %v4330_v16 = vadd.f32 %v855_v20, %v841_v39  ;;  %v399_v28 = vsel %vm371_vm1, %v3506_v37, 0.0 }
 0x13e   :  { %v580_v57 = vpop.xlane.xlu0 %579  ;;  %v650_v5 = vsel %vm622_vm2, %v3508_v9, 0.0  ;;  %3517 = vrsqrt.f32 %v330_v55  ;;  %v416_v3 = vmul.f32 %v399_v28, %v4070_v54  ;;  %vm374_vm9 = vcmp.gt.f32.partialorder %v330_v55, 0.0 }
 0x13f   :  { %v856_v29 = vmul.f32 %v680_v41, %v3983_v46  ;;  %v667_v35 = vmul.f32 %v650_v5, %v4046_v30  ;;  %3063 = vmatprep.mubr.msk.f32.mxu1 %vm303_vm0, %v4330_v16  ;;  %3519 = vrsqrt.f32 %v580_v57  ;;  %v843_v30 = vmul.f32 %v429_v4, %v4011_v61 }
 0x140   :  { %v3510_v21 = vpop.eup %3509  ;;  %v430_v37 = vmul.f32 %v416_v3, %v4301_v42  ;;  %vm625_vm10 = vcmp.gt.f32.partialorder %v580_v57, 0.0 }
 0x141   :  { %v681_v10 = vmul.f32 %v667_v35, %v4297_v17  ;;  %v333_v34 = vpop.xlane.xlu1 %332  ;;  %v4340_v39 = vadd.f32 %v856_v29, %v842_v36  ;;  %v3512_v14 = vpop.eup %3511  ;;  %v400_v20 = vsel %vm372_vm5, %v3510_v21, 0.0 }
 0x142   :  { %v583_v23 = vpop.xlane.xlu0 %582  ;;  %3521 = vrsqrt.f32 %v333_v34  ;;  %v651_v26 = vsel %vm623_vm6, %v3512_v14, 0.0  ;;  %v417_v36 = vmul.f32 %v400_v20, %v4098_v22  ;;  %v844_v29 = vmul.f32 %v430_v37, %v4039_v25 }
 0x143   :  { %v857_v51 = vmul.f32 %v681_v10, %v4009_v60  ;;  %3064 = vmatmul.mubr.msk.f32.gmra.mrb[2].mxu1 %vm303_vm0, %v4340_v39  ;;  %v668_v54 = vmul.f32 %v651_v26, %v4074_v56  ;;  %3523 = vrsqrt.f32 %v583_v23  ;;  %vm375_vm11 = vcmp.gt.f32.partialorder %v333_v34, 0.0 }
 0x144   :  { %v3514_v44 = vpop.eup %3513  ;;  %v431_v10 = vmul.f32 %v417_v36, %v4301_v42  ;;  %vm626_vm12 = vcmp.gt.f32.partialorder %v583_v23, 0.0 }
 0x145   :  { %v336_v40 = vpop.xlane.xlu1 %335  ;;  %v4348_v9 = vadd.f32 %v857_v51, %v843_v30  ;;  %v3516_v41 = vpop.eup %3515  ;;  %v682_v28 = vmul.f32 %v668_v54, %v4297_v17  ;;  %v401_v5 = vsel %vm373_vm7, %v3514_v44, 0.0 }
 0x146   :  { %v586_v49 = vpop.xlane.xlu0 %585  ;;  %3525 = vrsqrt.f32 %v336_v40  ;;  %v652_v4 = vsel %vm624_vm8, %v3516_v41, 0.0  ;;  %v418_v35 = vmul.f32 %v401_v5, %v4126_v59  ;;  %v845_v41 = vmul.f32 %v431_v10, %v4067_v48 }
 0x147   :  { %3066 = vmatprep.mubr.msk.f32.mxu1 %vm303_vm0, %v4348_v9  ;;  %v858_v56 = vmul.f32 %v682_v28, %v4037_v24  ;;  %v669_v0 = vmul.f32 %v652_v4, %v4102_v27  ;;  %3527 = vrsqrt.f32 %v586_v49  ;;  %vm376_vm13 = vcmp.gt.f32.partialorder %v336_v40, 0.0 }
 0x148   :  { %v3518_v6 = vpop.eup %3517  ;;  %v432_v59 = vmul.f32 %v418_v35, %v4301_v42  ;;  %vm627_vm14 = vcmp.gt.f32.partialorder %v586_v49, 0.0 }
 0x149   :  { %v339_v22 = vpop.xlane.xlu1 %338  ;;  %v3520_v3 = vpop.eup %3519  ;;  %v683_v14 = vmul.f32 %v669_v0, %v4297_v17  ;;  %v402_v30 = vsel %vm374_vm9, %v3518_v6, 0.0  ;;  %v4362_v54 = vadd.f32 %v858_v56, %v844_v29 }
 0x14a   :  { %v589_v21 = vpop.xlane.xlu0 %588  ;;  %3529 = vrsqrt.f32 %v339_v22  ;;  %v653_v51 = vsel %vm625_vm10, %v3520_v3, 0.0  ;;  %v419_v55 = vmul.f32 %v402_v30, %v4154_v33  ;;  %v846_v23 = vmul.f32 %v432_v59, %v4095_v15 }
 0x14b   :  { %v859_v27 = vmul.f32 %v683_v14, %v4065_v45  ;;  %v670_v26 = vmul.f32 %v653_v51, %v4130_v1  ;;  %3531 = vrsqrt.f32 %v589_v21  ;;  %3067 = vmatmul.mubr.msk.f32.gmra.mrb[4].mxu1 %vm303_vm0, %v4362_v54  ;;  %vm377_vm15 = vcmp.gt.f32.partialorder %v339_v22, 0.0 }
 0x14c   :  { %v3522_v20 = vpop.eup %3521  ;;  %v433_v56 = vmul.f32 %v419_v55, %v4301_v42  ;;  %vm628_vm1 = vcmp.gt.f32.partialorder %v589_v21, 0.0 }
 0x14d   :  { %v342_v57 = vpop.xlane.xlu1 %341  ;;  %v3524_v37 = vpop.eup %3523  ;;  %v684_v36 = vmul.f32 %v670_v26, %v4297_v17  ;;  %v403_v28 = vsel %vm375_vm11, %v3522_v20, 0.0  ;;  %v4372_v34 = vadd.f32 %v859_v27, %v845_v41 }
 0x14e   :  { %v592_v44 = vpop.xlane.xlu0 %591  ;;  %3533 = vrsqrt.f32 %v342_v57  ;;  %v654_v1 = vsel %vm626_vm12, %v3524_v37, 0.0  ;;  %v420_v0 = vmul.f32 %v403_v28, %v4182_v38  ;;  %v847_v20 = vmul.f32 %v433_v56, %v4123_v52 }
 0x14f   :  { %3535 = vrsqrt.f32 %v592_v44  ;;  %v860_v4 = vmul.f32 %v684_v36, %v4093_v11  ;;  %v671_v33 = vmul.f32 %v654_v1, %v4158_v63  ;;  %3069 = vmatprep.mubr.msk.f32.mxu1 %vm303_vm0, %v4372_v34  ;;  %v5310_v36 = vld [vmem:[#allocation14_spill] sm:$0xff]  ;;  %vm378_vm2 = vcmp.gt.f32.partialorder %v342_v57, 0.0  ;;  %v5314_v57 = vld [vmem:[#allocation17_spill] sm:$0xff] }
 0x150   :  { %v3526_v5 = vpop.eup %3525  ;;  %v434_v49 = vmul.f32 %v420_v0, %v4301_v42  ;;  %v5311_v1 = vld [vmem:[#allocation22_spill] sm:$0xff]  ;;  %vm629_vm5 = vcmp.gt.f32.partialorder %v592_v44, 0.0 }
 0x151   :  { %v404_v6 = vsel %vm376_vm13, %v3526_v5, 0.0  ;;  %v3528_v3 = vpop.eup %3527  ;;  %v685_v10 = vmul.f32 %v671_v33, %v4297_v17  ;;  %v4380_v40 = vadd.f32 %v860_v4, %v846_v23  ;;  %v5312_v33 = vld [vmem:[#allocation15_spill] sm:$0xff] }
 0x152   :  { %v346_v29 = vpop.xlane.xlu1 %345  ;;  %v595_v35 = vpop.xlane.xlu0 %594  ;;  %v655_v63 = vsel %vm627_vm14, %v3528_v3, 0.0  ;;  %v421_v38 = vmul.f32 %v404_v6, %v4210_v62  ;;  %v848_v23 = vmul.f32 %v434_v49, %v5312_v33 }
 0x153   :  { %3537 = vrsqrt.f32 %v346_v29  ;;  %v861_v30 = vmul.f32 %v685_v10, %v4121_v50  ;;  %v672_v51 = vmul.f32 %v655_v63, %v4186_v58  ;;  %3070 = vmatmul.mubr.msk.f32.gmra.mrb[6].mxu1 %vm303_vm0, %v4380_v40  ;;  %v5313_v10 = vld [vmem:[#allocation18_spill] sm:$0xff]  ;;  %vm379_vm6 = vcmp.gt.f32.partialorder %v346_v29, 0.0 }
 0x154   :  { %v3530_v14 = vpop.eup %3529  ;;  %3539 = vrsqrt.f32 %v595_v35  ;;  %v435_v41 = vmul.f32 %v421_v38, %v4301_v42  ;;  %vm630_vm7 = vcmp.gt.f32.partialorder %v595_v35, 0.0 }
 0x155   :  { %v405_v27 = vsel %vm377_vm15, %v3530_v14, 0.0  ;;  %v3532_v26 = vpop.eup %3531  ;;  %v686_v59 = vmul.f32 %v672_v51, %v4297_v17  ;;  %v4391_v62 = vadd.f32 %v861_v30, %v847_v20 }
 0x156   :  { %v598_v22 = vpop.xlane.xlu0 %597  ;;  %v422_v55 = vmul.f32 %v405_v27, %v4238_v2  ;;  %v656_v37 = vsel %vm628_vm1, %v3532_v26, 0.0  ;;  %v849_v63 = vmul.f32 %v435_v41, %v5313_v10  ;;  %v5316_v26 = vld [vmem:[#allocation20_spill] sm:$0xff]  ;;  %v5318_v41 = vld [vmem:[#allocation29_spill] sm:$0xff] }
 0x157   :  { %3541 = vrsqrt.f32 %v598_v22  ;;  %v862_v28 = vmul.f32 %v686_v59, %v5310_v36  ;;  %v673_v5 = vmul.f32 %v656_v37, %v5311_v1  ;;  %3072 = vmatprep.mubr.msk.f32.mxu1 %vm303_vm0, %v4391_v62  ;;  %vm631_vm8 = vcmp.gt.f32.partialorder %v598_v22, 0.0  ;;  %v5322_v22 = vld [vmem:[#allocation28_spill] sm:$0xff] }
 0x158   :  { %v3534_v58 = vpop.eup %3533  ;;  %v436_v0 = vmul.f32 %v422_v55, %v4301_v42  ;;  %v5317_v55 = vld [vmem:[#allocation31_spill] sm:$0xff] }
 0x159   :  { %v3536_v4 = vpop.eup %3535  ;;  %v406_v56 = vsel %vm378_vm2, %v3534_v58, 0.0  ;;  %v687_v2 = vmul.f32 %v673_v5, %v4297_v17  ;;  %v4402_v3 = vadd.f32 %v862_v28, %v848_v23  ;;  %v5319_v23 = vld [vmem:[#allocation32_spill] sm:$0xff] }
 0x15a   :  { %v657_v21 = vsel %vm629_vm5, %v3536_v4, 0.0  ;;  %v423_v30 = vmul.f32 %v406_v56, %v4266_v53 }
 0x15b   :  { %v674_v6 = vmul.f32 %v657_v21, %v4242_v43  ;;  %v863_v14 = vmul.f32 %v687_v2, %v5314_v57  ;;  %3073 = vmatmul.mubr.msk.f32.gmra.mrb[8].mxu1 %vm303_vm0, %v4402_v3  ;;  %v5315_v43 = vld [vmem:[#allocation21_spill] sm:$0xff] }
 0x15c   :  { %v850_v27 = vmul.f32 %v436_v0, %v5315_v43  ;;  %v437_v53 = vmul.f32 %v423_v30, %v4301_v42  ;;  %v5320_v2 = vld [vmem:[#allocation25_spill] sm:$0xff]  ;;  %v5321_v0 = vld [vmem:[#allocation24_spill] sm:$0xff] }
 0x15d   :  { %v3538_v38 = vpop.eup %3537  ;;  %v688_v44 = vmul.f32 %v674_v6, %v4297_v17  ;;  %v4410_v49 = vadd.f32 %v863_v14, %v849_v63 }
 0x15e   :  { %v3540_v51 = vpop.eup %3539  ;;  %v407_v20 = vsel %vm379_vm6, %v3538_v38, 0.0  ;;  %v851_v21 = vmul.f32 %v437_v53, %v5320_v2  ;;  %v5323_v38 = vld [vmem:[#allocation27_spill] sm:$0xff]  ;;  %v1409_v53 = vld [vmem:[%s5220_s9 + $0x30] sm:$0xff] }
 0x15f   :  { %v864_v59 = vmul.f32 %v688_v44, %v5316_v26  ;;  %v424_v37 = vmul.f32 %v407_v20, %v5317_v55  ;;  %v658_v58 = vsel %vm630_vm7, %v3540_v51, 0.0  ;;  %3075 = vmatprep.mubr.msk.f32.mxu1 %vm303_vm0, %v4410_v49  ;;  %v1404_v51 = vld [vmem:[%s5220_s9 + $0x8] sm:$0xff]  ;;  %v1405_v20 = vld [vmem:[%s5220_s9 + $0x10] sm:$0xff] }
 0x160   :  { %v675_v28 = vmul.f32 %v658_v58, %v5318_v41  ;;  %v1410_v41 = vld [vmem:[%s5220_s9 + $0x38] sm:$0xff] }
 0x161   :  { %v3542_v29 = vpop.eup %3541  ;;  %v4419_v1 = vadd.f32 %v864_v59, %v850_v27  ;;  %v438_v4 = vmul.f32 %v424_v37, %v4301_v42  ;;  %v1406_v59 = vld [vmem:[%s5220_s9 + $0x18] sm:$0xff]  ;;  %v1408_v37 = vld [vmem:[%s5220_s9 + $0x28] sm:$0xff] }
 0x162   :  { %v689_v35 = vmul.f32 %v675_v28, %v4297_v17  ;;  %v659_v5 = vsel %vm631_vm8, %v3542_v29, 0.0  ;;  %v3356_v55 = vpack.c.bf16 %v1406_v59, %v1405_v20  ;;  %v3364_v28 = vpack.c.bf16 %v1410_v41, %v1409_v53  ;;  %v4468_v29 = vld [vmem:[%s5221_s8] ss:$0 sm:$0xff]  ;;  %s3618_s8 = smov 64  }
 0x163   :  { %v676_v56 = vmul.f32 %v659_v5, %v5319_v23  ;;  %3076 = vmatmul.mubr.msk.f32.gmra.mrb[10].mxu1 %vm303_vm0, %v4419_v1  ;;  %v852_v30 = vmul.f32 %v438_v4, %v5322_v22 }
 0x164   :  { %v865_v6 = vmul.f32 %v689_v35, %v5321_v0 }
 0x165   :  { %v690_v63 = vmul.f32 %v676_v56, %v4297_v17  ;;  %v1403_v17 = vld [vmem:[%s5220_s9] sm:$0xff] }
 0x166   :  { %v4429_v14 = vadd.f32 %v865_v6, %v851_v21  ;;  %v3352_v27 = vpack.c.bf16 %v1404_v51, %v1403_v17 }
 0x167   :  { %v866_v44 = vmul.f32 %v690_v63, %v5323_v38 }
 0x168   :  { %3078 = vmatprep.mubr.msk.f32.mxu1 %vm303_vm0, %v4429_v14  ;;  %3353 = vmatprep.subr.bf16.mxu0 %v3352_v27 }
 0x169   :  { %v4435_v42 = vadd.f32 %v866_v44, %v852_v30  ;;  %3355 = vmatpush3.bf16.msra.mxu0 %v3352_v27 }
 0x16a   :  { %3357 = vmatprep.subr.bf16.mxu0 %v3356_v55 }
 0x16b   :  { %3079 = vmatmul.mubr.msk.f32.gmra.mrb[12].mxu1 %vm303_vm0, %v4435_v42 }
 0x16c   :  { %3146 = vmatprep.mubr.msk.f32.mxu1 %vm303_vm0, %v4315_v13  ;;  %v1407_v13 = vld [vmem:[%s5220_s9 + $0x20] sm:$0xff] }
 0x16d   :  { %v3360_v58 = vpack.c.bf16 %v1408_v37, %v1407_v13  ;;  %3359 = vmatpush3.bf16.msra.mxu0 %v3356_v55 }
 0x16f   :  { %3361 = vmatprep.subr.bf16.mxu0 %v3360_v58 }
 0x171   :  { %3363 = vmatpush3.bf16.msra.mxu0 %v3360_v58 }
 0x172   :  { %3365 = vmatprep.subr.bf16.mxu0 %v3364_v28 }
 0x175   :  { %3367 = vmatpush3.bf16.msra.mxu0 %v3364_v28 }
 0x20e   :  { %v3062_v35 = vpop.f32.mrb[0].mxu1 }
 0x20f   :  { %v1200_v5 = vadd.f32 %v3062_v35, %v4468_v29  ;;  %v1194_v4 = vpop.f32.mrb[1].mxu1 }
 0x210   :  { %v1195_v23 = vadd.f32 %v4468_v29, %v1194_v4 }
 0x211   :  { %vm1264_vm9 = vcmp.ge.f32.partialorder %v1200_v5, 0.0  ;;  %v1278_v56 = vmul.f32 0.01, %v1200_v5 }
 0x212   :  { %vm1263_vm10 = vcmp.ge.f32.partialorder %v1195_v23, 0.0  ;;  %v1277_v21 = vmul.f32 0.01, %v1195_v23 }
 0x213   :  { %v4472_v6 = vsel %vm1264_vm9, %v1200_v5, %v1278_v56 }
 0x214   :  { %v1320_v63 = vmul.f32 %v4472_v6, %v3929_v18  ;;  %v4476_v30 = vsel %vm1263_vm10, %v1195_v23, %v1277_v21  ;;  %vm1411_vm10 = vcmask 523264  }
 0x215   :  { %v1319_v44 = vmul.f32 %v4476_v30, %v3931_v19 }
 0x216   :  { %1349 = vrot.lane.b32.xlu0 %v1320_v63, %s3618_s8  ;;  %v3065_v17 = vpop.f32.mrb[2].mxu1 }
 0x217   :  { %v1210_v51 = vadd.f32 %v3065_v17, %v4468_v29  ;;  %v1204_v20 = vpop.f32.mrb[3].mxu1  ;;  %1347 = vrot.lane.b32.xlu1 %v1319_v44, %s3618_s8 }
 0x218   :  { %v1205_v27 = vadd.f32 %v4468_v29, %v1204_v20 }
 0x219   :  { %v1280_v59 = vmul.f32 0.01, %v1210_v51  ;;  %vm1266_vm12 = vcmp.ge.f32.partialorder %v1210_v51, 0.0 }
 0x21a   :  { %vm1265_vm11 = vcmp.ge.f32.partialorder %v1205_v27, 0.0  ;;  %v1279_v55 = vmul.f32 0.01, %v1205_v27 }
 0x21b   :  { %v4488_v58 = vsel %vm1266_vm12, %v1210_v51, %v1280_v59 }
 0x21c   :  { %v4484_v13 = vsel %vm1265_vm11, %v1205_v27, %v1279_v55  ;;  %v1322_v41 = vmul.f32 %v4488_v58, %v3983_v46  ;;  %vm1920_vm11 = vcmask 1043456  }
 0x21d   :  { %v1321_v37 = vmul.f32 %v4484_v13, %v3957_v31 }
 0x21e   :  { %v3068_v53 = vpop.f32.mrb[4].mxu1 }
 0x21f   :  { %1351 = vrot.lane.b32.xlu1 %v1321_v37, %s3618_s8  ;;  %v1220_v28 = vadd.f32 %v3068_v53, %v4468_v29  ;;  %v1214_v35 = vpop.f32.mrb[5].mxu1 }
 0x220   :  { %v1215_v5 = vadd.f32 %v4468_v29, %v1214_v35 }
 0x221   :  { %vm1268_vm13 = vcmp.ge.f32.partialorder %v1220_v28, 0.0  ;;  %v1282_v4 = vmul.f32 0.01, %v1220_v28 }
 0x222   :  { %vm1267_vm14 = vcmp.ge.f32.partialorder %v1215_v5, 0.0  ;;  %v1281_v23 = vmul.f32 0.01, %v1215_v5 }
 0x223   :  { %1353 = vrot.lane.b32.xlu1 %v1322_v41, %s3618_s8  ;;  %v4496_v56 = vsel %vm1268_vm13, %v1220_v28, %v1282_v4 }
 0x224   :  { %v4498_v21 = vsel %vm1267_vm14, %v1215_v5, %v1281_v23  ;;  %v1324_v63 = vmul.f32 %v4496_v56, %v4037_v24 }
 0x225   :  { %v1323_v17 = vmul.f32 %v4498_v21, %v4009_v60 }
 0x226   :  { %v3071_v44 = vpop.f32.mrb[6].mxu1 }
 0x227   :  { %v1230_v51 = vadd.f32 %v3071_v44, %v4468_v29  ;;  %v1224_v20 = vpop.f32.mrb[7].mxu1  ;;  %1357 = vrot.lane.b32.xlu1 %v1324_v63, %s3618_s8  ;;  %1355 = vrot.lane.b32.xlu0 %v1323_v17, %s3618_s8 }
 0x228   :  { %v1225_v27 = vadd.f32 %v4468_v29, %v1224_v20 }
 0x229   :  { %vm1270_vm15 = vcmp.ge.f32.partialorder %v1230_v51, 0.0  ;;  %v1284_v59 = vmul.f32 0.01, %v1230_v51 }
 0x22a   :  { %vm1269_vm1 = vcmp.ge.f32.partialorder %v1225_v27, 0.0  ;;  %v1283_v55 = vmul.f32 0.01, %v1225_v27 }
 0x22b   :  { %v4508_v37 = vsel %vm1270_vm15, %v1230_v51, %v1284_v59 }
 0x22c   :  { %v1326_v53 = vmul.f32 %v4508_v37, %v4093_v11  ;;  %v4512_v41 = vsel %vm1269_vm1, %v1225_v27, %v1283_v55 }
 0x22d   :  { %v1325_v28 = vmul.f32 %v4512_v41, %v4065_v45 }
 0x22e   :  { %v3074_v35 = vpop.f32.mrb[8].mxu1  ;;  %1361 = vrot.lane.b32.xlu1 %v1326_v53, %s3618_s8 }
 0x22f   :  { %v1240_v5 = vadd.f32 %v3074_v35, %v4468_v29  ;;  %v1234_v4 = vpop.f32.mrb[9].mxu1  ;;  %1359 = vrot.lane.b32.xlu0 %v1325_v28, %s3618_s8 }
 0x230   :  { %v1235_v23 = vadd.f32 %v4468_v29, %v1234_v4 }
 0x231   :  { %vm1272_vm2 = vcmp.ge.f32.partialorder %v1240_v5, 0.0  ;;  %v1286_v63 = vmul.f32 0.01, %v1240_v5 }
 0x232   :  { %vm1271_vm5 = vcmp.ge.f32.partialorder %v1235_v23, 0.0  ;;  %v1285_v44 = vmul.f32 0.01, %v1235_v23 }
 0x233   :  { %v4520_v17 = vsel %vm1272_vm2, %v1240_v5, %v1286_v63 }
 0x234   :  { %v1328_v20 = vmul.f32 %v4520_v17, %v5310_v36  ;;  %v4524_v27 = vsel %vm1271_vm5, %v1235_v23, %v1285_v44 }
 0x235   :  { %v1327_v53 = vmul.f32 %v4524_v27, %v4121_v50 }
 0x236   :  { %v3077_v51 = vpop.f32.mrb[10].mxu1  ;;  %1365 = vrot.lane.b32.xlu1 %v1328_v20, %s3618_s8 }
 0x237   :  { %v1250_v59 = vadd.f32 %v3077_v51, %v4468_v29  ;;  %v1244_v55 = vpop.f32.mrb[11].mxu1  ;;  %1363 = vrot.lane.b32.xlu0 %v1327_v53, %s3618_s8 }
 0x238   :  { %v1245_v28 = vadd.f32 %v4468_v29, %v1244_v55 }
 0x239   :  { %vm1274_vm6 = vcmp.ge.f32.partialorder %v1250_v59, 0.0  ;;  %v1288_v35 = vmul.f32 0.01, %v1250_v59 }
 0x23a   :  { %vm1273_vm7 = vcmp.ge.f32.partialorder %v1245_v28, 0.0  ;;  %v1287_v5 = vmul.f32 0.01, %v1245_v28 }
 0x23b   :  { %v4532_v4 = vsel %vm1274_vm6, %v1250_v59, %v1288_v35 }
 0x23c   :  { %v1330_v23 = vmul.f32 %v4532_v4, %v5316_v26  ;;  %v1301_v63 = vsel %vm1273_vm7, %v1245_v28, %v1287_v5 }
 0x23d   :  { %v1329_v44 = vmul.f32 %v1301_v63, %v5314_v57 }
 0x23e   :  { %v3080_v51 = vpop.f32.mrb[12].mxu1  ;;  %1369 = vrot.lane.b32.xlu1 %v1330_v23, %s3618_s8 }
 0x23f   :  { %v1260_v20 = vadd.f32 %v3080_v51, %v4468_v29  ;;  %v1254_v55 = vpop.f32.mrb[13].mxu1  ;;  %1367 = vrot.lane.b32.xlu0 %v1329_v44, %s3618_s8  ;;  %v1305_v44 = vmul.f32 %v4476_v30, %v3911_v8  ;;  %v1308_v30 = vmul.f32 %v4488_v58, %v3985_v47  ;;  %v1311_v58 = vmul.f32 %v4512_v41, %v4067_v48 }
 0x240   :  { %v1255_v53 = vadd.f32 %v4468_v29, %v1254_v55  ;;  %v1306_v29 = vmul.f32 %v4472_v6, %v3909_v7 }
 0x241   :  { %vm1276_vm8 = vcmp.ge.f32.partialorder %v1260_v20, 0.0  ;;  %v1290_v50 = vmul.f32 0.01, %v1260_v20 }
 0x242   :  { %vm1275_vm9 = vcmp.ge.f32.partialorder %v1255_v53, 0.0  ;;  %v1289_v59 = vmul.f32 0.01, %v1255_v53 }
 0x243   :  { %v1304_v35 = vsel %vm1276_vm8, %v1260_v20, %v1290_v50 }
 0x244   :  { %v1332_v26 = vmul.f32 %v1304_v35, %v5323_v38  ;;  %v1303_v28 = vsel %vm1275_vm9, %v1255_v53, %v1289_v59 }
 0x245   :  { %v1331_v5 = vmul.f32 %v1303_v28, %v5321_v0 }
 0x246   :  { %1373 = vrot.lane.b32.xlu1 %v1332_v26, %s3618_s8  ;;  %v1307_v26 = vmul.f32 %v4484_v13, %v3959_v32 }
 0x247   :  { %1371 = vrot.lane.b32.xlu0 %v1331_v5, %s3618_s8  ;;  %v1310_v5 = vmul.f32 %v4496_v56, %v4039_v25 }
 0x288   :  { %v1350_v23 = vpop.permute.xlu0 %1349 }
 0x289   :  { %v1348_v51 = vpop.permute.xlu1 %1347  ;;  %v1390_v50 = vadd.f32 %v1350_v23, %v1306_v29  ;;  %v1309_v23 = vmul.f32 %v4498_v21, %v4011_v61 }
 0x28a   :  { %v1389_v55 = vadd.f32 %v1348_v51, %v1305_v44 }
 0x28c   :  { %3097 = vmatprep.mubr.msk.f32.mxu0 %vm1411_vm10, %v1389_v55 }
 0x28d   :  { %3098 = vmatmul.mubr.msk.f32.vlgmr.msra.gmra.mrb[14].mxu0 %vm1411_vm10, %v1390_v50  ;;  %v1312_v50 = vmul.f32 %v4508_v37, %v4095_v15 }
 0x291   :  { %v1352_v20 = vpop.permute.xlu1 %1351 }
 0x292   :  { %v1391_v53 = vadd.f32 %v1352_v20, %v1307_v26 }
 0x294   :  { %3100 = vmatprep.mubr.msk.f32.mxu0 %vm1411_vm10, %v1391_v53  ;;  %v1313_v53 = vmul.f32 %v4524_v27, %v4123_v52  ;;  %v1317_v27 = vmul.f32 %v1303_v28, %v5320_v2 }
 0x295   :  { %v1354_v59 = vpop.permute.xlu1 %1353 }
 0x296   :  { %v1392_v6 = vadd.f32 %v1354_v59, %v1308_v30  ;;  %v1314_v30 = vmul.f32 %v4520_v17, %v5312_v33 }
 0x298   :  { %3101 = vmatmul.mubr.msk.f32.gmra.mrb[16].mxu0 %vm1411_vm10, %v1392_v6 }
 0x299   :  { %v1358_v44 = vpop.permute.xlu1 %1357  ;;  %v1356_v29 = vpop.permute.xlu0 %1355 }
 0x29a   :  { %v1394_v13 = vadd.f32 %v1358_v44, %v1310_v5  ;;  %v1393_v51 = vadd.f32 %v1356_v29, %v1309_v23  ;;  %v1315_v5 = vmul.f32 %v1301_v63, %v5313_v10  ;;  %v1316_v23 = vmul.f32 %v4532_v4, %v5315_v43 }
 0x29c   :  { %3103 = vmatprep.mubr.msk.f32.mxu0 %vm1411_vm10, %v1393_v51  ;;  %v1318_v51 = vmul.f32 %v1304_v35, %v5322_v22 }
 0x29d   :  { %3104 = vmatmul.mubr.msk.f32.gmra.mrb[18].mxu0 %vm1411_vm10, %v1394_v13 }
 0x2a0   :  { %v1362_v55 = vpop.permute.xlu1 %1361 }
 0x2a1   :  { %v1360_v26 = vpop.permute.xlu0 %1359  ;;  %v1396_v20 = vadd.f32 %v1362_v55, %v1312_v50 }
 0x2a2   :  { %v1395_v56 = vadd.f32 %v1360_v26, %v1311_v58 }
 0x2a4   :  { %3106 = vmatprep.mubr.msk.f32.mxu0 %vm1411_vm10, %v1395_v56 }
 0x2a5   :  { %3107 = vmatmul.mubr.msk.f32.gmra.mrb[20].mxu0 %vm1411_vm10, %v1396_v20 }
 0x2a8   :  { %v1366_v21 = vpop.permute.xlu1 %1365 }
 0x2a9   :  { %v1364_v59 = vpop.permute.xlu0 %1363  ;;  %v1398_v41 = vadd.f32 %v1366_v21, %v1314_v30 }
 0x2aa   :  { %v1397_v6 = vadd.f32 %v1364_v59, %v1313_v53 }
 0x2ac   :  { %3109 = vmatprep.mubr.msk.f32.mxu0 %vm1411_vm10, %v1397_v6 }
 0x2ad   :  { %3110 = vmatmul.mubr.msk.f32.gmra.mrb[22].mxu0 %vm1411_vm10, %v1398_v41 }
 0x2b0   :  { %v1370_v37 = vpop.permute.xlu1 %1369 }
 0x2b1   :  { %v1368_v44 = vpop.permute.xlu0 %1367  ;;  %v1400_v13 = vadd.f32 %v1370_v37, %v1316_v23 }
 0x2b2   :  { %v1399_v29 = vadd.f32 %v1368_v44, %v1315_v5 }
 0x2b4   :  { %3112 = vmatprep.mubr.msk.f32.mxu0 %vm1411_vm10, %v1399_v29 }
 0x2b5   :  { %3113 = vmatmul.mubr.msk.f32.gmra.mrb[24].mxu0 %vm1411_vm10, %v1400_v13 }
 0x2b8   :  { %v1374_v17 = vpop.permute.xlu1 %1373 }
 0x2b9   :  { %v1372_v55 = vpop.permute.xlu0 %1371  ;;  %v1402_v50 = vadd.f32 %v1374_v17, %v1318_v51  ;;  %v71_v51 = vld [vmem:[%s5224_s1 + $0x18] sm:$0xff] }
 0x2ba   :  { %v1401_v58 = vadd.f32 %v1372_v55, %v1317_v27 }
 0x2bc   :  { %3115 = vmatprep.mubr.msk.f32.mxu0 %vm1411_vm10, %v1401_v58 }
 0x2bd   :  { %3116 = vmatmul.mubr.msk.f32.gmra.mrb[26].mxu0 %vm1411_vm10, %v1402_v50 }
 0x360   :  { %v3099_v4 = vpop.f32.mrb[14].mxu0 }
 0x361   :  { %v1520_v63 = vpop.f32.mrb[15].mxu0 }
 0x362   :  { %v3368_v26 = vpack.c.bf16 %v3099_v4, %v1520_v63 }
 0x364   :  { %3369 = vmatprep.subr.bf16.mxu1 %v3368_v26 }
 0x365   :  { %3371 = vmatpush3.bf16.msra.mxu1 %v3368_v26 }
 0x36b   :  { %v3102_v56 = vpop.f32.mrb[16].mxu0 }
 0x36c   :  { %v1530_v20 = vpop.f32.mrb[17].mxu0 }
 0x36d   :  { %v3372_v21 = vpack.c.bf16 %v3102_v56, %v1530_v20 }
 0x36f   :  { %3373 = vmatprep.subr.bf16.mxu1 %v3372_v21 }
 0x370   :  { %3375 = vmatpush3.bf16.msra.mxu1 %v3372_v21  ;;  %v3105_v28 = vpop.f32.mrb[18].mxu0 }
 0x371   :  { %v1540_v53 = vpop.f32.mrb[19].mxu0 }
 0x372   :  { %v3376_v35 = vpack.c.bf16 %v3105_v28, %v1540_v53 }
 0x374   :  { %3377 = vmatprep.subr.bf16.mxu1 %v3376_v35 }
 0x375   :  { %3379 = vmatpush3.bf16.msra.mxu1 %v3376_v35 }
 0x378   :  { %v3108_v30 = vpop.f32.mrb[20].mxu0 }
 0x379   :  { %v1550_v59 = vpop.f32.mrb[21].mxu0 }
 0x37a   :  { %v3380_v6 = vpack.c.bf16 %v3108_v30, %v1550_v59 }
 0x37c   :  { %3381 = vmatprep.subr.bf16.mxu1 %v3380_v6 }
 0x37d   :  { %3383 = vmatpush3.bf16.msra.mxu1 %v3380_v6 }
 0x380   :  { %v3111_v41 = vpop.f32.mrb[22].mxu0 }
 0x381   :  { %v1560_v37 = vpop.f32.mrb[23].mxu0 }
 0x382   :  { %v3384_v5 = vpack.c.bf16 %v3111_v41, %v1560_v37 }
 0x384   :  { %3385 = vmatprep.subr.bf16.mxu1 %v3384_v5 }
 0x385   :  { %3387 = vmatpush3.bf16.msra.mxu1 %v3384_v5 }
 0x388   :  { %v3114_v23 = vpop.f32.mrb[24].mxu0 }
 0x389   :  { %v1570_v44 = vpop.f32.mrb[25].mxu0 }
 0x38a   :  { %v3388_v29 = vpack.c.bf16 %v3114_v23, %v1570_v44 }
 0x38c   :  { %3389 = vmatprep.subr.bf16.mxu1 %v3388_v29 }
 0x38d   :  { %3391 = vmatpush3.bf16.msra.mxu1 %v3388_v29 }
 0x390   :  { %v3117_v13 = vpop.f32.mrb[26].mxu0 }
 0x391   :  { %v1580_v17 = vpop.f32.mrb[27].mxu0 }
 0x392   :  { %v3392_v27 = vpack.c.bf16 %v3117_v13, %v1580_v17 }
 0x394   :  { %3394 = vmatprep.subr.msk.bf16.mxu1 %vm3799_vm3, %v3392_v27 }
 0x395   :  { %3397 = vmatpush3.bf16.msk.msra.mxu1 %vm3799_vm3, %v3392_v27 }
 0x398   :  { %3147 = vmatmul.mubr.msk.f32.vlgmr.msra.gmra.mrb[14].mxu1 %vm303_vm0, %v4318_v12  ;;  %v1874_v12 = vld [vmem:[%s5222_s11] sm:$0xff] }
 0x399   :  { %3149 = vmatprep.mubr.msk.f32.mxu1 %vm303_vm0, %v4330_v16  ;;  %v1875_v16 = vld [vmem:[%s5222_s11 + $0x8] sm:$0xff] }
 0x39c   :  { %3150 = vmatmul.mubr.msk.f32.gmra.mrb[16].mxu1 %vm303_vm0, %v4340_v39  ;;  %v3398_v39 = vpack.c.bf16 %v1875_v16, %v1874_v12 }
 0x39d   :  { %3152 = vmatprep.mubr.msk.f32.mxu1 %vm303_vm0, %v4348_v9  ;;  %v1876_v9 = vld [vmem:[%s5222_s11 + $0x10] sm:$0xf] }
 0x39e   :  { %3399 = vmatprep.subr.bf16.mxu0 %v3398_v39 }
 0x39f   :  { %3401 = vmatpush3.bf16.msra.mxu0 %v3398_v39 }
 0x3a0   :  { %3153 = vmatmul.mubr.msk.f32.gmra.mrb[18].mxu1 %vm303_vm0, %v4362_v54  ;;  %3171 = vmatprep.subr.msk.mxu0 %vm1920_vm11, %v1876_v9  ;;  %v4626_v54 = vld [vmem:[%s5223_s10] ss:$0 sm:$0xff]  ;;  %s3619_s10 = smov 108  }
 0x3a1   :  { %3155 = vmatprep.mubr.msk.f32.mxu1 %vm303_vm0, %v4372_v34 }
 0x3a3   :  { %3172 = vmatpush3.msk.msra.mxu0 %vm1920_vm11, %v1876_v9 }
 0x3a4   :  { %3156 = vmatmul.mubr.msk.f32.gmra.mrb[20].mxu1 %vm303_vm0, %v4380_v40 }
 0x3a5   :  { %3158 = vmatprep.mubr.msk.f32.mxu1 %vm303_vm0, %v4391_v62 }
 0x3a8   :  { %3159 = vmatmul.mubr.msk.f32.gmra.mrb[22].mxu1 %vm303_vm0, %v4402_v3 }
 0x3a9   :  { %3161 = vmatprep.mubr.msk.f32.mxu1 %vm303_vm0, %v4410_v49 }
 0x3ac   :  { %3162 = vmatmul.mubr.msk.f32.gmra.mrb[24].mxu1 %vm303_vm0, %v4419_v1 }
 0x3ad   :  { %3164 = vmatprep.mubr.msk.f32.mxu1 %vm303_vm0, %v4429_v14 }
 0x3b0   :  { %3165 = vmatmul.mubr.msk.f32.gmra.mrb[26].mxu1 %vm303_vm0, %v4435_v42 }
 0x46b   :  { %v3148_v34 = vpop.f32.mrb[14].mxu1 }
 0x46c   :  { %v1671_v40 = vadd.f32 %v3148_v34, %v4626_v54  ;;  %v1665_v62 = vpop.f32.mrb[15].mxu1 }
 0x46d   :  { %v1666_v3 = vadd.f32 %v4626_v54, %v1665_v62 }
 0x46e   :  { %vm1735_vm12 = vcmp.ge.f32.partialorder %v1671_v40, 0.0  ;;  %v1749_v49 = vmul.f32 0.01, %v1671_v40 }
 0x46f   :  { %vm1734_vm13 = vcmp.ge.f32.partialorder %v1666_v3, 0.0  ;;  %v1748_v1 = vmul.f32 0.01, %v1666_v3  ;;  %v3151_v14 = vpop.f32.mrb[16].mxu1 }
 0x470   :  { %v1681_v42 = vadd.f32 %v3151_v14, %v4626_v54  ;;  %v1675_v55 = vpop.f32.mrb[17].mxu1  ;;  %v4631_v58 = vsel %vm1735_vm12, %v1671_v40, %v1749_v49 }
 0x471   :  { %v1676_v50 = vadd.f32 %v4626_v54, %v1675_v55  ;;  %v1791_v4 = vmul.f32 %v4631_v58, %v3929_v18  ;;  %v4636_v63 = vsel %vm1734_vm13, %v1666_v3, %v1748_v1 }
 0x472   :  { %vm1737_vm14 = vcmp.ge.f32.partialorder %v1681_v42, 0.0  ;;  %v1751_v26 = vmul.f32 0.01, %v1681_v42  ;;  %v1790_v56 = vmul.f32 %v4636_v63, %v3931_v19 }
 0x473   :  { %vm1736_vm15 = vcmp.ge.f32.partialorder %v1676_v50, 0.0  ;;  %v1750_v20 = vmul.f32 0.01, %v1676_v50  ;;  %1820 = vrot.lane.b32.xlu1 %v1791_v4, %s3619_s10  ;;  %v3154_v21 = vpop.f32.mrb[18].mxu1  ;;  %v5325_v4 = vld [vmem:[#allocation12_spill] sm:$0xff] }
 0x474   :  { %v1691_v28 = vadd.f32 %v3154_v21, %v4626_v54  ;;  %v1685_v53 = vpop.f32.mrb[19].mxu1  ;;  %1818 = vrot.lane.b32.xlu0 %v1790_v56, %s3619_s10  ;;  %v4643_v35 = vsel %vm1737_vm14, %v1681_v42, %v1751_v26  ;;  %v3601_v21 = vld [vmem:[%s5217_s0] sm:$0xff] }
 0x475   :  { %v1686_v18 = vadd.f32 %v4626_v54, %v1685_v53  ;;  %v1793_v30 = vmul.f32 %v4643_v35, %v3983_v46  ;;  %v4648_v59 = vsel %vm1736_vm15, %v1676_v50, %v1750_v20 }
 0x476   :  { %vm1739_vm1 = vcmp.ge.f32.partialorder %v1691_v28, 0.0  ;;  %v1753_v19 = vmul.f32 0.01, %v1691_v28  ;;  %v1792_v6 = vmul.f32 %v4648_v59, %v3957_v31 }
 0x477   :  { %vm1738_vm2 = vcmp.ge.f32.partialorder %v1686_v18, 0.0  ;;  %v1752_v41 = vmul.f32 0.01, %v1686_v18  ;;  %1824 = vrot.lane.b32.xlu1 %v1793_v30, %s3619_s10  ;;  %v3157_v37 = vpop.f32.mrb[20].mxu1 }
 0x478   :  { %v1701_v5 = vadd.f32 %v3157_v37, %v4626_v54  ;;  %v1695_v23 = vpop.f32.mrb[21].mxu1  ;;  %1822 = vrot.lane.b32.xlu0 %v1792_v6, %s3619_s10  ;;  %v4655_v44 = vsel %vm1739_vm1, %v1691_v28, %v1753_v19  ;;  %v5326_v28 = vld [vmem:[#allocation4_spill] sm:$0xff] }
 0x479   :  { %v1696_v46 = vadd.f32 %v4626_v54, %v1695_v23  ;;  %v1795_v29 = vmul.f32 %v4655_v44, %v4037_v24  ;;  %v4660_v13 = vsel %vm1738_vm2, %v1686_v18, %v1752_v41  ;;  %v4693_v53 = vadd.f32 %v3601_v21, %v5326_v28  ;;  %v5327_v18 = vld [vmem:[#allocation5_spill] sm:$0xff] }
 0x47a   :  { %vm1741_vm5 = vcmp.ge.f32.partialorder %v1701_v5, 0.0  ;;  %v1755_v31 = vmul.f32 0.01, %v1701_v5  ;;  %v1794_v17 = vmul.f32 %v4660_v13, %v4009_v60 }
 0x47b   :  { %vm1740_vm6 = vcmp.ge.f32.partialorder %v1696_v46, 0.0  ;;  %v1754_v27 = vmul.f32 0.01, %v1696_v46  ;;  %1828 = vrot.lane.b32.xlu1 %v1795_v29, %s3619_s10  ;;  %v3160_v12 = vpop.f32.mrb[22].mxu1  ;;  %v3603_v29 = vld [vmem:[%s5217_s0 + $0x10] sm:$0xff] }
 0x47c   :  { %v1711_v16 = vadd.f32 %v3160_v12, %v4626_v54  ;;  %v1705_v39 = vpop.f32.mrb[23].mxu1  ;;  %1826 = vrot.lane.b32.xlu0 %v1794_v17, %s3619_s10  ;;  %v4667_v9 = vsel %vm1741_vm5, %v1701_v5, %v1755_v31  ;;  %v5328_v5 = vld [vmem:[#allocation20_spill] sm:$0xff]  ;;  %v5329_v31 = vld [vmem:[#allocation6_spill] sm:$0xff] }
 0x47d   :  { %v1706_v24 = vadd.f32 %v4626_v54, %v1705_v39  ;;  %v1797_v34 = vmul.f32 %v4667_v9, %v4093_v11  ;;  %v4672_v40 = vsel %vm1740_vm6, %v1696_v46, %v1754_v27  ;;  %v4714_v17 = vadd.f32 %v3603_v29, %v5329_v31 }
 0x47e   :  { %vm1743_vm7 = vcmp.ge.f32.partialorder %v1711_v16, 0.0  ;;  %v1757_v60 = vmul.f32 0.01, %v1711_v16  ;;  %v1796_v62 = vmul.f32 %v4672_v40, %v4065_v45 }
 0x47f   :  { %vm1742_vm8 = vcmp.ge.f32.partialorder %v1706_v24, 0.0  ;;  %v1756_v3 = vmul.f32 0.01, %v1706_v24  ;;  %1832 = vrot.lane.b32.xlu1 %v1797_v34, %s3619_s10  ;;  %v3163_v49 = vpop.f32.mrb[24].mxu1  ;;  %v705_v34 = vsel %vm303_vm0, %v4693_v53, 0.0 }
 0x480   :  { %v1721_v1 = vadd.f32 %v3163_v49, %v4626_v54  ;;  %v1715_v14 = vpop.f32.mrb[25].mxu1  ;;  %1830 = vrot.lane.b32.xlu0 %v1796_v62, %s3619_s10  ;;  %v4679_v42 = vsel %vm1743_vm7, %v1711_v16, %v1757_v60  ;;  %v5330_v16 = vld [vmem:[#allocation7_spill] sm:$0xff] }
 0x481   :  { %v1716_v11 = vadd.f32 %v4626_v54, %v1715_v14  ;;  %v1799_v55 = vmul.f32 %v4679_v42, %v5310_v36  ;;  %v4684_v50 = vsel %vm1742_vm8, %v1706_v24, %v1756_v3  ;;  %v3602_v36 = vld [vmem:[%s5217_s0 + $0x8] sm:$0xff]  ;;  %v3605_v14 = vld [vmem:[%s5217_s0 + $0x20] sm:$0xff] }
 0x482   :  { %vm1745_vm9 = vcmp.ge.f32.partialorder %v1721_v1, 0.0  ;;  %v1759_v45 = vmul.f32 0.01, %v1721_v1  ;;  %v1798_v26 = vmul.f32 %v4684_v50, %v5325_v4  ;;  %v4699_v30 = vadd.f32 %v3602_v36, %v5327_v18  ;;  %v5333_v36 = vld [vmem:[#allocation10_spill] sm:$0xff] }
 0x483   :  { %vm1744_vm10 = vcmp.ge.f32.partialorder %v1716_v11, 0.0  ;;  %v1758_v56 = vmul.f32 0.01, %v1716_v11  ;;  %1836 = vrot.lane.b32.xlu1 %v1799_v55, %s3619_s10  ;;  %v3166_v20 = vpop.f32.mrb[26].mxu1 }
 0x484   :  { %v1731_v19 = vadd.f32 %v3166_v20, %v4626_v54  ;;  %v1725_v6 = vpop.f32.mrb[27].mxu1  ;;  %1834 = vrot.lane.b32.xlu0 %v1798_v26, %s3619_s10  ;;  %v4703_v41 = vsel %vm1745_vm9, %v1721_v1, %v1759_v45  ;;  %v708_v60 = vsel %vm303_vm0, %v4699_v30, 0.0  ;;  %v711_v1 = vsel %vm303_vm0, %v4714_v17, 0.0  ;;  %v3606_v26 = vld [vmem:[%s5217_s0 + $0x28] sm:$0xff] }
 0x485   :  { %v1726_v37 = vadd.f32 %v4626_v54, %v1725_v6  ;;  %v1801_v23 = vmul.f32 %v4703_v41, %v5328_v5  ;;  %v4708_v46 = vsel %vm1744_vm10, %v1716_v11, %v1758_v56  ;;  %v3604_v54 = vld [vmem:[%s5217_s0 + $0x18] sm:$0xff]  ;;  %v747_v62 = vadd.f32 %v708_v60, %v705_v34  ;;  %v5331_v11 = vld [vmem:[#allocation8_spill] sm:$0xff]  ;;  %v5334_v5 = vld [vmem:[#allocation11_spill] sm:$0xff] }
 0x486   :  { %vm1747_vm11 = vcmp.ge.f32.partialorder %v1731_v19, 0.0  ;;  %v1761_v27 = vmul.f32 0.01, %v1731_v19  ;;  %v1800_v12 = vmul.f32 %v4708_v46, %v5314_v57  ;;  %v4722_v39 = vadd.f32 %v3604_v54, %v5330_v16  ;;  %v5332_v56 = vld [vmem:[#allocation9_spill] sm:$0xff] }
 0x487   :  { %vm1746_vm12 = vcmp.ge.f32.partialorder %v1726_v37, 0.0  ;;  %v1760_v24 = vmul.f32 0.01, %v1726_v37  ;;  %1840 = vrot.lane.b32.xlu1 %v1801_v23, %s3619_s10  ;;  %v4742_v55 = vadd.f32 %v3605_v14, %v5331_v11  ;;  %v748_v4 = vadd.f32 %v747_v62, %v711_v1  ;;  %v3610_v62 = vld [vmem:[%s5217_s0 + $0x48] sm:$0xff] }
 0x488   :  { %1838 = vrot.lane.b32.xlu0 %v1800_v12, %s3619_s10  ;;  %v4730_v57 = vsel %vm1747_vm11, %v1731_v19, %v1761_v27  ;;  %v4753_v20 = vadd.f32 %v3606_v26, %v5332_v56  ;;  %v3609_v27 = vld [vmem:[%s5217_s0 + $0x40] sm:$0xff]  ;;  %v5335_v12 = vld [vmem:[#allocation13_spill] sm:$0xff] }
 0x489   :  { %v1803_v3 = vmul.f32 %v4730_v57, %v5323_v38  ;;  %v4734_v49 = vsel %vm1746_vm12, %v1726_v37, %v1760_v24  ;;  %v714_v38 = vsel %vm303_vm0, %v4722_v39, 0.0  ;;  %v717_v28 = vsel %vm303_vm0, %v4742_v55, 0.0  ;;  %v3608_v37 = vld [vmem:[%s5217_s0 + $0x38] sm:$0xff]  ;;  %v5337_v26 = vld [vmem:[#allocation19_spill] sm:$0xff] }
 0x48a   :  { %v1802_v45 = vmul.f32 %v4734_v49, %v5321_v0  ;;  %v749_v21 = vadd.f32 %v748_v4, %v714_v38  ;;  %v3607_v0 = vld [vmem:[%s5217_s0 + $0x30] sm:$0xff]  ;;  %v720_v6 = vsel %vm303_vm0, %v4753_v20, 0.0  ;;  %v4770_v23 = vadd.f32 %v3608_v37, %v5334_v5 }
 0x48b   :  { %1844 = vrot.lane.b32.xlu1 %v1803_v3, %s3619_s10  ;;  %v4762_v18 = vadd.f32 %v3607_v0, %v5333_v36  ;;  %v4778_v54 = vadd.f32 %v3609_v27, %v5335_v12  ;;  %v5336_v3 = vld [vmem:[#allocation16_spill] sm:$0xff]  ;;  %v3612_v36 = vld [vmem:[%s5217_s0 + $0x58] sm:$0xff]  ;;  %v3613_v27 = vld [vmem:[%s5217_s0 + $0x60] sm:$0xff] }
 0x48c   :  { %1842 = vrot.lane.b32.xlu0 %v1802_v45, %s3619_s10  ;;  %v750_v19 = vadd.f32 %v749_v21, %v717_v28  ;;  %v726_v24 = vsel %vm303_vm0, %v4770_v23, 0.0  ;;  %v4786_v14 = vadd.f32 %v3610_v62, %v5336_v3  ;;  %v3611_v4 = vld [vmem:[%s5217_s0 + $0x50] sm:$0xff]  ;;  %v5339_v12 = vld [vmem:[#allocation26_spill] sm:$0xff] }
 0x48d   :  { %v723_v31 = vsel %vm303_vm0, %v4762_v18, 0.0  ;;  %v729_v45 = vsel %vm303_vm0, %v4778_v54, 0.0  ;;  %v4794_v56 = vadd.f32 %v3611_v4, %v5337_v26  ;;  %v5340_v4 = vld [vmem:[#allocation30_spill] sm:$0xff] }
 0x48e   :  { %v751_v29 = vadd.f32 %v750_v19, %v720_v6  ;;  %v732_v0 = vsel %vm303_vm0, %v4786_v14, 0.0  ;;  %v5338_v19 = vld [vmem:[#allocation23_spill] sm:$0xff] }
 0x48f   :  { %v4802_v37 = vadd.f32 %v3612_v36, %v5338_v19 }
 0x490   :  { %v752_v16 = vadd.f32 %v751_v29, %v723_v31  ;;  %v735_v29 = vsel %vm303_vm0, %v4794_v56, 0.0 }
 0x491   :  { %v738_v3 = vsel %vm303_vm0, %v4802_v37, 0.0 }
 0x492   :  { %v753_v11 = vadd.f32 %v752_v16, %v726_v24  ;;  %v4810_v16 = vadd.f32 %v3613_v27, %v5339_v12 }
 0x494   :  { %v754_v21 = vadd.f32 %v753_v11, %v729_v45  ;;  %v3614_v11 = vld [vmem:[%s5217_s0 + $0x68] sm:$0x7f]  ;;  %v741_v36 = vsel %vm303_vm0, %v4810_v16, 0.0 }
 0x495   :  { %v4818_v26 = vadd.f32 %v3614_v11, %v5340_v4  ;;  %v1785_v11 = vmul.f32 %v4679_v42, %v5312_v33  ;;  %v1788_v42 = vmul.f32 %v4734_v49, %v5320_v2 }
 0x496   :  { %v755_v5 = vadd.f32 %v754_v21, %v732_v0 }
 0x497   :  { %v744_v27 = vsel %vm343_vm4, %v4818_v26, 0.0  ;;  %vm1877_vm4 = vcmask 162816  }
 0x498   :  { %v756_v62 = vadd.f32 %v755_v5, %v735_v29 }
 0x49a   :  { %v757_v21 = vadd.f32 %v756_v62, %v738_v3  ;;  %v1776_v62 = vmul.f32 %v4636_v63, %v3911_v8 }
 0x49c   :  { %v758_v19 = vadd.f32 %v757_v21, %v741_v36  ;;  %v1787_v21 = vmul.f32 %v4703_v41, %v5315_v43 }
 0x49e   :  { %v4824_v12 = vadd.f32 %v758_v19, %v744_v27  ;;  %v1789_v19 = vmul.f32 %v4730_v57, %v5322_v22 }
 0x4a0   :  { %v760_v43 = vrot.slane %v4824_v12, 4 }
 0x4a2   :  { %v761_v41 = vadd.f32 %v760_v43, %v4824_v12 }
 0x4ab   :  { %706 = vadd.xlane.f32.xlu0 %v705_v34  ;;  %v1777_v34 = vmul.f32 %v4631_v58, %v3909_v7  ;;  %v1780_v7 = vmul.f32 %v4660_v13, %v4011_v61  ;;  %v1781_v58 = vmul.f32 %v4655_v44, %v4039_v25  ;;  %v1784_v44 = vmul.f32 %v4684_v50, %v4123_v52 }
 0x4af   :  { %709 = vadd.xlane.f32.xlu1 %v708_v60  ;;  %712 = vadd.xlane.f32.xlu0 %v711_v1 }
 0x4b3   :  { %715 = vadd.xlane.f32.xlu0 %v714_v38  ;;  %718 = vadd.xlane.f32.xlu1 %v717_v28 }
 0x4b7   :  { %721 = vadd.xlane.f32.xlu0 %v720_v6  ;;  %724 = vadd.xlane.f32.xlu1 %v723_v31  ;;  %v1778_v6 = vmul.f32 %v4648_v59, %v3959_v32  ;;  %v1779_v31 = vmul.f32 %v4643_v35, %v3985_v47  ;;  %v1782_v35 = vmul.f32 %v4672_v40, %v4067_v48 }
 0x4bb   :  { %727 = vadd.xlane.f32.xlu0 %v726_v24  ;;  %730 = vadd.xlane.f32.xlu1 %v729_v45 }
 0x4bf   :  { %733 = vadd.xlane.f32.xlu0 %v732_v0  ;;  %736 = vadd.xlane.f32.xlu1 %v735_v29  ;;  %v1783_v29 = vmul.f32 %v4667_v9, %v4095_v15  ;;  %v1786_v9 = vmul.f32 %v4708_v46, %v5313_v10 }
 0x4c3   :  { %739 = vadd.xlane.f32.xlu0 %v738_v3  ;;  %742 = vadd.xlane.f32.xlu1 %v741_v36 }
 0x4c7   :  { %745 = vadd.xlane.f32.xlu0 %v744_v27 }
 0x4e5   :  { %v1821_v5 = vpop.permute.xlu1 %1820 }
 0x4e6   :  { %v1819_v60 = vpop.permute.xlu0 %1818  ;;  %v1861_v38 = vadd.f32 %v1821_v5, %v1777_v34  ;;  %v762_v5 = vrot.slane %v761_v41, 2 }
 0x4e7   :  { %v1860_v1 = vadd.f32 %v1819_v60, %v1776_v62 }
 0x4e8   :  { %v763_v62 = vadd.f32 %v762_v5, %v761_v41 }
 0x4e9   :  { %v1825_v28 = vpop.permute.xlu1 %1824  ;;  %3173 = vmatprep.mubr.msk.f32.mxu0 %vm1877_vm4, %v1860_v1 }
 0x4ea   :  { %v1823_v24 = vpop.permute.xlu0 %1822  ;;  %3174 = vmatmul.mubr.msk.f32.vlgmr.msra.gmra.mrb[28].mxu0 %vm1877_vm4, %v1861_v38  ;;  %v1863_v63 = vadd.f32 %v1825_v28, %v1779_v31  ;;  %v764_v34 = vrot.slane %v763_v62, 1 }
 0x4eb   :  { %v1862_v8 = vadd.f32 %v1823_v24, %v1778_v6 }
 0x4ec   :  { %v765_v2 = vadd.f32 %v764_v34, %v763_v62 }
 0x4ed   :  { %v1829_v45 = vpop.permute.xlu1 %1828  ;;  %3176 = vmatprep.mubr.msk.f32.mxu0 %vm1877_vm4, %v1862_v8 }
 0x4ee   :  { %v1827_v0 = vpop.permute.xlu0 %1826  ;;  %3177 = vmatmul.mubr.msk.f32.gmra.mrb[30].mxu0 %vm1877_vm4, %v1863_v63  ;;  %v1865_v59 = vadd.f32 %v1829_v45, %v1781_v58  ;;  %3543 = vrsqrt.f32 %v765_v2  ;;  %vm808_vm13 = vcmp.gt.f32.partialorder %v765_v2, 0.0 }
 0x4ef   :  { %v1864_v32 = vadd.f32 %v1827_v0, %v1780_v7 }
 0x4f1   :  { %v1833_v47 = vpop.permute.xlu1 %1832  ;;  %3179 = vmatprep.mubr.msk.f32.mxu0 %vm1877_vm4, %v1864_v32 }
 0x4f2   :  { %v1831_v3 = vpop.permute.xlu0 %1830  ;;  %3180 = vmatmul.mubr.msk.f32.gmra.mrb[32].mxu0 %vm1877_vm4, %v1865_v59  ;;  %v1867_v13 = vadd.f32 %v1833_v47, %v1783_v29 }
 0x4f3   :  { %v1866_v61 = vadd.f32 %v1831_v3, %v1782_v35 }
 0x4f5   :  { %v1837_v25 = vpop.permute.xlu1 %1836  ;;  %3182 = vmatprep.mubr.msk.f32.mxu0 %vm1877_vm4, %v1866_v61 }
 0x4f6   :  { %v1835_v4 = vpop.permute.xlu0 %1834  ;;  %3183 = vmatmul.mubr.msk.f32.gmra.mrb[34].mxu0 %vm1877_vm4, %v1867_v13  ;;  %v1869_v40 = vadd.f32 %v1837_v25, %v1785_v11 }
 0x4f7   :  { %v1868_v48 = vadd.f32 %v1835_v4, %v1784_v44 }
 0x4f8   :  { %v3544_v22 = vpop.eup %3543 }
 0x4f9   :  { %v1841_v15 = vpop.permute.xlu1 %1840  ;;  %3185 = vmatprep.mubr.msk.f32.mxu0 %vm1877_vm4, %v1868_v48  ;;  %v4870_v60 = vsel %vm808_vm13, %v3544_v22, 0.0 }
 0x4fa   :  { %v1839_v36 = vpop.permute.xlu0 %1838  ;;  %3186 = vmatmul.mubr.msk.f32.gmra.mrb[36].mxu0 %vm1877_vm4, %v1869_v40  ;;  %v1871_v50 = vadd.f32 %v1841_v15, %v1787_v21 }
 0x4fb   :  { %v1870_v52 = vadd.f32 %v1839_v36, %v1786_v9 }
 0x4fd   :  { %v1845_v33 = vpop.permute.xlu1 %1844  ;;  %3188 = vmatprep.mubr.msk.f32.mxu0 %vm1877_vm4, %v1870_v52 }
 0x4fe   :  { %v1843_v27 = vpop.permute.xlu0 %1842  ;;  %3189 = vmatmul.mubr.msk.f32.gmra.mrb[38].mxu0 %vm1877_vm4, %v1871_v50  ;;  %v1873_v46 = vadd.f32 %v1845_v33, %v1789_v19 }
 0x4ff   :  { %v1872_v10 = vadd.f32 %v1843_v27, %v1788_v42 }
 0x501   :  { %3191 = vmatprep.mubr.msk.f32.mxu0 %vm1877_vm4, %v1872_v10 }
 0x502   :  { %3192 = vmatmul.mubr.msk.f32.gmra.mrb[40].mxu0 %vm1877_vm4, %v1873_v46 }
 0x538   :  { %v707_v49 = vpop.xlane.xlu0 %706 }
 0x539   :  { %3545 = vrsqrt.f32 %v707_v49  ;;  %vm766_vm14 = vcmp.gt.f32.partialorder %v707_v49, 0.0 }
 0x53c   :  { %v713_v12 = vpop.xlane.xlu0 %712  ;;  %v710_v31 = vpop.xlane.xlu1 %709 }
 0x53d   :  { %3547 = vrsqrt.f32 %v710_v31  ;;  %vm767_vm15 = vcmp.gt.f32.partialorder %v710_v31, 0.0  ;;  %vm768_vm1 = vcmp.gt.f32.partialorder %v713_v12, 0.0 }
 0x53e   :  { %3549 = vrsqrt.f32 %v713_v12 }
 0x540   :  { %v716_v8 = vpop.xlane.xlu0 %715  ;;  %v719_v7 = vpop.xlane.xlu1 %718 }
 0x541   :  { %3551 = vrsqrt.f32 %v716_v8  ;;  %vm769_vm2 = vcmp.gt.f32.partialorder %v716_v8, 0.0  ;;  %vm770_vm5 = vcmp.gt.f32.partialorder %v719_v7, 0.0 }
 0x542   :  { %3553 = vrsqrt.f32 %v719_v7 }
 0x543   :  { %v3546_v57 = vpop.eup %3545 }
 0x544   :  { %v794_v1 = vsel %vm766_vm14, %v3546_v57, 0.0  ;;  %v4875_v32 = vpop.xlane.xlu0 %721  ;;  %v4877_v35 = vpop.xlane.xlu1 %724 }
 0x545   :  { %v811_v38 = vmul.f32 %v794_v1, %v4693_v53  ;;  %3555 = vrsqrt.f32 %v4875_v32  ;;  %vm771_vm6 = vcmp.gt.f32.partialorder %v4875_v32, 0.0  ;;  %vm772_vm7 = vcmp.gt.f32.partialorder %v4877_v35, 0.0 }
 0x546   :  { %3557 = vrsqrt.f32 %v4877_v35 }
 0x547   :  { %v825_v28 = vmul.f32 %v811_v38, %v4870_v60  ;;  %v3548_v40 = vpop.eup %3547 }
 0x548   :  { %v4879_v61 = vpop.xlane.xlu0 %727  ;;  %v4881_v44 = vpop.xlane.xlu1 %730  ;;  %v795_v50 = vsel %vm767_vm15, %v3548_v40, 0.0 }
 0x549   :  { %3222 = vmatprep.mubr.msk.f32.mxu1 %vm303_vm0, %v825_v28  ;;  %v3550_v9 = vpop.eup %3549  ;;  %3559 = vrsqrt.f32 %v4879_v61  ;;  %v812_v43 = vmul.f32 %v795_v50, %v4699_v30  ;;  %vm773_vm8 = vcmp.gt.f32.partialorder %v4879_v61, 0.0  ;;  %vm774_vm9 = vcmp.gt.f32.partialorder %v4881_v44, 0.0 }
 0x54a   :  { %3561 = vrsqrt.f32 %v4881_v44  ;;  %v796_v42 = vsel %vm768_vm1, %v3550_v9, 0.0  ;;  %v4949_v9 = vld [vmem:[%s5225_s12] ss:$0 sm:$0xff] }
 0x54b   :  { %v3552_v33 = vpop.eup %3551  ;;  %v813_v5 = vmul.f32 %v796_v42, %v4714_v17  ;;  %v826_v30 = vmul.f32 %v812_v43, %v4870_v60 }
 0x54c   :  { %v4885_v48 = vpop.xlane.xlu0 %733  ;;  %v737_v52 = vpop.xlane.xlu1 %736  ;;  %v797_v62 = vsel %vm769_vm2, %v3552_v33, 0.0  ;;  %v4956_v33 = vld [vmem:[%s5226_s13 + $0x1] ss:$0 sm:$0xff] }
 0x54d   :  { %v3554_v27 = vpop.eup %3553  ;;  %3563 = vrsqrt.f32 %v4885_v48  ;;  %v814_v17 = vmul.f32 %v797_v62, %v4722_v39  ;;  %v827_v57 = vmul.f32 %v813_v5, %v4870_v60  ;;  %vm775_vm10 = vcmp.gt.f32.partialorder %v4885_v48, 0.0 }
 0x54e   :  { %3565 = vrsqrt.f32 %v737_v52  ;;  %v798_v2 = vsel %vm770_vm5, %v3554_v27, 0.0  ;;  %vm776_vm11 = vcmp.gt.f32.partialorder %v737_v52, 0.0 }
 0x54f   :  { %v3556_v34 = vpop.eup %3555  ;;  %v815_v1 = vmul.f32 %v798_v2, %v4742_v55  ;;  %v828_v39 = vmul.f32 %v814_v17, %v4870_v60 }
 0x550   :  { %v740_v10 = vpop.xlane.xlu0 %739  ;;  %v743_v49 = vpop.xlane.xlu1 %742  ;;  %v799_v38 = vsel %vm771_vm6, %v3556_v34, 0.0 }
 0x551   :  { %v3558_v22 = vpop.eup %3557  ;;  %3567 = vrsqrt.f32 %v740_v10  ;;  %v829_v55 = vmul.f32 %v815_v1, %v4870_v60  ;;  %vm777_vm12 = vcmp.gt.f32.partialorder %v740_v10, 0.0  ;;  %vm778_vm13 = vcmp.gt.f32.partialorder %v743_v49, 0.0 }
 0x552   :  { %3569 = vrsqrt.f32 %v743_v49 }
 0x553   :  { %v3560_v12 = vpop.eup %3559 }
 0x554   :  { %v746_v28 = vpop.xlane.xlu0 %745  ;;  %v3562_v31 = vpop.eup %3561 }
 0x555   :  { %3571 = vrsqrt.f32 %v746_v28  ;;  %v802_v7 = vsel %vm774_vm9, %v3562_v31, 0.0  ;;  %vm779_vm14 = vcmp.gt.f32.partialorder %v746_v28, 0.0 }
 0x5bd   :  { %v3175_v6 = vpop.f32.mrb[28].mxu0 }
 0x5be   :  { %v1990_v24 = vpop.f32.mrb[29].mxu0 }
 0x5bf   :  { %v3402_v63 = vpack.c.bf16 %v3175_v6, %v1990_v24  ;;  %v800_v6 = vsel %vm772_vm7, %v3558_v22, 0.0  ;;  %v816_v24 = vmul.f32 %v799_v38, %v4753_v20 }
 0x5c0   :  { %v817_v8 = vmul.f32 %v800_v6, %v4762_v18 }
 0x5c1   :  { %v3178_v45 = vpop.f32.mrb[30].mxu0  ;;  %3403 = vmatprep.subr.bf16.mxu1 %v3402_v63 }
 0x5c2   :  { %v2000_v58 = vpop.f32.mrb[31].mxu0  ;;  %3405 = vmatpush3.bf16.msra.mxu1 %v3402_v63  ;;  %v801_v63 = vsel %vm773_vm8, %v3560_v12, 0.0  ;;  %v831_v32 = vmul.f32 %v817_v8, %v4870_v60 }
 0x5c3   :  { %v3406_v0 = vpack.c.bf16 %v3178_v45, %v2000_v58  ;;  %v3564_v45 = vpop.eup %3563  ;;  %v818_v20 = vmul.f32 %v801_v63, %v4770_v23 }
 0x5c4   :  { %v3566_v58 = vpop.eup %3565  ;;  %v803_v18 = vsel %vm775_vm10, %v3564_v45, 0.0 }
 0x5c5   :  { %v3181_v59 = vpop.f32.mrb[32].mxu0  ;;  %3407 = vmatprep.subr.bf16.mxu1 %v3406_v0 }
 0x5c6   :  { %v2010_v53 = vpop.f32.mrb[33].mxu0  ;;  %3409 = vmatpush3.bf16.msra.mxu1 %v3406_v0  ;;  %v830_v0 = vmul.f32 %v816_v24, %v4870_v60 }
 0x5c7   :  { %v3410_v47 = vpack.c.bf16 %v3181_v59, %v2010_v53  ;;  %v819_v59 = vmul.f32 %v802_v7, %v4778_v54  ;;  %v3568_v53 = vpop.eup %3567 }
 0x5c8   :  { %v3570_v35 = vpop.eup %3569 }
 0x5c9   :  { %v3184_v29 = vpop.f32.mrb[34].mxu0  ;;  %3411 = vmatprep.subr.bf16.mxu1 %v3410_v47  ;;  %v833_v23 = vmul.f32 %v819_v59, %v4870_v60  ;;  %v3572_v54 = vpop.eup %3571 }
 0x5ca   :  { %v2020_v3 = vpop.f32.mrb[35].mxu0  ;;  %3413 = vmatpush3.bf16.msra.mxu1 %v3410_v47  ;;  %v804_v47 = vsel %vm776_vm11, %v3566_v58, 0.0  ;;  %v807_v48 = vsel %vm779_vm14, %v3572_v54, 0.0  ;;  %vm2526_vm14 = vcmask 161792  }
 0x5cb   :  { %v3414_v13 = vpack.c.bf16 %v3184_v29, %v2020_v3  ;;  %v832_v29 = vmul.f32 %v818_v20, %v4870_v60  ;;  %v820_v3 = vmul.f32 %v803_v18, %v4786_v14  ;;  %v821_v61 = vmul.f32 %v804_v47, %v4794_v56 }
 0x5cc   :  { %v824_v40 = vmul.f32 %v807_v48, %v4818_v26  ;;  %v76_v26 = vld [vmem:[%s5224_s1 + $0x40] sm:$0xff] }
 0x5cd   :  { %v3187_v25 = vpop.f32.mrb[36].mxu0  ;;  %3415 = vmatprep.subr.bf16.mxu1 %v3414_v13  ;;  %v834_v44 = vmul.f32 %v820_v3, %v4870_v60 }
 0x5ce   :  { %v2030_v11 = vpop.f32.mrb[37].mxu0  ;;  %3417 = vmatpush3.bf16.msra.mxu1 %v3414_v13  ;;  %v805_v13 = vsel %vm777_vm12, %v3568_v53, 0.0 }
 0x5cf   :  { %v3418_v4 = vpack.c.bf16 %v3187_v25, %v2030_v11  ;;  %v806_v25 = vsel %vm778_vm13, %v3570_v35, 0.0  ;;  %v822_v11 = vmul.f32 %v805_v13, %v4802_v37  ;;  %v838_v37 = vmul.f32 %v824_v40, %v4870_v60 }
 0x5d0   :  { %v823_v14 = vmul.f32 %v806_v25, %v4810_v16  ;;  %v68_v16 = vld [vmem:[%s5224_s1] sm:$0xff] }
 0x5d1   :  { %v3190_v15 = vpop.f32.mrb[38].mxu0  ;;  %3419 = vmatprep.subr.bf16.mxu1 %v3418_v4  ;;  %v836_v56 = vmul.f32 %v822_v11, %v4870_v60  ;;  %3271 = vmatprep.mubr.msk.f32.mxu0 %vm303_vm0, %v68_v16 }
 0x5d2   :  { %v2040_v21 = vpop.f32.mrb[39].mxu0  ;;  %3421 = vmatpush3.bf16.msra.mxu1 %v3418_v4  ;;  %v835_v4 = vmul.f32 %v821_v61, %v4870_v60 }
 0x5d3   :  { %v3422_v36 = vpack.c.bf16 %v3190_v15, %v2040_v21  ;;  %v837_v15 = vmul.f32 %v823_v14, %v4870_v60 }
 0x5d5   :  { %v3193_v19 = vpop.f32.mrb[40].mxu0  ;;  %3423 = vmatprep.subr.bf16.mxu1 %v3422_v36 }
 0x5d6   :  { %v2050_v46 = vpop.f32.mrb[41].mxu0  ;;  %3425 = vmatpush3.bf16.msra.mxu1 %v3422_v36 }
 0x5d7   :  { %v3426_v41 = vpack.c.bf16 %v3193_v19, %v2050_v46 }
 0x5d9   :  { %3428 = vmatprep.subr.msk.bf16.mxu1 %vm3799_vm3, %v3426_v41 }
 0x5da   :  { %3431 = vmatpush3.bf16.msk.msra.mxu1 %vm3799_vm3, %v3426_v41 }
 0x5dd   :  { %3223 = vmatmul.mubr.msk.f32.vlgmr.msra.gmra.mrb[28].mxu1 %vm303_vm0, %v826_v30 }
 0x5de   :  { %3225 = vmatprep.mubr.msk.f32.mxu1 %vm303_vm0, %v827_v57 }
 0x5e1   :  { %3226 = vmatmul.mubr.msk.f32.gmra.mrb[30].mxu1 %vm303_vm0, %v828_v39 }
 0x5e2   :  { %3228 = vmatprep.mubr.msk.f32.mxu1 %vm303_vm0, %v829_v55 }
 0x5e5   :  { %3229 = vmatmul.mubr.msk.f32.gmra.mrb[32].mxu1 %vm303_vm0, %v830_v0 }
 0x5e6   :  { %3231 = vmatprep.mubr.msk.f32.mxu1 %vm303_vm0, %v831_v32 }
 0x5e9   :  { %3232 = vmatmul.mubr.msk.f32.gmra.mrb[34].mxu1 %vm303_vm0, %v832_v29 }
 0x5ea   :  { %3234 = vmatprep.mubr.msk.f32.mxu1 %vm303_vm0, %v833_v23 }
 0x5ed   :  { %3235 = vmatmul.mubr.msk.f32.gmra.mrb[36].mxu1 %vm303_vm0, %v834_v44 }
 0x5ee   :  { %3237 = vmatprep.mubr.msk.f32.mxu1 %vm303_vm0, %v835_v4 }
 0x5f1   :  { %3238 = vmatmul.mubr.msk.f32.gmra.mrb[38].mxu1 %vm303_vm0, %v836_v56 }
 0x5f2   :  { %3240 = vmatprep.mubr.msk.f32.mxu1 %vm303_vm0, %v837_v15 }
 0x5f5   :  { %3241 = vmatmul.mubr.msk.f32.gmra.mrb[40].mxu1 %vm303_vm0, %v838_v37 }
 0x5f6   :  { %3283 = vmatprep.mubr.msk.f32.mxu1 %vm303_vm0, %v76_v26 }
 0x6b0   :  { %v3224_v60 = vpop.f32.mrb[28].mxu1 }
 0x6b1   :  { %v2183_v21 = vadd.f32 %v3224_v60, %v4949_v9  ;;  %v2177_v36 = vpop.f32.mrb[29].mxu1 }
 0x6b2   :  { %v2178_v52 = vadd.f32 %v4949_v9, %v2177_v36 }
 0x6b3   :  { %vm2247_vm15 = vcmp.ge.f32.partialorder %v2183_v21, 0.0  ;;  %v2261_v50 = vmul.f32 0.01, %v2183_v21 }
 0x6b4   :  { %vm2246_vm1 = vcmp.ge.f32.partialorder %v2178_v52, 0.0  ;;  %v2260_v42 = vmul.f32 0.01, %v2178_v52  ;;  %v3227_v19 = vpop.f32.mrb[30].mxu1 }
 0x6b5   :  { %v2275_v27 = vsel %vm2247_vm15, %v2183_v21, %v2261_v50  ;;  %v2193_v10 = vadd.f32 %v3227_v19, %v4949_v9  ;;  %v2187_v46 = vpop.f32.mrb[31].mxu1 }
 0x6b6   :  { %2627 = vst.msk [vmem:[%s5227_s15 + $0x8] sm:$0xff] %vm1877_vm4, %v2275_v27  ;;  %v2274_v43 = vsel %vm2246_vm1, %v2178_v52, %v2260_v42  ;;  %v2188_v41 = vadd.f32 %v4949_v9, %v2187_v46  ;;  %v2536_v5 = vmul.f32 %v4956_v33, %v2275_v27 }
 0x6b7   :  { %v3432_v62 = vpack.c.bf16 %v2275_v27, %v2274_v43  ;;  %2626 = vst.msk [vmem:[%s5227_s15] sm:$0xff] %vm1877_vm4, %v2274_v43  ;;  %vm2249_vm2 = vcmp.ge.f32.partialorder %v2193_v10, 0.0  ;;  %v2263_v34 = vmul.f32 0.01, %v2193_v10  ;;  %v2535_v2 = vmul.f32 %v4956_v33, %v2274_v43 }
 0x6b8   :  { %vm2248_vm5 = vcmp.ge.f32.partialorder %v2188_v41, 0.0  ;;  %v2262_v49 = vmul.f32 0.01, %v2188_v41  ;;  %v3230_v22 = vpop.f32.mrb[32].mxu1  ;;  %v2552_v30 = vsel %vm1877_vm4, %v2536_v5, 0.0 }
 0x6b9   :  { %v2277_v17 = vsel %vm2249_vm2, %v2193_v10, %v2263_v34  ;;  %v2203_v57 = vadd.f32 %v3230_v22, %v4949_v9  ;;  %2553 = vadd.xlane.f32.xlu0 %v2552_v30  ;;  %v2197_v1 = vpop.f32.mrb[33].mxu1  ;;  %3433 = vmatprep.subr.bf16.mxu0 %v3432_v62  ;;  %v2549_v38 = vsel %vm1877_vm4, %v2535_v2, 0.0 }
 0x6ba   :  { %2629 = vst.msk [vmem:[%s5227_s15 + $0x18] sm:$0xff] %vm1877_vm4, %v2277_v17  ;;  %v2276_v28 = vsel %vm2248_vm5, %v2188_v41, %v2262_v49  ;;  %v2198_v12 = vadd.f32 %v4949_v9, %v2197_v1  ;;  %3462 = vmatprep.subr.bf16.mxu1 %v3432_v62  ;;  %2550 = vadd.xlane.f32.xlu1 %v2549_v38 }
 0x6bb   :  { %v2538_v6 = vmul.f32 %v4956_v33, %v2277_v17  ;;  %v3436_v31 = vpack.c.bf16 %v2277_v17, %v2276_v28  ;;  %2628 = vst.msk [vmem:[%s5227_s15 + $0x10] sm:$0xff] %vm1877_vm4, %v2276_v28  ;;  %vm2251_vm6 = vcmp.ge.f32.partialorder %v2203_v57, 0.0  ;;  %v2265_v39 = vmul.f32 0.01, %v2203_v57  ;;  %3435 = vmatpush3.bf16.msra.mxu0 %v3432_v62  ;;  %3469 = vmatpush3.bf16.msra.mxu1 %v3432_v62 }
 0x6bc   :  { %v2537_v24 = vmul.f32 %v4956_v33, %v2276_v28  ;;  %vm2250_vm7 = vcmp.ge.f32.partialorder %v2198_v12, 0.0  ;;  %v2264_v55 = vmul.f32 0.01, %v2198_v12  ;;  %v3233_v8 = vpop.f32.mrb[34].mxu1 }
 0x6bd   :  { %v2558_v63 = vsel %vm1877_vm4, %v2538_v6, 0.0  ;;  %v2279_v45 = vsel %vm2251_vm6, %v2203_v57, %v2265_v39  ;;  %v2213_v7 = vadd.f32 %v3233_v8, %v4949_v9  ;;  %v2207_v58 = vpop.f32.mrb[35].mxu1  ;;  %3437 = vmatprep.subr.bf16.mxu0 %v3436_v31  ;;  %3463 = vmatprep.subr.bf16.mxu1 %v3436_v31  ;;  %v69_v39 = vld [vmem:[%s5224_s1 + $0x8] sm:$0xff]  ;;  %v79_v8 = vld [vmem:[%s5224_s1 + $0x58] sm:$0xff] }
 0x6be   :  { %2559 = vadd.xlane.f32.xlu0 %v2558_v63  ;;  %v2555_v0 = vsel %vm1877_vm4, %v2537_v24, 0.0  ;;  %2631 = vst.msk [vmem:[%s5227_s15 + $0x28] sm:$0xff] %vm1877_vm4, %v2279_v45  ;;  %v2278_v20 = vsel %vm2250_vm7, %v2198_v12, %v2264_v55  ;;  %v2208_v32 = vadd.f32 %v4949_v9, %v2207_v58  ;;  %v2540_v59 = vmul.f32 %v4956_v33, %v2279_v45  ;;  %v70_v24 = vld [vmem:[%s5224_s1 + $0x10] sm:$0xff]  ;;  %v72_v63 = vld [vmem:[%s5224_s1 + $0x20] sm:$0xff]  ;;  %v81_v58 = vld [vmem:[%s5224_s1 + $0x68] sm:$0x7f] }
 0x6bf   :  { %2556 = vadd.xlane.f32.xlu1 %v2555_v0  ;;  %v3440_v18 = vpack.c.bf16 %v2279_v45, %v2278_v20  ;;  %2630 = vst.msk [vmem:[%s5227_s15 + $0x20] sm:$0xff] %vm1877_vm4, %v2278_v20  ;;  %vm2253_vm8 = vcmp.ge.f32.partialorder %v2213_v7, 0.0  ;;  %v2267_v53 = vmul.f32 0.01, %v2213_v7  ;;  %3439 = vmatpush3.bf16.msra.mxu0 %v3436_v31  ;;  %v2539_v47 = vmul.f32 %v4956_v33, %v2278_v20  ;;  %v78_v55 = vld [vmem:[%s5224_s1 + $0x50] sm:$0xff]  ;;  %v80_v45 = vld [vmem:[%s5224_s1 + $0x60] sm:$0xff] }
 0x6c0   :  { %3470 = vmatpush3.bf16.msra.mxu1 %v3436_v31  ;;  %vm2252_vm9 = vcmp.ge.f32.partialorder %v2208_v32, 0.0  ;;  %v2266_v35 = vmul.f32 0.01, %v2208_v32  ;;  %v3236_v29 = vpop.f32.mrb[36].mxu1  ;;  %v2564_v3 = vsel %vm1877_vm4, %v2540_v59, 0.0  ;;  %v74_v0 = vld [vmem:[%s5224_s1 + $0x30] sm:$0xff] }
 0x6c1   :  { %v2281_v23 = vsel %vm2253_vm8, %v2213_v7, %v2267_v53  ;;  %v2223_v61 = vadd.f32 %v3236_v29, %v4949_v9  ;;  %v2217_v13 = vpop.f32.mrb[37].mxu1  ;;  %3441 = vmatprep.subr.bf16.mxu0 %v3440_v18  ;;  %v2561_v54 = vsel %vm1877_vm4, %v2539_v47, 0.0  ;;  %3464 = vmatprep.subr.bf16.mxu1 %v3440_v18  ;;  %v73_v7 = vld [vmem:[%s5224_s1 + $0x28] sm:$0xff]  ;;  %v75_v20 = vld [vmem:[%s5224_s1 + $0x38] sm:$0xff]  ;;  %v2801_v59 = vld [vmem:[%s5226_s13] ss:$0 sm:$0xff] }
 0x6c2   :  { %2565 = vadd.xlane.f32.xlu0 %v2564_v3  ;;  %2633 = vst.msk [vmem:[%s5227_s15 + $0x38] sm:$0xff] %vm1877_vm4, %v2281_v23  ;;  %v2280_v25 = vsel %vm2252_vm9, %v2208_v32, %v2266_v35  ;;  %v2218_v44 = vadd.f32 %v4949_v9, %v2217_v13  ;;  %v2542_v11 = vmul.f32 %v4956_v33, %v2281_v23  ;;  %v22_v32 = vstv %s5228_s14 }
 0x6c3   :  { %2562 = vadd.xlane.f32.xlu1 %v2561_v54  ;;  %v3444_v4 = vpack.c.bf16 %v2281_v23, %v2280_v25  ;;  %2632 = vst.msk [vmem:[%s5227_s15 + $0x30] sm:$0xff] %vm1877_vm4, %v2280_v25  ;;  %vm2255_vm10 = vcmp.ge.f32.partialorder %v2223_v61, 0.0  ;;  %v2269_v14 = vmul.f32 0.01, %v2223_v61  ;;  %3443 = vmatpush3.bf16.msra.mxu0 %v3440_v18  ;;  %v2541_v48 = vmul.f32 %v4956_v33, %v2280_v25 }
 0x6c4   :  { %3471 = vmatpush3.bf16.msra.mxu1 %v3440_v18  ;;  %vm2254_vm11 = vcmp.ge.f32.partialorder %v2218_v44, 0.0  ;;  %v2268_v56 = vmul.f32 0.01, %v2218_v44  ;;  %v3239_v40 = vpop.f32.mrb[38].mxu1  ;;  %v2570_v15 = vsel %vm1877_vm4, %v2542_v11, 0.0 }
 0x6c5   :  { %v2283_v37 = vsel %vm2255_vm10, %v2223_v61, %v2269_v14  ;;  %v2233_v16 = vadd.f32 %v3239_v40, %v4949_v9  ;;  %v2227_v26 = vpop.f32.mrb[39].mxu1  ;;  %3445 = vmatprep.subr.bf16.mxu0 %v3444_v4  ;;  %v2567_v60 = vsel %vm1877_vm4, %v2541_v48, 0.0  ;;  %3465 = vmatprep.subr.bf16.mxu1 %v3444_v4  ;;  %23 = vst [vmem:[#allocation2] sm:$0x1] %v22_v32 }
 0x6c6   :  { %2571 = vadd.xlane.f32.xlu0 %v2570_v15  ;;  %2635 = vst.msk [vmem:[%s5227_s15 + $0x48] sm:$0xff] %vm1877_vm4, %v2283_v37  ;;  %v2282_v21 = vsel %vm2254_vm11, %v2218_v44, %v2268_v56  ;;  %v2228_v36 = vadd.f32 %v4949_v9, %v2227_v26  ;;  %v2544_v52 = vmul.f32 %v4956_v33, %v2283_v37 }
 0x6c7   :  { %2568 = vadd.xlane.f32.xlu1 %v2567_v60  ;;  %v3448_v50 = vpack.c.bf16 %v2283_v37, %v2282_v21  ;;  %2634 = vst.msk [vmem:[%s5227_s15 + $0x40] sm:$0xff] %vm1877_vm4, %v2282_v21  ;;  %vm2257_vm12 = vcmp.ge.f32.partialorder %v2233_v16, 0.0  ;;  %v2271_v42 = vmul.f32 0.01, %v2233_v16  ;;  %3447 = vmatpush3.bf16.msra.mxu0 %v3444_v4  ;;  %v2543_v19 = vmul.f32 %v4956_v33, %v2282_v21 }
 0x6c8   :  { %3472 = vmatpush3.bf16.msra.mxu1 %v3444_v4  ;;  %vm2256_vm13 = vcmp.ge.f32.partialorder %v2228_v36, 0.0  ;;  %v2270_v27 = vmul.f32 0.01, %v2228_v36  ;;  %v3242_v10 = vpop.f32.mrb[40].mxu1  ;;  %v2576_v46 = vsel %vm1877_vm4, %v2544_v52, 0.0 }
 0x6c9   :  { %v2285_v43 = vsel %vm2257_vm12, %v2233_v16, %v2271_v42  ;;  %v2243_v41 = vadd.f32 %v3242_v10, %v4949_v9  ;;  %v2237_v5 = vpop.f32.mrb[41].mxu1  ;;  %3449 = vmatprep.subr.bf16.mxu0 %v3448_v50  ;;  %v2573_v62 = vsel %vm1877_vm4, %v2543_v19, 0.0  ;;  %3466 = vmatprep.subr.bf16.mxu1 %v3448_v50 }
 0x6ca   :  { %2577 = vadd.xlane.f32.xlu0 %v2576_v46  ;;  %2637 = vst.msk [vmem:[%s5227_s15 + $0x58] sm:$0xff] %vm1877_vm4, %v2285_v43  ;;  %v2284_v34 = vsel %vm2256_vm13, %v2228_v36, %v2270_v27  ;;  %v2238_v2 = vadd.f32 %v4949_v9, %v2237_v5  ;;  %v2546_v49 = vmul.f32 %v4956_v33, %v2285_v43 }
 0x6cb   :  { %2574 = vadd.xlane.f32.xlu1 %v2573_v62  ;;  %v3452_v22 = vpack.c.bf16 %v2285_v43, %v2284_v34  ;;  %2636 = vst.msk [vmem:[%s5227_s15 + $0x50] sm:$0xff] %vm1877_vm4, %v2284_v34  ;;  %vm2259_vm15 = vcmp.ge.f32.partialorder %v2243_v41, 0.0  ;;  %v2273_v30 = vmul.f32 0.01, %v2243_v41  ;;  %3451 = vmatpush3.bf16.msra.mxu0 %v3448_v50  ;;  %v2545_v17 = vmul.f32 %v4956_v33, %v2284_v34 }
 0x6cc   :  { %3473 = vmatpush3.bf16.msra.mxu1 %v3448_v50  ;;  %vm2258_vm1 = vcmp.ge.f32.partialorder %v2238_v2, 0.0  ;;  %v2272_v57 = vmul.f32 0.01, %v2238_v2  ;;  %v2582_v9 = vsel %vm1877_vm4, %v2546_v49, 0.0 }
 0x6cd   :  { %v2287_v1 = vsel %vm2259_vm15, %v2243_v41, %v2273_v30  ;;  %3453 = vmatprep.subr.bf16.mxu0 %v3452_v22  ;;  %v2579_v38 = vsel %vm1877_vm4, %v2545_v17, 0.0  ;;  %3467 = vmatprep.subr.bf16.mxu1 %v3452_v22 }
 0x6ce   :  { %2583 = vadd.xlane.f32.xlu0 %v2582_v9  ;;  %v2286_v28 = vsel %vm2258_vm1, %v2238_v2, %v2272_v57  ;;  %2639 = vst.msk [vmem:[%s5227_s15 + $0x68] sm:$0x7f] %vm2526_vm14, %v2287_v1  ;;  %v5047_v12 = vmul.f32 %v4956_v33, %v2287_v1 }
 0x6cf   :  { %2580 = vadd.xlane.f32.xlu1 %v2579_v38  ;;  %v3456_v6 = vpack.c.bf16 %v2287_v1, %v2286_v28  ;;  %2638 = vst.msk [vmem:[%s5227_s15 + $0x60] sm:$0xff] %vm1877_vm4, %v2286_v28  ;;  %3455 = vmatpush3.bf16.msra.mxu0 %v3452_v22  ;;  %v5054_v31 = vmul.f32 %v4956_v33, %v2286_v28  ;;  %v77_v33 = vld [vmem:[%s5224_s1 + $0x48] sm:$0xff] }
 0x6d0   :  { %3474 = vmatpush3.bf16.msra.mxu1 %v3452_v22  ;;  %v2588_v57 = vsel %vm2526_vm14, %v5047_v12, 0.0  ;;  %v5140_v12 = vld [vmem:[#allocation2] ss:$0 sm:$0xff] }
 0x6d1   :  { %3458 = vmatprep.subr.msk.bf16.mxu0 %vm3799_vm3, %v3456_v6  ;;  %3468 = vmatprep.subr.msk.bf16.mxu1 %vm3799_vm3, %v3456_v6  ;;  %v2585_v9 = vsel %vm1877_vm4, %v5054_v31, 0.0 }
 0x6d3   :  { %3461 = vmatpush3.bf16.msk.msra.mxu0 %vm3799_vm3, %v3456_v6 }
 0x6d4   :  { %3475 = vmatpush3.bf16.msk.msra.mxu1 %vm3799_vm3, %v3456_v6  ;;  %vm2668_vm3 = vcmask 6144  }
 0x6d6   :  { %3272 = vmatmul.mubr.msk.f32.vlgmr.msra.gmra.mrb[42].mxu0 %vm303_vm0, %v69_v39 }
 0x6d7   :  { %3284 = vmatmul.mubr.msk.f32.vlgmr.msra.gmra.mrb[42].mxu1 %vm303_vm0, %v77_v33  ;;  %3274 = vmatprep.mubr.msk.f32.mxu0 %vm303_vm0, %v70_v24 }
 0x6d8   :  { %3286 = vmatprep.mubr.msk.f32.mxu1 %vm303_vm0, %v78_v55 }
 0x6da   :  { %3275 = vmatmul.mubr.msk.f32.gmra.mrb[44].mxu0 %vm303_vm0, %v71_v51 }
 0x6db   :  { %3287 = vmatmul.mubr.msk.f32.gmra.mrb[44].mxu1 %vm303_vm0, %v79_v8  ;;  %3277 = vmatprep.mubr.msk.f32.mxu0 %vm303_vm0, %v72_v63 }
 0x6dc   :  { %3289 = vmatprep.mubr.msk.f32.mxu1 %vm303_vm0, %v80_v45 }
 0x6de   :  { %3278 = vmatmul.mubr.msk.f32.gmra.mrb[46].mxu0 %vm303_vm0, %v73_v7 }
 0x6df   :  { %3290 = vmatmul.mubr.msk.f32.gmra.mrb[46].mxu1 %vm303_vm0, %v81_v58  ;;  %3280 = vmatprep.mubr.msk.f32.mxu0 %vm303_vm0, %v74_v0 }
 0x6e2   :  { %3281 = vmatmul.mubr.msk.f32.gmra.mrb[48].mxu0 %vm303_vm0, %v75_v20  ;;  %vm2654_vm0 = vcmask 7168  }
 0x746   :  { %v2554_v1 = vpop.xlane.xlu0 %2553 }
 0x747   :  { %v2551_v38 = vpop.xlane.xlu1 %2550 }
 0x74b   :  { %v2560_v28 = vpop.xlane.xlu0 %2559 }
 0x74c   :  { %v2557_v6 = vpop.xlane.xlu1 %2556 }
 0x74f   :  { %v2566_v39 = vpop.xlane.xlu0 %2565 }
 0x750   :  { %v2563_v33 = vpop.xlane.xlu1 %2562 }
 0x753   :  { %v5136_v24 = vpop.xlane.xlu0 %2571 }
 0x754   :  { %v5138_v55 = vpop.xlane.xlu1 %2568 }
 0x757   :  { %v2578_v51 = vpop.xlane.xlu0 %2577 }
 0x758   :  { %v2575_v8 = vpop.xlane.xlu1 %2574 }
 0x75b   :  { %v2584_v63 = vpop.xlane.xlu0 %2583 }
 0x75c   :  { %v2581_v45 = vpop.xlane.xlu1 %2580 }
 0x7a9   :  { %v3273_v18 = vpop.f32.mrb[42].mxu0 }
 0x7aa   :  { %v3285_v53 = vpop.f32.mrb[42].mxu1  ;;  %v2474_v47 = vmul.f32 %v3273_v18, %v2801_v59  ;;  %v2399_v35 = vpop.f32.mrb[43].mxu0 }
 0x7ab   :  { %v2482_v29 = vmul.f32 %v3285_v53, %v2801_v59  ;;  %v2439_v3 = vpop.f32.mrb[43].mxu1  ;;  %v2473_v23 = vmul.f32 %v2801_v59, %v2399_v35 }
 0x7ac   :  { %v2481_v61 = vmul.f32 %v2801_v59, %v2439_v3  ;;  %v2490_v13 = vsel %vm1877_vm4, %v2474_v47, 0.0 }
 0x7ad   :  { %2491 = vadd.xlane.f32.xlu0 %v2490_v13  ;;  %v2487_v54 = vsel %vm1877_vm4, %v2473_v23, 0.0  ;;  %v3276_v25 = vpop.f32.mrb[44].mxu0  ;;  %v2514_v11 = vsel %vm1877_vm4, %v2482_v29, 0.0 }
 0x7ae   :  { %v3288_v44 = vpop.f32.mrb[44].mxu1  ;;  %2488 = vadd.xlane.f32.xlu1 %v2487_v54  ;;  %v2476_v4 = vmul.f32 %v3276_v25, %v2801_v59  ;;  %v2409_v14 = vpop.f32.mrb[45].mxu0  ;;  %v2511_v56 = vsel %vm1877_vm4, %v2481_v61, 0.0 }
 0x7af   :  { %v2449_v48 = vpop.f32.mrb[45].mxu1  ;;  %v2475_v40 = vmul.f32 %v2801_v59, %v2409_v14  ;;  %v2484_v16 = vmul.f32 %v3288_v44, %v2801_v59 }
 0x7b0   :  { %v2496_v26 = vsel %vm1877_vm4, %v2476_v4, 0.0  ;;  %v2483_v36 = vmul.f32 %v2801_v59, %v2449_v48 }
 0x7b1   :  { %2515 = vadd.xlane.f32.xlu0 %v2514_v11  ;;  %v3279_v15 = vpop.f32.mrb[46].mxu0  ;;  %v2493_v52 = vsel %vm1877_vm4, %v2475_v40, 0.0  ;;  %v2520_v42 = vsel %vm1877_vm4, %v2484_v16, 0.0 }
 0x7b2   :  { %v3291_v37 = vpop.f32.mrb[46].mxu1  ;;  %2512 = vadd.xlane.f32.xlu1 %v2511_v56  ;;  %v2419_v60 = vpop.f32.mrb[47].mxu0  ;;  %v2478_v19 = vmul.f32 %v3279_v15, %v2801_v59  ;;  %v2517_v10 = vsel %vm1877_vm4, %v2483_v36, 0.0 }
 0x7b3   :  { %v2459_v21 = vpop.f32.mrb[47].mxu1  ;;  %v2477_v46 = vmul.f32 %v2801_v59, %v2419_v60  ;;  %v2486_v43 = vmul.f32 %v3291_v37, %v2801_v59 }
 0x7b4   :  { %v2502_v41 = vsel %vm1877_vm4, %v2478_v19, 0.0  ;;  %v2485_v5 = vmul.f32 %v2801_v59, %v2459_v21 }
 0x7b5   :  { %2497 = vadd.xlane.f32.xlu0 %v2496_v26  ;;  %v3282_v50 = vpop.f32.mrb[48].mxu0  ;;  %v2499_v62 = vsel %vm1877_vm4, %v2477_v46, 0.0  ;;  %v2527_v34 = vsel %vm2526_vm14, %v2486_v43, 0.0 }
 0x7b6   :  { %2494 = vadd.xlane.f32.xlu1 %v2493_v52  ;;  %v2429_v27 = vpop.f32.mrb[49].mxu0  ;;  %v2480_v2 = vmul.f32 %v3282_v50, %v2801_v59  ;;  %v2523_v49 = vsel %vm1877_vm4, %v2485_v5, 0.0 }
 0x7b7   :  { %v2479_v22 = vmul.f32 %v2801_v59, %v2429_v27 }
 0x7b8   :  { %v2508_v30 = vsel %vm1877_vm4, %v2480_v2, 0.0 }
 0x7b9   :  { %2521 = vadd.xlane.f32.xlu0 %v2520_v42  ;;  %v2505_v17 = vsel %vm1877_vm4, %v2479_v22, 0.0 }
 0x7ba   :  { %2518 = vadd.xlane.f32.xlu1 %v2517_v10 }
 0x7bd   :  { %2503 = vadd.xlane.f32.xlu0 %v2502_v41 }
 0x7be   :  { %2500 = vadd.xlane.f32.xlu1 %v2499_v62 }
 0x7c1   :  { %2528 = vadd.xlane.f32.xlu0 %v2527_v34 }
 0x7c2   :  { %2524 = vadd.xlane.f32.xlu1 %v2523_v49 }
 0x7c5   :  { %2509 = vadd.xlane.f32.xlu0 %v2508_v30 }
 0x7c6   :  { %2506 = vadd.xlane.f32.xlu1 %v2505_v17 }
 0x7c9   :  { %2589 = vadd.xlane.f32.xlu0 %v2588_v57 }
 0x7ca   :  { %2586 = vadd.xlane.f32.xlu1 %v2585_v9 }
 0x83a   :  { %v2492_v7 = vpop.xlane.xlu0 %2491 }
 0x83b   :  { %v2592_v58 = vadd.f32 %v2554_v1, %v2492_v7  ;;  %v2489_v31 = vpop.xlane.xlu1 %2488 }
 0x83c   :  { %v2591_v0 = vadd.f32 %v2551_v38, %v2489_v31 }
 0x83d   :  { %v2613_v20 = vadd.f32 %v5140_v12, %v2592_v58 }
 0x83e   :  { %v2612_v32 = vadd.f32 %v5140_v12, %v2591_v0  ;;  %v2516_v59 = vpop.xlane.xlu0 %2515 }
 0x83f   :  { %3573 = vtanh.f32 %v2613_v20  ;;  %v2600_v18 = vadd.f32 %v2578_v51, %v2516_v59  ;;  %v2513_v53 = vpop.xlane.xlu1 %2512 }
 0x840   :  { %3575 = vtanh.f32 %v2612_v32  ;;  %v2599_v47 = vadd.f32 %v2575_v8, %v2513_v53 }
 0x841   :  { %v2621_v35 = vadd.f32 %v5140_v12, %v2600_v18 }
 0x842   :  { %v2620_v29 = vadd.f32 %v5140_v12, %v2599_v47  ;;  %v2498_v3 = vpop.xlane.xlu0 %2497 }
 0x843   :  { %3577 = vtanh.f32 %v2621_v35  ;;  %v2594_v23 = vadd.f32 %v2560_v28, %v2498_v3  ;;  %v2495_v61 = vpop.xlane.xlu1 %2494 }
 0x844   :  { %3579 = vtanh.f32 %v2620_v29  ;;  %v2593_v13 = vadd.f32 %v2557_v6, %v2495_v61 }
 0x845   :  { %v2615_v54 = vadd.f32 %v5140_v12, %v2594_v23 }
 0x846   :  { %v2614_v25 = vadd.f32 %v5140_v12, %v2593_v13  ;;  %v2522_v44 = vpop.xlane.xlu0 %2521 }
 0x847   :  { %3581 = vtanh.f32 %v2615_v54  ;;  %v2602_v11 = vadd.f32 %v2584_v63, %v2522_v44  ;;  %v2519_v4 = vpop.xlane.xlu1 %2518 }
 0x848   :  { %3583 = vtanh.f32 %v2614_v25  ;;  %v2601_v14 = vadd.f32 %v2581_v45, %v2519_v4 }
 0x849   :  { %v3574_v48 = vpop.eup %3573  ;;  %v2623_v56 = vadd.f32 %v5140_v12, %v2602_v11 }
 0x84a   :  { %v3576_v40 = vpop.eup %3575  ;;  %2656 = vst.msk [vmem:[%s5229_s16 + $0x8] sm:$0xff] %vm2654_vm0, %v3574_v48  ;;  %v2622_v15 = vadd.f32 %v5140_v12, %v2601_v14  ;;  %v2504_v37 = vpop.xlane.xlu0 %2503 }
 0x84b   :  { %2655 = vst.msk [vmem:[%s5229_s16] sm:$0xff] %vm2654_vm0, %v3576_v40  ;;  %3585 = vtanh.f32 %v2623_v56  ;;  %v2596_v16 = vadd.f32 %v2566_v39, %v2504_v37  ;;  %v2501_v26 = vpop.xlane.xlu1 %2500 }
 0x84c   :  { %3587 = vtanh.f32 %v2622_v15  ;;  %v2595_v60 = vadd.f32 %v2563_v33, %v2501_v26 }
 0x84d   :  { %v3578_v21 = vpop.eup %3577  ;;  %v2617_v36 = vadd.f32 %v5140_v12, %v2596_v16 }
 0x84e   :  { %v3580_v52 = vpop.eup %3579  ;;  %2664 = vst.msk [vmem:[%s5229_s16 + $0x48] sm:$0xff] %vm2654_vm0, %v3578_v21  ;;  %v2616_v50 = vadd.f32 %v5140_v12, %v2595_v60  ;;  %v2529_v42 = vpop.xlane.xlu0 %2528 }
 0x84f   :  { %2663 = vst.msk [vmem:[%s5229_s16 + $0x40] sm:$0xff] %vm2654_vm0, %v3580_v52  ;;  %3589 = vtanh.f32 %v2617_v36  ;;  %v2525_v19 = vpop.xlane.xlu1 %2524 }
 0x850   :  { %3591 = vtanh.f32 %v2616_v50 }
 0x851   :  { %v3582_v27 = vpop.eup %3581 }
 0x852   :  { %v3584_v10 = vpop.eup %3583  ;;  %2658 = vst.msk [vmem:[%s5229_s16 + $0x18] sm:$0xff] %vm2654_vm0, %v3582_v27  ;;  %v2510_v46 = vpop.xlane.xlu0 %2509 }
 0x853   :  { %2657 = vst.msk [vmem:[%s5229_s16 + $0x10] sm:$0xff] %vm2654_vm0, %v3584_v10  ;;  %v2598_v43 = vadd.f32 %v5136_v24, %v2510_v46  ;;  %v2507_v41 = vpop.xlane.xlu1 %2506 }
 0x854   :  { %v2597_v5 = vadd.f32 %v5138_v55, %v2507_v41 }
 0x855   :  { %v3586_v62 = vpop.eup %3585  ;;  %v2619_v34 = vadd.f32 %v5140_v12, %v2598_v43 }
 0x856   :  { %v3588_v2 = vpop.eup %3587  ;;  %2666 = vst.msk [vmem:[%s5229_s16 + $0x58] sm:$0xff] %vm2654_vm0, %v3586_v62  ;;  %v2618_v49 = vadd.f32 %v5140_v12, %v2597_v5  ;;  %v2590_v22 = vpop.xlane.xlu0 %2589 }
 0x857   :  { %2665 = vst.msk [vmem:[%s5229_s16 + $0x50] sm:$0xff] %vm2654_vm0, %v3588_v2  ;;  %3593 = vtanh.f32 %v2619_v34  ;;  %v2604_v30 = vadd.f32 %v2590_v22, %v2529_v42  ;;  %v2587_v17 = vpop.xlane.xlu1 %2586 }
 0x858   :  { %3595 = vtanh.f32 %v2618_v49  ;;  %v2603_v57 = vadd.f32 %v2587_v17, %v2525_v19 }
 0x859   :  { %v3590_v9 = vpop.eup %3589  ;;  %v2625_v1 = vadd.f32 %v5140_v12, %v2604_v30 }
 0x85a   :  { %v3592_v38 = vpop.eup %3591  ;;  %2660 = vst.msk [vmem:[%s5229_s16 + $0x28] sm:$0xff] %vm2654_vm0, %v3590_v9  ;;  %v2624_v28 = vadd.f32 %v5140_v12, %v2603_v57 }
 0x85b   :  { %2659 = vst.msk [vmem:[%s5229_s16 + $0x20] sm:$0xff] %vm2654_vm0, %v3592_v38  ;;  %3597 = vtanh.f32 %v2625_v1 }
 0x85c   :  { %3599 = vtanh.f32 %v2624_v28 }
 0x861   :  { %v3594_v6 = vpop.eup %3593 }
 0x862   :  { %v3596_v39 = vpop.eup %3595  ;;  %2662 = vst.msk [vmem:[%s5229_s16 + $0x38] sm:$0xff] %vm2654_vm0, %v3594_v6 }
 0x863   :  { %2661 = vst.msk [vmem:[%s5229_s16 + $0x30] sm:$0xff] %vm2654_vm0, %v3596_v39 }
 0x865   :  { %v3598_v33 = vpop.eup %3597 }
 0x866   :  { %v3600_v24 = vpop.eup %3599  ;;  %2669 = vst.msk [vmem:[%s5229_s16 + $0x68] sm:$0x7f] %vm2668_vm3, %v3598_v33 }
 0x867   :  { %2667 = vst.msk [vmem:[%s5229_s16 + $0x60] sm:$0xff] %vm2654_vm0, %v3600_v24 }

</bundles_post_ra>
